<compile_context>
chip_gen: v7x
topology: tpu7x:2x2x1
jax: 0.10.0
libtpu: 0.0.40
codegen_flags: <defaults>
</compile_context>

<pallas_src>
import numpy as np
import jax
import jax.numpy as jnp
from jax.experimental import pallas as pl
from jax.experimental.pallas import tpu as pltpu


BT_MAX = 32      # batch rows per grid step (sized well inside 16/32 MiB scoped VMEM)
N_PAD = 128      # lane-dense padded width of the logits output


# ----------------------------- fused Pallas kernel ---------------------------

def fused_cnn_kernel(patches_ref, wc_ref, bc_ref, w3_ref, b2_ref,
                     logits_ref, pooled_ref):
    # patches_ref: (49, Bt*16, 25)   rows of dim1 ordered (b, k), k = pool offset
    # wc_ref:      (25, 16)          conv weight  [tap, out-channel]
    # bc_ref:      (1, 16)           conv bias
    # w3_ref:      (49, 16, 128)     permuted+padded linear weight [p, c, out]
    # b2_ref:      (1, 128)          padded linear bias
    # logits_ref:  (Bt, 128)         logits (cols >= 10 hit zero weights)
    # pooled_ref:  (49, Bt, 16)      pooled conv features (for the torch flatten)
    P, BK, _ = patches_ref.shape
    bt = BK // 16

    # Conv as ONE big-M MXU matmul.
    pats = patches_ref[...].reshape(P * BK, 25)                       # aligned merge
    conv = jnp.dot(pats, wc_ref[...], preferred_element_type=jnp.float32)

    # Max over the 16 pool offsets, then bias + ReLU (monotone => exact).
    conv = conv.reshape(P, bt, 16, 16)                                # [p, b, k, c]
    pooled = jnp.max(conv, axis=2)                                    # (49, Bt, 16)
    pooled = jnp.maximum(pooled + bc_ref[...], 0.0)
    pooled_ref[...] = pooled

    # Fused linear: contract channels per pooled position (batched matmul over
    # the 49 positions), sum the partials, add bias.  Lane-dense N=128 output.
    part = jnp.einsum("pbc,pcn->pbn", pooled, w3_ref[...],
                      preferred_element_type=jnp.float32)             # (49, Bt, 128)
    logits_ref[...] = jnp.sum(part, axis=0) + b2_ref[...]


# ------------------------------ glue / wrapper -------------------------------

def _build_patches(x):
    """x: [B,1,28,28] -> patches [49, B*16, 25] via 25 static slices (no gather).

    patches[py*7+px, b*16 + dy*4+dx, ky*5+kx] = padded[b, 4*py+dy+ky, 4*px+dx+kx]
    """
    B = x.shape[0]
    img = x[:, 0].astype(jnp.float32)
    padded = jnp.pad(img, ((0, 0), (2, 2), (2, 2)))                   # [B,32,32]
    taps = [padded[:, ky:ky + 28, kx:kx + 28]
            for ky in range(5) for kx in range(5)]
    pat = jnp.stack(taps, axis=-1)                                    # [B,28,28,25]
    pat = pat.reshape(B, 7, 4, 7, 4, 25)                              # [b,py,dy,px,dx,j]
    pat = pat.transpose(1, 3, 0, 2, 4, 5)                             # [py,px,b,dy,dx,j]
    return pat.reshape(49, B * 16, 25)


def cnn_forward(x, w_conv, b_conv, w_lin, b_lin):
    """Returns (logits [B,10], flat_features [B,784]) like the torch module."""
    B = x.shape[0]
    if B <= BT_MAX:
        bt, bpad = B, B
    else:
        bt = BT_MAX
        bpad = ((B + bt - 1) // bt) * bt
    xx = x if bpad == B else jnp.pad(x, ((0, bpad - B), (0, 0), (0, 0), (0, 0)))

    patches = _build_patches(xx)                                      # (49, bpad*16, 25)

    wc = w_conv.reshape(16, 25).T.astype(jnp.float32)                 # (25,16)
    bc = b_conv.reshape(1, 16).astype(jnp.float32)                    # (1,16)

    # Pre-permute + pad the linear weight: w3[p, c, o] = w_lin[o, c*49 + p].
    w3 = w_lin.astype(jnp.float32).reshape(10, 16, 49).transpose(2, 1, 0)   # (49,16,10)
    w3 = jnp.pad(w3, ((0, 0), (0, 0), (0, N_PAD - 10)))                     # (49,16,128)
    b2 = jnp.pad(b_lin.astype(jnp.float32), (0, N_PAD - 10)).reshape(1, N_PAD)

    logits_pad, pooled = pl.pallas_call(
        fused_cnn_kernel,
        grid=(bpad // bt,),
        in_specs=[
            pl.BlockSpec((49, bt * 16, 25), lambda b: (0, b, 0)),
            pl.BlockSpec((25, 16), lambda b: (0, 0)),
            pl.BlockSpec((1, 16), lambda b: (0, 0)),
            pl.BlockSpec((49, 16, N_PAD), lambda b: (0, 0, 0)),
            pl.BlockSpec((1, N_PAD), lambda b: (0, 0)),
        ],
        out_specs=(
            pl.BlockSpec((bt, N_PAD), lambda b: (b, 0)),
            pl.BlockSpec((49, bt, 16), lambda b: (0, b, 0)),
        ),
        out_shape=(
            jax.ShapeDtypeStruct((bpad, N_PAD), jnp.float32),
            jax.ShapeDtypeStruct((49, bpad, 16), jnp.float32),
        ),
        compiler_params=pltpu.CompilerParams(
            dimension_semantics=("parallel",),
            vmem_limit_bytes=32 * 1024 * 1024,
        ),
    )(patches, wc, bc, w3, b2)

    logits = logits_pad[:B, :10]
    # PyTorch flatten of [B,16,7,7] is channel-major: idx = c*49 + p.
    # Produced lazily in glue (off the logits critical path).
    flat = pooled[:, :B, :].transpose(1, 2, 0).reshape(B, 16 * 7 * 7)
    return logits, flat


# --------------------------- pure-JAX reference ------------------------------

def cnn_reference(x, w_conv, b_conv, w_lin, b_lin):
    B = x.shape[0]
    conv = jax.lax.conv_general_dilated(
        x, w_conv, window_strides=(1, 1), padding=((2, 2), (2, 2)),
        dimension_numbers=("NCHW", "OIHW", "NCHW"))
    conv = jnp.maximum(conv + b_conv[None, :, None, None], 0.0)       # [B,16,28,28]
    pooled = conv.reshape(B, 16, 7, 4, 7, 4).max(axis=(3, 5))         # [B,16,7,7]
    flat = pooled.reshape(B, -1)                                      # [B,784]
    logits = flat @ w_lin.T + b_lin
    return logits, flat


# ---------------------------------- main --------------------------------------

if __name__ == "__main__":
    key = jax.random.PRNGKey(0)
    k1, k2, k3, k4, k5 = jax.random.split(key, 5)

    # Deterministic synthetic parameters (same shapes as the torch module).
    w_conv = jax.random.normal(k1, (16, 1, 5, 5), jnp.float32) * 0.1
    b_conv = jax.random.normal(k2, (16,), jnp.float32) * 0.1
    w_lin = jax.random.normal(k3, (10, 16 * 7 * 7), jnp.float32) * 0.05
    b_lin = jax.random.normal(k4, (10,), jnp.float32) * 0.1

    # Input: MNIST-shaped, small batch.
    x = jax.random.normal(k5, (2, 1, 28, 28), jnp.float32)

    logits, flat = jax.jit(cnn_forward)(x, w_conv, b_conv, w_lin, b_lin)
    jax.block_until_ready((logits, flat))

    ref_logits, ref_flat = cnn_reference(x, w_conv, b_conv, w_lin, b_lin)
    np.testing.assert_allclose(np.asarray(flat), np.asarray(ref_flat),
                               rtol=1e-4, atol=1e-4)
    np.testing.assert_allclose(np.asarray(logits), np.asarray(ref_logits),
                               rtol=1e-4, atol=1e-4)

    print("KERNEL_OK")
</pallas_src>

<mosaic_0001>
module attributes {stable_mosaic.version = 11 : i64} {
  func.func @fused_cnn_kernel(%arg0: i32, %arg1: memref<49x32x25xf32, #tpu.memory_space<vmem>>, %arg2: memref<25x16xf32, #tpu.memory_space<vmem>>, %arg3: memref<1x16xf32, #tpu.memory_space<vmem>>, %arg4: memref<49x16x128xf32, #tpu.memory_space<vmem>>, %arg5: memref<1x128xf32, #tpu.memory_space<vmem>>, %arg6: memref<2x128xf32, #tpu.memory_space<vmem>>, %arg7: memref<49x2x16xf32, #tpu.memory_space<vmem>>) attributes {dimension_semantics = [#tpu.dimension_semantics<parallel>], iteration_bounds = array<i64: 1>, scalar_prefetch = 0 : i64, scratch_operands = 0 : i64, tpu.core_type = #tpu.core_type<tc>, window_params = [{transform_indices = @transform_0, window_bounds = array<i64: 49, 32, 25>}, {pipeline_mode = #tpu.pipeline_mode<synchronous>, transform_indices = @transform_1, window_bounds = array<i64: 25, 16>}, {pipeline_mode = #tpu.pipeline_mode<synchronous>, transform_indices = @transform_2, window_bounds = array<i64: 1, 16>}, {pipeline_mode = #tpu.pipeline_mode<synchronous>, transform_indices = @transform_3, window_bounds = array<i64: 49, 16, 128>}, {pipeline_mode = #tpu.pipeline_mode<synchronous>, transform_indices = @transform_4, window_bounds = array<i64: 1, 128>}, {transform_indices = @transform_5, window_bounds = array<i64: 2, 128>}, {transform_indices = @transform_6, window_bounds = array<i64: 49, 2, 16>}]} {
    %c0 = arith.constant 0 : index
    %c0_0 = arith.constant 0 : index
    %c0_1 = arith.constant 0 : index
    %0 = vector.load %arg1[%c0, %c0_0, %c0_1] : memref<49x32x25xf32, #tpu.memory_space<vmem>>, vector<49x32x25xf32>
    %1 = vector.shape_cast %0 : vector<49x32x25xf32> to vector<1568x25xf32>
    %c0_2 = arith.constant 0 : index
    %c0_3 = arith.constant 0 : index
    %2 = vector.load %arg2[%c0_2, %c0_3] : memref<25x16xf32, #tpu.memory_space<vmem>>, vector<25x16xf32>
    %cst = arith.constant dense<0.000000e+00> : vector<1568x16xf32>
    %3 = tpu.matmul %1, %2, %cst {dimension_numbers = #tpu.dot_dimension_numbers<[1], [0], [0], [1], [0, 0, 1, 1], [], []>} : vector<1568x25xf32>, vector<25x16xf32>, vector<1568x16xf32> -> vector<1568x16xf32>
    %4 = vector.shape_cast %3 : vector<1568x16xf32> to vector<49x2x16x16xf32>
    %cst_4 = arith.constant dense<0xFF800000> : vector<49x2x16xf32>
    %5 = vector.multi_reduction <maximumf>, %4, %cst_4 [2] : vector<49x2x16x16xf32> to vector<49x2x16xf32>
    %c0_5 = arith.constant 0 : index
    %c0_6 = arith.constant 0 : index
    %6 = vector.load %arg3[%c0_5, %c0_6] : memref<1x16xf32, #tpu.memory_space<vmem>>, vector<1x16xf32>
    %7 = vector.shape_cast %6 : vector<1x16xf32> to vector<1x1x16xf32>
    %8 = vector.broadcast %7 : vector<1x1x16xf32> to vector<49x2x16xf32>
    %9 = arith.addf %5, %8 : vector<49x2x16xf32>
    %cst_7 = arith.constant 0.000000e+00 : f32
    %10 = vector.broadcast %cst_7 : f32 to vector<49x2x16xf32>
    %11 = arith.maximumf %9, %10 : vector<49x2x16xf32>
    %c0_8 = arith.constant 0 : index
    %c0_9 = arith.constant 0 : index
    %c0_10 = arith.constant 0 : index
    %12 = vector.load %arg7[%c0_8, %c0_9, %c0_10] : memref<49x2x16xf32, #tpu.memory_space<vmem>>, vector<49x2x16xf32>
    tpu.vector_store %arg7[%c0_8, %c0_9, %c0_10], %11 {strides = array<i32>} : memref<49x2x16xf32, #tpu.memory_space<vmem>>, vector<49x2x16xf32>,
    %c0_11 = arith.constant 0 : index
    %c0_12 = arith.constant 0 : index
    %c0_13 = arith.constant 0 : index
    %13 = vector.load %arg4[%c0_11, %c0_12, %c0_13] : memref<49x16x128xf32, #tpu.memory_space<vmem>>, vector<49x16x128xf32>
    "tpu.trace_start"() <{level = 10 : i32, message = "pbc,pcn->pbn"}> : () -> ()
    %cst_14 = arith.constant dense<0.000000e+00> : vector<49x2x128xf32>
    %14 = tpu.matmul %11, %13, %cst_14 {dimension_numbers = #tpu.dot_dimension_numbers<[2], [1], [1], [2], [0, 0, 0, 1, 1, 2], [0], [0]>} : vector<49x2x16xf32>, vector<49x16x128xf32>, vector<49x2x128xf32> -> vector<49x2x128xf32>
    "tpu.trace_stop"() : () -> ()
    %cst_15 = arith.constant dense<0.000000e+00> : vector<2x128xf32>
    %15 = vector.multi_reduction <add>, %14, %cst_15 [0] : vector<49x2x128xf32> to vector<2x128xf32>
    %c0_16 = arith.constant 0 : index
    %c0_17 = arith.constant 0 : index
    %16 = vector.load %arg5[%c0_16, %c0_17] : memref<1x128xf32, #tpu.memory_space<vmem>>, vector<1x128xf32>
    %17 = vector.broadcast %16 : vector<1x128xf32> to vector<2x128xf32>
    %18 = arith.addf %15, %17 : vector<2x128xf32>
    %c0_18 = arith.constant 0 : index
    %c0_19 = arith.constant 0 : index
    %19 = vector.load %arg6[%c0_18, %c0_19] : memref<2x128xf32, #tpu.memory_space<vmem>>, vector<2x128xf32>
    tpu.vector_store %arg6[%c0_18, %c0_19], %18 {strides = array<i32>} : memref<2x128xf32, #tpu.memory_space<vmem>>, vector<2x128xf32>,
    return
  }
  func.func @transform_0(%arg0: i32) -> (i32, i32, i32) {
    %c0_i32 = arith.constant 0 : i32
    %c0_i32_0 = arith.constant 0 : i32
    %c0_i32_1 = arith.constant 0 : i32
    return %c0_i32, %arg0, %c0_i32_0 : i32, i32, i32
  }
  func.func @transform_1(%arg0: i32) -> (i32, i32) {
    %c0_i32 = arith.constant 0 : i32
    %c0_i32_0 = arith.constant 0 : i32
    %c0_i32_1 = arith.constant 0 : i32
    return %c0_i32, %c0_i32_0 : i32, i32
  }
  func.func @transform_2(%arg0: i32) -> (i32, i32) {
    %c0_i32 = arith.constant 0 : i32
    %c0_i32_0 = arith.constant 0 : i32
    %c0_i32_1 = arith.constant 0 : i32
    return %c0_i32, %c0_i32_0 : i32, i32
  }
  func.func @transform_3(%arg0: i32) -> (i32, i32, i32) {
    %c0_i32 = arith.constant 0 : i32
    %c0_i32_0 = arith.constant 0 : i32
    %c0_i32_1 = arith.constant 0 : i32
    %c0_i32_2 = arith.constant 0 : i32
    return %c0_i32, %c0_i32_0, %c0_i32_1 : i32, i32, i32
  }
  func.func @transform_4(%arg0: i32) -> (i32, i32) {
    %c0_i32 = arith.constant 0 : i32
    %c0_i32_0 = arith.constant 0 : i32
    %c0_i32_1 = arith.constant 0 : i32
    return %c0_i32, %c0_i32_0 : i32, i32
  }
  func.func @transform_5(%arg0: i32) -> (i32, i32) {
    %c0_i32 = arith.constant 0 : i32
    %c0_i32_0 = arith.constant 0 : i32
    return %arg0, %c0_i32 : i32, i32
  }
  func.func @transform_6(%arg0: i32) -> (i32, i32, i32) {
    %c0_i32 = arith.constant 0 : i32
    %c0_i32_0 = arith.constant 0 : i32
    %c0_i32_1 = arith.constant 0 : i32
    return %c0_i32, %arg0, %c0_i32_0 : i32, i32, i32
  }
}

</mosaic_0001>

<bundles_post_ra>
// kernel: cnn_forward.1
= control target key start
LH: loop header
LB: loop body
LE: loop exit
PB: predicated region body
PF: predicated region fallthrough
CT: control target
= control target key end

     0   :  { %vm812_vm0 = vcmask 1040384   ;;  %vm223_vm1 = vcmask 203776   ;;  %vm8427_vm2 = vmmov 1   ;;  %s11035_s0 = inlined_call_operand.vmem [shape: f32[49,32,25], index: 0, kind: input, shape index: {}]   ;;  %s11036_s1 = inlined_call_operand.vmem [shape: f32[25,16], index: 1, kind: input, shape index: {}]   ;;  %s11037_s2 = inlined_call_operand.vmem [shape: f32[1,16], index: 2, kind: input, shape index: {}]   ;;  %s11038_s3 = inlined_call_operand.vmem [shape: f32[49,16,128], index: 3, kind: input, shape index: {}]   ;;  %s11039_s4 = inlined_call_operand.vmem [shape: f32[1,128], index: 4, kind: input, shape index: {}]   ;;  %s11040_s5 = inlined_call_operand.hbm [shape: f32[2,128], index: 5, kind: output, shape index: {0}]   ;;  %s11041_s6 = inlined_call_operand.vmem [shape: f32[49,2,16], index: 6, kind: output, shape index: {1}]  }
   0x1   :  { %v219_v0 = vld [vmem:[%s11036_s1] sm:$0xff]  ;;  %v220_v1 = vld [vmem:[%s11036_s1 + $0x8] sm:$0xff]  ;;  %v221_v2 = vld [vmem:[%s11036_s1 + $0x10] sm:$0xff] }
   0x2   :  { %v8234_v3 = vpack.c.bf16 %v220_v1, %v219_v0  ;;  %v222_v4 = vld [vmem:[%s11036_s1 + $0x18] sm:$0x1]  ;;  %v23_v5 = vld [vmem:[%s11035_s0] sm:$0xff]  ;;  %vm8239_vm3 = vmpackc.low %vm812_vm0, %vm8427_vm2 }
   0x3   :  { %v8238_v6 = vpack.c.bf16 %v222_v4, %v221_v2  ;;  %7597 = vmatprep.mubr.msk.f32.mxu0 %vm223_vm1, %v23_v5  ;;  %v24_v7 = vld [vmem:[%s11035_s0 + $0x8] sm:$0xff]  ;;  %v25_v8 = vld [vmem:[%s11035_s0 + $0x10] sm:$0xff]  ;;  %v26_v9 = vld [vmem:[%s11035_s0 + $0x18] sm:$0xff] }
   0x4   :  { %8235 = vmatprep.subr.bf16.mxu0 %v8234_v3  ;;  %8391 = vmatprep.subr.bf16.mxu1 %v8234_v3  ;;  %v27_v10 = vld [vmem:[%s11035_s0 + $0x20] sm:$0xff]  ;;  %v28_v11 = vld [vmem:[%s11035_s0 + $0x28] sm:$0xff]  ;;  %v29_v12 = vld [vmem:[%s11035_s0 + $0x30] sm:$0xff] }
   0x5   :  { %8237 = vmatpush3.bf16.msra.mxu0 %v8234_v3  ;;  %8393 = vmatpush3.bf16.msra.mxu1 %v8234_v3  ;;  %v30_v13 = vld [vmem:[%s11035_s0 + $0x38] sm:$0xff]  ;;  %v31_v14 = vld [vmem:[%s11035_s0 + $0x40] sm:$0xff]  ;;  %v32_v15 = vld [vmem:[%s11035_s0 + $0x48] sm:$0xff] }
   0x6   :  { %8240 = vmatprep.subr.msk.bf16.mxu0 %vm8239_vm3, %v8238_v6  ;;  %8392 = vmatprep.subr.msk.bf16.mxu1 %vm8239_vm3, %v8238_v6  ;;  %v33_v16 = vld [vmem:[%s11035_s0 + $0x50] sm:$0xff]  ;;  %v171_v17 = vld [vmem:[%s11035_s0 + $0x4a0] sm:$0xff]  ;;  %v172_v18 = vld [vmem:[%s11035_s0 + $0x4a8] sm:$0xff] }
   0x7   :  { %7819 = vmatprep.mubr.msk.f32.mxu1 %vm223_vm1, %v171_v17  ;;  %v173_v19 = vld [vmem:[%s11035_s0 + $0x4b0] sm:$0xff] }
   0x9   :  { %8243 = vmatpush3.bf16.msk.msra.mxu0 %vm8239_vm3, %v8238_v6  ;;  %8394 = vmatpush3.bf16.msk.msra.mxu1 %vm8239_vm3, %v8238_v6 }
   0xc   :  { %7598 = vmatmul.mubr.msk.f32.vlgmr.msra.gmra.mrb[0].mxu0 %vm223_vm1, %v24_v7  ;;  %7820 = vmatmul.mubr.msk.f32.vlgmr.msra.gmra.mrb[0].mxu1 %vm223_vm1, %v172_v18 }
   0xd   :  { %7600 = vmatprep.mubr.msk.f32.mxu0 %vm223_vm1, %v25_v8 }
  0x10   :  { %7601 = vmatmul.mubr.msk.f32.gmra.mrb[2].mxu0 %vm223_vm1, %v26_v9 }
  0x11   :  { %7603 = vmatprep.mubr.msk.f32.mxu0 %vm223_vm1, %v27_v10 }
  0x14   :  { %7604 = vmatmul.mubr.msk.f32.gmra.mrb[4].mxu0 %vm223_vm1, %v28_v11 }
  0x15   :  { %7606 = vmatprep.mubr.msk.f32.mxu0 %vm223_vm1, %v29_v12 }
  0x18   :  { %7607 = vmatmul.mubr.msk.f32.gmra.mrb[6].mxu0 %vm223_vm1, %v30_v13 }
  0x19   :  { %7609 = vmatprep.mubr.msk.f32.mxu0 %vm223_vm1, %v31_v14 }
  0x1c   :  { %7610 = vmatmul.mubr.msk.f32.gmra.mrb[8].mxu0 %vm223_vm1, %v32_v15 }
  0x1d   :  { %12 = vsyncpa [#allocation3], 0  ;;  %7612 = vmatprep.mubr.msk.f32.mxu0 %vm223_vm1, %v33_v16  ;;  %v34_v20 = vld [vmem:[%s11035_s0 + $0x58] sm:$0xff]  ;;  %7822 = vmatprep.mubr.msk.f32.mxu1 %vm223_vm1, %v173_v19  ;;  %v35_v22 = vld [vmem:[%s11035_s0 + $0x60] sm:$0xff]  ;;  %vm8429_vm4 = vmmov 0   ;;  %vm1861_vm5 = vcmask 130048  }
  0x1e   :  { %v174_v21 = vld [vmem:[%s11035_s0 + $0x4b8] sm:$0xff]  ;;  %v175_v23 = vld [vmem:[%s11035_s0 + $0x4c0] sm:$0xff]  ;;  %v36_v24 = vld [vmem:[%s11035_s0 + $0x68] sm:$0xff]  ;;  %vm3046_vm6 = vcmask 1041409   ;;  %vm3193_vm7 = vcmask 123904   ;;  %vm6869_vm8 = vcmask 1041408  }
  0x1f   :  { %7823 = vmatmul.mubr.msk.f32.gmra.mrb[2].mxu1 %vm223_vm1, %v174_v21  ;;  %v176_v25 = vld [vmem:[%s11035_s0 + $0x4c8] sm:$0xff]  ;;  %v37_v26 = vld [vmem:[%s11035_s0 + $0x70] sm:$0xff]  ;;  %v38_v28 = vld [vmem:[%s11035_s0 + $0x78] sm:$0xff]  ;;  %s8431_s9 = smov [#allocation2]  }
  0x20   :  { %7613 = vmatmul.mubr.msk.f32.gmra.mrb[10].mxu0 %vm223_vm1, %v34_v20  ;;  %7825 = vmatprep.mubr.msk.f32.mxu1 %vm223_vm1, %v175_v23  ;;  %v177_v27 = vld [vmem:[%s11035_s0 + $0x4d0] sm:$0xff]  ;;  %v178_v29 = vld [vmem:[%s11035_s0 + $0x4d8] sm:$0xff]  ;;  %v39_v30 = vld [vmem:[%s11035_s0 + $0x80] sm:$0xff]  ;;  %s6982_s10 = sshll.u32 %s8431_s9, 4  ;;  %s6983_s10 = int_to_ptr.vmem [resolvable:$true] %s6982_s10 }
  0x21   :  { %7615 = vmatprep.mubr.msk.f32.mxu0 %vm223_vm1, %v35_v22  ;;  %v179_v31 = vld [vmem:[%s11035_s0 + $0x4e0] sm:$0xff]  ;;  %v40_v32 = vld [vmem:[%s11035_s0 + $0x88] sm:$0xff]  ;;  %v41_v34 = vld [vmem:[%s11035_s0 + $0x90] sm:$0xff]  ;;  %s8403_s11 = scalar_lea.vmem %s6983_s10, 32  ;;  %p8408_p1 = scmp.lt.s32.totalorder %s6983_s10, %s6983_s10 }
  0x22   :  { %v180_v33 = vld [vmem:[%s11035_s0 + $0x4e8] sm:$0xff]  ;;  %v181_v35 = vld [vmem:[%s11035_s0 + $0x4f0] sm:$0xff]  ;;  %v42_v36 = vld [vmem:[%s11035_s0 + $0x98] sm:$0xff]  ;;  %p8404_p0 = scmp.ne.s32.totalorder %s6983_s10, %s8403_s11  ;;  %p8409_p2 = scmp.lt.s32.totalorder %s8403_s11, %s8403_s11 }
  0x23   :  { %7826 = vmatmul.mubr.msk.f32.gmra.mrb[4].mxu1 %vm223_vm1, %v176_v25  ;;  %v182_v37 = vld [vmem:[%s11035_s0 + $0x4f8] sm:$0xff]  ;;  %v43_v38 = vld [vmem:[%s11035_s0 + $0xa0] sm:$0xff]  ;;  %v44_v40 = vld [vmem:[%s11035_s0 + $0xa8] sm:$0xff] }
  0x24   :  { %7616 = vmatmul.mubr.msk.f32.gmra.mrb[12].mxu0 %vm223_vm1, %v36_v24  ;;  %7828 = vmatprep.mubr.msk.f32.mxu1 %vm223_vm1, %v177_v27  ;;  %v183_v39 = vld [vmem:[%s11035_s0 + $0x500] sm:$0xff]  ;;  %v184_v41 = vld [vmem:[%s11035_s0 + $0x508] sm:$0xff]  ;;  %v45_v42 = vld [vmem:[%s11035_s0 + $0xb0] sm:$0xff]  ;;  %p8410_p3 = por %p8409_p2, %p8408_p1 }
  0x25   :  { %7618 = vmatprep.mubr.msk.f32.mxu0 %vm223_vm1, %v37_v26  ;;  %v185_v43 = vld [vmem:[%s11035_s0 + $0x510] sm:$0xff]  ;;  %v46_v44 = vld [vmem:[%s11035_s0 + $0xb8] sm:$0xff]  ;;  %v47_v46 = vld [vmem:[%s11035_s0 + $0xc0] sm:$0xff] }
  0x26   :  { %v186_v45 = vld [vmem:[%s11035_s0 + $0x518] sm:$0xff]  ;;  %v187_v47 = vld [vmem:[%s11035_s0 + $0x520] sm:$0xff]  ;;  %v48_v48 = vld [vmem:[%s11035_s0 + $0xc8] sm:$0xff]  ;;  %p8411_p4 = pnand %p8410_p3, %p8404_p0 }
  0x27   :  { %7829 = vmatmul.mubr.msk.f32.gmra.mrb[6].mxu1 %vm223_vm1, %v178_v29  ;;  %v188_v49 = vld [vmem:[%s11035_s0 + $0x528] sm:$0xff]  ;;  %v49_v50 = vld [vmem:[%s11035_s0 + $0xd0] sm:$0xff]  ;;  %v50_v52 = vld [vmem:[%s11035_s0 + $0xd8] sm:$0xff] }
  0x28   :  { %7619 = vmatmul.mubr.msk.f32.gmra.mrb[14].mxu0 %vm223_vm1, %v38_v28  ;;  %7831 = vmatprep.mubr.msk.f32.mxu1 %vm223_vm1, %v179_v31  ;;  %v189_v51 = vld [vmem:[%s11035_s0 + $0x530] sm:$0xff]  ;;  %v190_v53 = vld [vmem:[%s11035_s0 + $0x538] sm:$0xff]  ;;  %v51_v54 = vld [vmem:[%s11035_s0 + $0xe0] sm:$0xff] }
  0x29   :  { %7621 = vmatprep.mubr.msk.f32.mxu0 %vm223_vm1, %v39_v30  ;;  %v191_v55 = vld [vmem:[%s11035_s0 + $0x540] sm:$0xff]  ;;  %v52_v56 = vld [vmem:[%s11035_s0 + $0xe8] sm:$0xff]  ;;  %v53_v58 = vld [vmem:[%s11035_s0 + $0xf0] sm:$0xff] }
  0x2a   :  { %v192_v57 = vld [vmem:[%s11035_s0 + $0x548] sm:$0xff]  ;;  %v193_v59 = vld [vmem:[%s11035_s0 + $0x550] sm:$0xff]  ;;  %v54_v60 = vld [vmem:[%s11035_s0 + $0xf8] sm:$0xff] }
  0x2b   :  { %7832 = vmatmul.mubr.msk.f32.gmra.mrb[8].mxu1 %vm223_vm1, %v180_v33  ;;  %v194_v61 = vld [vmem:[%s11035_s0 + $0x558] sm:$0xff]  ;;  %v55_v62 = vld [vmem:[%s11035_s0 + $0x100] sm:$0xff]  ;;  %v56_v0 = vld [vmem:[%s11035_s0 + $0x108] sm:$0xff] }
  0x2c   :  { %7622 = vmatmul.mubr.msk.f32.gmra.mrb[16].mxu0 %vm223_vm1, %v40_v32  ;;  %7834 = vmatprep.mubr.msk.f32.mxu1 %vm223_vm1, %v181_v35  ;;  %v195_v63 = vld [vmem:[%s11035_s0 + $0x560] sm:$0xff]  ;;  %v196_v1 = vld [vmem:[%s11035_s0 + $0x568] sm:$0xff]  ;;  %v57_v2 = vld [vmem:[%s11035_s0 + $0x110] sm:$0xff] }
  0x2d   :  { %7624 = vmatprep.mubr.msk.f32.mxu0 %vm223_vm1, %v41_v34  ;;  %v197_v3 = vld [vmem:[%s11035_s0 + $0x570] sm:$0xff]  ;;  %v58_v4 = vld [vmem:[%s11035_s0 + $0x118] sm:$0xff]  ;;  %v59_v6 = vld [vmem:[%s11035_s0 + $0x120] sm:$0xff] }
  0x2e   :  { %v198_v5 = vld [vmem:[%s11035_s0 + $0x578] sm:$0xff]  ;;  %v199_v7 = vld [vmem:[%s11035_s0 + $0x580] sm:$0xff]  ;;  %v60_v8 = vld [vmem:[%s11035_s0 + $0x128] sm:$0xff] }
  0x2f   :  { %7835 = vmatmul.mubr.msk.f32.gmra.mrb[10].mxu1 %vm223_vm1, %v182_v37  ;;  %v200_v9 = vld [vmem:[%s11035_s0 + $0x588] sm:$0xff]  ;;  %v61_v10 = vld [vmem:[%s11035_s0 + $0x130] sm:$0xff]  ;;  %v62_v12 = vld [vmem:[%s11035_s0 + $0x138] sm:$0xff] }
  0x30   :  { %7625 = vmatmul.mubr.msk.f32.gmra.mrb[18].mxu0 %vm223_vm1, %v42_v36  ;;  %7837 = vmatprep.mubr.msk.f32.mxu1 %vm223_vm1, %v183_v39  ;;  %v201_v11 = vld [vmem:[%s11035_s0 + $0x590] sm:$0xff]  ;;  %v202_v13 = vld [vmem:[%s11035_s0 + $0x598] sm:$0xff]  ;;  %v63_v14 = vld [vmem:[%s11035_s0 + $0x140] sm:$0xff] }
  0x31   :  { %7627 = vmatprep.mubr.msk.f32.mxu0 %vm223_vm1, %v43_v38  ;;  %v203_v15 = vld [vmem:[%s11035_s0 + $0x5a0] sm:$0xff]  ;;  %v64_v16 = vld [vmem:[%s11035_s0 + $0x148] sm:$0xff]  ;;  %v65_v18 = vld [vmem:[%s11035_s0 + $0x150] sm:$0xff] }
  0x32   :  { %v204_v17 = vld [vmem:[%s11035_s0 + $0x5a8] sm:$0xff]  ;;  %v205_v19 = vld [vmem:[%s11035_s0 + $0x5b0] sm:$0xff]  ;;  %v66_v20 = vld [vmem:[%s11035_s0 + $0x158] sm:$0xff] }
  0x33   :  { %7838 = vmatmul.mubr.msk.f32.gmra.mrb[12].mxu1 %vm223_vm1, %v184_v41  ;;  %v67_v21 = vld [vmem:[%s11035_s0 + $0x160] sm:$0xff]  ;;  %v206_v22 = vld [vmem:[%s11035_s0 + $0x5b8] sm:$0xff]  ;;  %v68_v23 = vld [vmem:[%s11035_s0 + $0x168] sm:$0xff] }
  0x34   :  { %7628 = vmatmul.mubr.msk.f32.gmra.mrb[20].mxu0 %vm223_vm1, %v44_v40  ;;  %7840 = vmatprep.mubr.msk.f32.mxu1 %vm223_vm1, %v185_v43  ;;  %v207_v24 = vld [vmem:[%s11035_s0 + $0x5c0] sm:$0xff]  ;;  %v69_v25 = vld [vmem:[%s11035_s0 + $0x170] sm:$0xff]  ;;  %v208_v26 = vld [vmem:[%s11035_s0 + $0x5c8] sm:$0xff] }
  0x35   :  { %7630 = vmatprep.mubr.msk.f32.mxu0 %vm223_vm1, %v45_v42  ;;  %v70_v27 = vld [vmem:[%s11035_s0 + $0x178] sm:$0xff]  ;;  %v209_v28 = vld [vmem:[%s11035_s0 + $0x5d0] sm:$0xff]  ;;  %v71_v29 = vld [vmem:[%s11035_s0 + $0x180] sm:$0xff] }
  0x36   :  { %v210_v30 = vld [vmem:[%s11035_s0 + $0x5d8] sm:$0xff]  ;;  %v72_v31 = vld [vmem:[%s11035_s0 + $0x188] sm:$0xff]  ;;  %v211_v32 = vld [vmem:[%s11035_s0 + $0x5e0] sm:$0xff] }
  0x37   :  { %7841 = vmatmul.mubr.msk.f32.gmra.mrb[14].mxu1 %vm223_vm1, %v186_v45  ;;  %v73_v33 = vld [vmem:[%s11035_s0 + $0x190] sm:$0xff]  ;;  %v212_v34 = vld [vmem:[%s11035_s0 + $0x5e8] sm:$0xff]  ;;  %v74_v35 = vld [vmem:[%s11035_s0 + $0x198] sm:$0xff] }
  0x38   :  { %7631 = vmatmul.mubr.msk.f32.gmra.mrb[22].mxu0 %vm223_vm1, %v46_v44  ;;  %7843 = vmatprep.mubr.msk.f32.mxu1 %vm223_vm1, %v187_v47  ;;  %v213_v36 = vld [vmem:[%s11035_s0 + $0x5f0] sm:$0xff]  ;;  %v75_v37 = vld [vmem:[%s11035_s0 + $0x1a0] sm:$0xff]  ;;  %v214_v38 = vld [vmem:[%s11035_s0 + $0x5f8] sm:$0xff] }
  0x39   :  { %7633 = vmatprep.mubr.msk.f32.mxu0 %vm223_vm1, %v47_v46  ;;  %v76_v39 = vld [vmem:[%s11035_s0 + $0x1a8] sm:$0xff]  ;;  %v77_v40 = vld [vmem:[%s11035_s0 + $0x1b0] sm:$0xff]  ;;  %v215_v41 = vld [vmem:[%s11035_s0 + $0x600] sm:$0xff] }
  0x3a   :  { %v216_v42 = vld [vmem:[%s11035_s0 + $0x608] sm:$0xff]  ;;  %v78_v43 = vld [vmem:[%s11035_s0 + $0x1b8] sm:$0xff]  ;;  %v79_v44 = vld [vmem:[%s11035_s0 + $0x1c0] sm:$0xff] }
  0x3b   :  { %7844 = vmatmul.mubr.msk.f32.gmra.mrb[16].mxu1 %vm223_vm1, %v188_v49  ;;  %v217_v45 = vld [vmem:[%s11035_s0 + $0x610] sm:$0xff]  ;;  %v3243_v46 = vld [vmem:[%s11038_s3] sm:$0xff]  ;;  %v3244_v47 = vld [vmem:[%s11038_s3 + $0x8] sm:$0xff] }
  0x3c   :  { %7634 = vmatmul.mubr.msk.f32.gmra.mrb[24].mxu0 %vm223_vm1, %v48_v48  ;;  %7846 = vmatprep.mubr.msk.f32.mxu1 %vm223_vm1, %v189_v51  ;;  %v218_v48 = vld [vmem:[%s11035_s0 + $0x618] sm:$0xff]  ;;  %v8245_v49 = vpack.c.bf16 %v3244_v47, %v3243_v46  ;;  %v11044_v51 = vmov 0.0|0.0   ;;  %v133_v46 = vld [vmem:[%s11035_s0 + $0x370] sm:$0xff] }
  0x3d   :  { %7636 = vmatprep.mubr.msk.f32.mxu0 %vm223_vm1, %v49_v50  ;;  %v80_v50 = vld [vmem:[%s11035_s0 + $0x1c8] sm:$0xff]  ;;  %8244 = vmatprep.subr.bf16.mxu1 %v11044_v51 }
  0x3e   :  { %8246 = vmatpush3.bf16.msra.mxu1 %v8245_v49 }
  0x3f   :  { %7847 = vmatmul.mubr.msk.f32.gmra.mrb[18].mxu1 %vm223_vm1, %v190_v53  ;;  %v11042_v53 = vmov 0.0   ;;  %8247 = vmatprep.subr.bf16.mxu1 %v11044_v51 }
  0x40   :  { %7637 = vmatmul.mubr.msk.f32.gmra.mrb[26].mxu0 %vm223_vm1, %v50_v52  ;;  %7849 = vmatprep.mubr.msk.f32.mxu1 %vm223_vm1, %v191_v55  ;;  %v81_v52 = vld [vmem:[%s11035_s0 + $0x1d0] sm:$0xff]  ;;  %v83_v55 = vld [vmem:[%s11035_s0 + $0x1e0] sm:$0xff] }
  0x41   :  { %7639 = vmatprep.mubr.msk.f32.mxu0 %vm223_vm1, %v51_v54  ;;  %v82_v54 = vld [vmem:[%s11035_s0 + $0x1d8] sm:$0xff] }
  0x43   :  { %7850 = vmatmul.mubr.msk.f32.gmra.mrb[20].mxu1 %vm223_vm1, %v192_v57  ;;  %v85_v57 = vld [vmem:[%s11035_s0 + $0x1f0] sm:$0xff] }
  0x44   :  { %7640 = vmatmul.mubr.msk.f32.gmra.mrb[28].mxu0 %vm223_vm1, %v52_v56  ;;  %7852 = vmatprep.mubr.msk.f32.mxu1 %vm223_vm1, %v193_v59  ;;  %v84_v56 = vld [vmem:[%s11035_s0 + $0x1e8] sm:$0xff]  ;;  %v87_v59 = vld [vmem:[%s11035_s0 + $0x200] sm:$0xff] }
  0x45   :  { %7642 = vmatprep.mubr.msk.f32.mxu0 %vm223_vm1, %v53_v58  ;;  %v86_v58 = vld [vmem:[%s11035_s0 + $0x1f8] sm:$0xff] }
  0x47   :  { %7853 = vmatmul.mubr.msk.f32.gmra.mrb[22].mxu1 %vm223_vm1, %v194_v61  ;;  %v89_v61 = vld [vmem:[%s11035_s0 + $0x210] sm:$0xff] }
  0x48   :  { %7643 = vmatmul.mubr.msk.f32.gmra.mrb[30].mxu0 %vm223_vm1, %v54_v60  ;;  %7855 = vmatprep.mubr.msk.f32.mxu1 %vm223_vm1, %v195_v63  ;;  %v88_v60 = vld [vmem:[%s11035_s0 + $0x208] sm:$0xff]  ;;  %v91_v63 = vld [vmem:[%s11035_s0 + $0x220] sm:$0xff] }
  0x49   :  { %7645 = vmatprep.mubr.msk.f32.mxu0 %vm223_vm1, %v55_v62  ;;  %v90_v62 = vld [vmem:[%s11035_s0 + $0x218] sm:$0xff] }
  0x4b   :  { %7856 = vmatmul.mubr.msk.f32.gmra.mrb[24].mxu1 %vm223_vm1, %v196_v1  ;;  %v93_v1 = vld [vmem:[%s11035_s0 + $0x230] sm:$0xff] }
  0x4c   :  { %7646 = vmatmul.mubr.msk.f32.gmra.mrb[32].mxu0 %vm223_vm1, %v56_v0  ;;  %7858 = vmatprep.mubr.msk.f32.mxu1 %vm223_vm1, %v197_v3  ;;  %v92_v0 = vld [vmem:[%s11035_s0 + $0x228] sm:$0xff]  ;;  %v95_v3 = vld [vmem:[%s11035_s0 + $0x240] sm:$0xff] }
  0x4d   :  { %7648 = vmatprep.mubr.msk.f32.mxu0 %vm223_vm1, %v57_v2  ;;  %v94_v2 = vld [vmem:[%s11035_s0 + $0x238] sm:$0xff] }
  0x4f   :  { %7859 = vmatmul.mubr.msk.f32.gmra.mrb[26].mxu1 %vm223_vm1, %v198_v5  ;;  %v97_v5 = vld [vmem:[%s11035_s0 + $0x250] sm:$0xff] }
  0x50   :  { %7649 = vmatmul.mubr.msk.f32.gmra.mrb[34].mxu0 %vm223_vm1, %v58_v4  ;;  %7861 = vmatprep.mubr.msk.f32.mxu1 %vm223_vm1, %v199_v7  ;;  %v96_v4 = vld [vmem:[%s11035_s0 + $0x248] sm:$0xff]  ;;  %v99_v7 = vld [vmem:[%s11035_s0 + $0x260] sm:$0xff] }
  0x51   :  { %7651 = vmatprep.mubr.msk.f32.mxu0 %vm223_vm1, %v59_v6  ;;  %v98_v6 = vld [vmem:[%s11035_s0 + $0x258] sm:$0xff] }
  0x53   :  { %7862 = vmatmul.mubr.msk.f32.gmra.mrb[28].mxu1 %vm223_vm1, %v200_v9  ;;  %v101_v9 = vld [vmem:[%s11035_s0 + $0x270] sm:$0xff] }
  0x54   :  { %7652 = vmatmul.mubr.msk.f32.gmra.mrb[36].mxu0 %vm223_vm1, %v60_v8  ;;  %7864 = vmatprep.mubr.msk.f32.mxu1 %vm223_vm1, %v201_v11  ;;  %v100_v8 = vld [vmem:[%s11035_s0 + $0x268] sm:$0xff]  ;;  %v103_v11 = vld [vmem:[%s11035_s0 + $0x280] sm:$0xff] }
  0x55   :  { %7654 = vmatprep.mubr.msk.f32.mxu0 %vm223_vm1, %v61_v10  ;;  %v102_v10 = vld [vmem:[%s11035_s0 + $0x278] sm:$0xff] }
  0x57   :  { %7865 = vmatmul.mubr.msk.f32.gmra.mrb[30].mxu1 %vm223_vm1, %v202_v13  ;;  %v105_v13 = vld [vmem:[%s11035_s0 + $0x290] sm:$0xff] }
  0x58   :  { %7655 = vmatmul.mubr.msk.f32.gmra.mrb[38].mxu0 %vm223_vm1, %v62_v12  ;;  %7867 = vmatprep.mubr.msk.f32.mxu1 %vm223_vm1, %v203_v15  ;;  %v104_v12 = vld [vmem:[%s11035_s0 + $0x288] sm:$0xff]  ;;  %v107_v15 = vld [vmem:[%s11035_s0 + $0x2a0] sm:$0xff] }
  0x59   :  { %7657 = vmatprep.mubr.msk.f32.mxu0 %vm223_vm1, %v63_v14  ;;  %v106_v14 = vld [vmem:[%s11035_s0 + $0x298] sm:$0xff] }
  0x5b   :  { %7868 = vmatmul.mubr.msk.f32.gmra.mrb[32].mxu1 %vm223_vm1, %v204_v17  ;;  %v109_v17 = vld [vmem:[%s11035_s0 + $0x2b0] sm:$0xff] }
  0x5c   :  { %7658 = vmatmul.mubr.msk.f32.gmra.mrb[40].mxu0 %vm223_vm1, %v64_v16  ;;  %7870 = vmatprep.mubr.msk.f32.mxu1 %vm223_vm1, %v205_v19  ;;  %v108_v16 = vld [vmem:[%s11035_s0 + $0x2a8] sm:$0xff]  ;;  %v111_v19 = vld [vmem:[%s11035_s0 + $0x2c0] sm:$0xff] }
  0x5d   :  { %7660 = vmatprep.mubr.msk.f32.mxu0 %vm223_vm1, %v65_v18  ;;  %v110_v18 = vld [vmem:[%s11035_s0 + $0x2b8] sm:$0xff] }
  0x5f   :  { %7871 = vmatmul.mubr.msk.f32.gmra.mrb[34].mxu1 %vm223_vm1, %v206_v22  ;;  %v114_v22 = vld [vmem:[%s11035_s0 + $0x2d8] sm:$0xff] }
  0x60   :  { %7661 = vmatmul.mubr.msk.f32.gmra.mrb[42].mxu0 %vm223_vm1, %v66_v20  ;;  %7873 = vmatprep.mubr.msk.f32.mxu1 %vm223_vm1, %v207_v24  ;;  %v112_v20 = vld [vmem:[%s11035_s0 + $0x2c8] sm:$0xff] }
  0x61   :  { %7663 = vmatprep.mubr.msk.f32.mxu0 %vm223_vm1, %v67_v21  ;;  %v113_v21 = vld [vmem:[%s11035_s0 + $0x2d0] sm:$0xff]  ;;  %v116_v24 = vld [vmem:[%s11035_s0 + $0x2e8] sm:$0xff] }
  0x63   :  { %7874 = vmatmul.mubr.msk.f32.gmra.mrb[36].mxu1 %vm223_vm1, %v208_v26  ;;  %v118_v26 = vld [vmem:[%s11035_s0 + $0x2f8] sm:$0xff] }
  0x64   :  { %7664 = vmatmul.mubr.msk.f32.gmra.mrb[44].mxu0 %vm223_vm1, %v68_v23  ;;  %7876 = vmatprep.mubr.msk.f32.mxu1 %vm223_vm1, %v209_v28  ;;  %v115_v23 = vld [vmem:[%s11035_s0 + $0x2e0] sm:$0xff]  ;;  %v120_v28 = vld [vmem:[%s11035_s0 + $0x308] sm:$0xff] }
  0x65   :  { %7666 = vmatprep.mubr.msk.f32.mxu0 %vm223_vm1, %v69_v25  ;;  %v117_v25 = vld [vmem:[%s11035_s0 + $0x2f0] sm:$0xff] }
  0x67   :  { %7877 = vmatmul.mubr.msk.f32.gmra.mrb[38].mxu1 %vm223_vm1, %v210_v30  ;;  %v122_v30 = vld [vmem:[%s11035_s0 + $0x318] sm:$0xff] }
  0x68   :  { %7667 = vmatmul.mubr.msk.f32.gmra.mrb[46].mxu0 %vm223_vm1, %v70_v27  ;;  %7879 = vmatprep.mubr.msk.f32.mxu1 %vm223_vm1, %v211_v32  ;;  %v119_v27 = vld [vmem:[%s11035_s0 + $0x300] sm:$0xff]  ;;  %v124_v32 = vld [vmem:[%s11035_s0 + $0x328] sm:$0xff] }
  0x69   :  { %7669 = vmatprep.mubr.msk.f32.mxu0 %vm223_vm1, %v71_v29  ;;  %v121_v29 = vld [vmem:[%s11035_s0 + $0x310] sm:$0xff] }
  0x6b   :  { %7880 = vmatmul.mubr.msk.f32.gmra.mrb[40].mxu1 %vm223_vm1, %v212_v34  ;;  %v126_v34 = vld [vmem:[%s11035_s0 + $0x338] sm:$0xff] }
  0x6c   :  { %7670 = vmatmul.mubr.msk.f32.gmra.mrb[48].mxu0 %vm223_vm1, %v72_v31  ;;  %7882 = vmatprep.mubr.msk.f32.mxu1 %vm223_vm1, %v213_v36  ;;  %v123_v31 = vld [vmem:[%s11035_s0 + $0x320] sm:$0xff]  ;;  %v128_v36 = vld [vmem:[%s11035_s0 + $0x348] sm:$0xff] }
  0x6d   :  { %7672 = vmatprep.mubr.msk.f32.mxu0 %vm223_vm1, %v73_v33  ;;  %v125_v33 = vld [vmem:[%s11035_s0 + $0x330] sm:$0xff] }
  0x6f   :  { %7883 = vmatmul.mubr.msk.f32.gmra.mrb[42].mxu1 %vm223_vm1, %v214_v38  ;;  %v130_v38 = vld [vmem:[%s11035_s0 + $0x358] sm:$0xff] }
  0x70   :  { %7673 = vmatmul.mubr.msk.f32.gmra.mrb[50].mxu0 %vm223_vm1, %v74_v35  ;;  %7885 = vmatprep.mubr.msk.f32.mxu1 %vm223_vm1, %v215_v41  ;;  %v127_v35 = vld [vmem:[%s11035_s0 + $0x340] sm:$0xff] }
  0x71   :  { %7675 = vmatprep.mubr.msk.f32.mxu0 %vm223_vm1, %v75_v37  ;;  %v129_v37 = vld [vmem:[%s11035_s0 + $0x350] sm:$0xff] }
  0x73   :  { %7886 = vmatmul.mubr.msk.f32.gmra.mrb[44].mxu1 %vm223_vm1, %v216_v42 }
  0x74   :  { %7676 = vmatmul.mubr.msk.f32.gmra.mrb[52].mxu0 %vm223_vm1, %v76_v39  ;;  %7888 = vmatprep.mubr.msk.f32.mxu1 %vm223_vm1, %v217_v45  ;;  %v131_v39 = vld [vmem:[%s11035_s0 + $0x360] sm:$0xff] }
  0x75   :  { %7678 = vmatprep.mubr.msk.f32.mxu0 %vm223_vm1, %v77_v40 }
  0x77   :  { %7889 = vmatmul.mubr.msk.f32.gmra.mrb[46].mxu1 %vm223_vm1, %v218_v48 }
  0x78   :  { %7679 = vmatmul.mubr.msk.f32.gmra.mrb[54].mxu0 %vm223_vm1, %v78_v43  ;;  %7895 = vmatprep.mubr.msk.f32.mxu1 %vm8429_vm4, %v11042_v53 }
  0x79   :  { %7681 = vmatprep.mubr.msk.f32.mxu0 %vm223_vm1, %v79_v44  ;;  %v132_v44 = vld [vmem:[%s11035_s0 + $0x368] sm:$0xff] }
  0x7c   :  { %7682 = vmatmul.mubr.msk.f32.gmra.mrb[56].mxu0 %vm223_vm1, %v80_v50 }
  0x7d   :  { %7684 = vmatprep.mubr.msk.f32.mxu0 %vm223_vm1, %v81_v52 }
  0x80   :  { %7685 = vmatmul.mubr.msk.f32.gmra.mrb[58].mxu0 %vm223_vm1, %v82_v54  ;;  %v134_v54 = vld [vmem:[%s11035_s0 + $0x378] sm:$0xff] }
  0x81   :  { %7687 = vmatprep.mubr.msk.f32.mxu0 %vm223_vm1, %v83_v55 }
  0x84   :  { %7688 = vmatmul.mubr.msk.f32.gmra.mrb[60].mxu0 %vm223_vm1, %v84_v56 }
  0x85   :  { %7690 = vmatprep.mubr.msk.f32.mxu0 %vm223_vm1, %v85_v57  ;;  %v135_v57 = vld [vmem:[%s11035_s0 + $0x380] sm:$0xff] }
  0x88   :  { %7691 = vmatmul.mubr.msk.f32.gmra.mrb[62].mxu0 %vm223_vm1, %v86_v58 }
  0x89   :  { %7693 = vmatprep.mubr.msk.f32.mxu0 %vm223_vm1, %v87_v59 }
  0x8c   :  { %7694 = vmatmul.mubr.msk.f32.gmra.mrb[64].mxu0 %vm223_vm1, %v88_v60 }
  0x8d   :  { %7696 = vmatprep.mubr.msk.f32.mxu0 %vm223_vm1, %v89_v61 }
  0x90   :  { %7697 = vmatmul.mubr.msk.f32.gmra.mrb[66].mxu0 %vm223_vm1, %v90_v62 }
  0x91   :  { %7699 = vmatprep.mubr.msk.f32.mxu0 %vm223_vm1, %v91_v63 }
  0x94   :  { %7700 = vmatmul.mubr.msk.f32.gmra.mrb[68].mxu0 %vm223_vm1, %v92_v0  ;;  %v136_v0 = vld [vmem:[%s11035_s0 + $0x388] sm:$0xff] }
  0x95   :  { %7702 = vmatprep.mubr.msk.f32.mxu0 %vm223_vm1, %v93_v1 }
  0x98   :  { %7703 = vmatmul.mubr.msk.f32.gmra.mrb[70].mxu0 %vm223_vm1, %v94_v2 }
  0x99   :  { %7705 = vmatprep.mubr.msk.f32.mxu0 %vm223_vm1, %v95_v3 }
  0x9c   :  { %7706 = vmatmul.mubr.msk.f32.gmra.mrb[72].mxu0 %vm223_vm1, %v96_v4  ;;  %v137_v4 = vld [vmem:[%s11035_s0 + $0x390] sm:$0xff] }
  0x9d   :  { %7708 = vmatprep.mubr.msk.f32.mxu0 %vm223_vm1, %v97_v5 }
  0xa0   :  { %7709 = vmatmul.mubr.msk.f32.gmra.mrb[74].mxu0 %vm223_vm1, %v98_v6 }
  0xa1   :  { %7711 = vmatprep.mubr.msk.f32.mxu0 %vm223_vm1, %v99_v7 }
  0xa4   :  { %7712 = vmatmul.mubr.msk.f32.gmra.mrb[76].mxu0 %vm223_vm1, %v100_v8 }
  0xa5   :  { %7714 = vmatprep.mubr.msk.f32.mxu0 %vm223_vm1, %v101_v9 }
  0xa8   :  { %7715 = vmatmul.mubr.msk.f32.gmra.mrb[78].mxu0 %vm223_vm1, %v102_v10 }
  0xa9   :  { %7717 = vmatprep.mubr.msk.f32.mxu0 %vm223_vm1, %v103_v11 }
  0xac   :  { %7718 = vmatmul.mubr.msk.f32.gmra.mrb[80].mxu0 %vm223_vm1, %v104_v12  ;;  %v138_v12 = vld [vmem:[%s11035_s0 + $0x398] sm:$0xff] }
  0xad   :  { %7720 = vmatprep.mubr.msk.f32.mxu0 %vm223_vm1, %v105_v13 }
  0xb0   :  { %7721 = vmatmul.mubr.msk.f32.gmra.mrb[82].mxu0 %vm223_vm1, %v106_v14 }
  0xb1   :  { %7723 = vmatprep.mubr.msk.f32.mxu0 %vm223_vm1, %v107_v15 }
  0xb4   :  { %7724 = vmatmul.mubr.msk.f32.gmra.mrb[84].mxu0 %vm223_vm1, %v108_v16  ;;  %v139_v16 = vld [vmem:[%s11035_s0 + $0x3a0] sm:$0xff] }
  0xb5   :  { %7726 = vmatprep.mubr.msk.f32.mxu0 %vm223_vm1, %v109_v17 }
  0xb8   :  { %7727 = vmatmul.mubr.msk.f32.gmra.mrb[86].mxu0 %vm223_vm1, %v110_v18 }
  0xb9   :  { %7729 = vmatprep.mubr.msk.f32.mxu0 %vm223_vm1, %v111_v19 }
  0xbc   :  { %7730 = vmatmul.mubr.msk.f32.gmra.mrb[88].mxu0 %vm223_vm1, %v112_v20 }
  0xbd   :  { %7732 = vmatprep.mubr.msk.f32.mxu0 %vm223_vm1, %v113_v21 }
  0xc0   :  { %7733 = vmatmul.mubr.msk.f32.gmra.mrb[90].mxu0 %vm223_vm1, %v114_v22 }
  0xc1   :  { %7735 = vmatprep.mubr.msk.f32.mxu0 %vm223_vm1, %v115_v23  ;;  %v9159_v23 = vld [vmem:[%s11037_s2] ss:$0 sm:$0xff] }
  0xc4   :  { %7736 = vmatmul.mubr.msk.f32.gmra.mrb[92].mxu0 %vm223_vm1, %v116_v24 }
  0xc5   :  { %7738 = vmatprep.mubr.msk.f32.mxu0 %vm223_vm1, %v117_v25 }
  0xc8   :  { %7739 = vmatmul.mubr.msk.f32.gmra.mrb[94].mxu0 %vm223_vm1, %v118_v26  ;;  %v140_v26 = vld [vmem:[%s11035_s0 + $0x3a8] sm:$0xff] }
  0xc9   :  { %7741 = vmatprep.mubr.msk.f32.mxu0 %vm223_vm1, %v119_v27 }
  0xcc   :  { %7742 = vmatmul.mubr.msk.f32.gmra.mrb[96].mxu0 %vm223_vm1, %v120_v28 }
  0xcd   :  { %7744 = vmatprep.mubr.msk.f32.mxu0 %vm223_vm1, %v121_v29 }
  0xd0   :  { %7745 = vmatmul.mubr.msk.f32.gmra.mrb[98].mxu0 %vm223_vm1, %v122_v30  ;;  %v141_v30 = vld [vmem:[%s11035_s0 + $0x3b0] sm:$0xff] }
  0xd1   :  { %7747 = vmatprep.mubr.msk.f32.mxu0 %vm223_vm1, %v123_v31 }
  0xd4   :  { %7748 = vmatmul.mubr.msk.f32.gmra.mrb[100].mxu0 %vm223_vm1, %v124_v32 }
  0xd5   :  { %7750 = vmatprep.mubr.msk.f32.mxu0 %vm223_vm1, %v125_v33 }
  0xd8   :  { %7751 = vmatmul.mubr.msk.f32.gmra.mrb[102].mxu0 %vm223_vm1, %v126_v34 }
  0xd9   :  { %7753 = vmatprep.mubr.msk.f32.mxu0 %vm223_vm1, %v127_v35 }
  0xdc   :  { %7754 = vmatmul.mubr.msk.f32.gmra.mrb[104].mxu0 %vm223_vm1, %v128_v36 }
  0xdd   :  { %7756 = vmatprep.mubr.msk.f32.mxu0 %vm223_vm1, %v129_v37 }
  0xdf   :  { %v7599_v40 = vpop.f32.mrb[0].mxu0 }
  0xe0   :  { %v1863_v41 = vsel %vm1861_vm5, %v7599_v40, -inf  ;;  %v882_v42 = vpop.f32.mrb[1].mxu0  ;;  %7757 = vmatmul.mubr.msk.f32.gmra.mrb[106].mxu0 %vm223_vm1, %v130_v38  ;;  %v3245_v38 = vld [vmem:[%s11038_s3 + $0x10] sm:$0xff] }
  0xe1   :  { %v1862_v43 = vsel %vm1861_vm5, %v882_v42, -inf  ;;  %7759 = vmatprep.mubr.msk.f32.mxu0 %vm223_vm1, %v131_v39  ;;  %v3246_v39 = vld [vmem:[%s11038_s3 + $0x18] sm:$0xff] }
  0xe2   :  { %v1864_v45 = vmax.f32 %v1862_v43, %v1863_v41  ;;  %v142_v43 = vld [vmem:[%s11035_s0 + $0x3b8] sm:$0xff] }
  0xe3   :  { %v7602_v47 = vpop.f32.mrb[2].mxu0 }
  0xe4   :  { %v1865_v48 = vrot.slane %v1864_v45, 4  ;;  %v1872_v49 = vsel %vm1861_vm5, %v7602_v47, -inf  ;;  %v892_v50 = vpop.f32.mrb[3].mxu0  ;;  %7760 = vmatmul.mubr.msk.f32.gmra.mrb[108].mxu0 %vm223_vm1, %v132_v44  ;;  %v143_v47 = vld [vmem:[%s11035_s0 + $0x3c0] sm:$0xff] }
  0xe5   :  { %v1871_v52 = vsel %vm1861_vm5, %v892_v50, -inf  ;;  %7762 = vmatprep.mubr.msk.f32.mxu0 %vm223_vm1, %v133_v46  ;;  %v8248_v50 = vpack.c.bf16 %v3246_v39, %v3245_v38  ;;  %v149_v39 = vld [vmem:[%s11035_s0 + $0x3f0] sm:$0xff] }
  0xe6   :  { %v1866_v55 = vmax.f32 %v1864_v45, %v1865_v48  ;;  %v1873_v56 = vmax.f32 %v1871_v52, %v1872_v49 }
  0xe7   :  { %v7605_v58 = vpop.f32.mrb[4].mxu0 }
  0xe8   :  { %v1867_v59 = vrot.slane %v1866_v55, 2  ;;  %v1874_v60 = vrot.slane %v1873_v56, 4  ;;  %v1881_v61 = vsel %vm1861_vm5, %v7605_v58, -inf  ;;  %v902_v62 = vpop.f32.mrb[5].mxu0  ;;  %7763 = vmatmul.mubr.msk.f32.gmra.mrb[110].mxu0 %vm223_vm1, %v134_v54 }
  0xe9   :  { %v1880_v63 = vsel %vm1861_vm5, %v902_v62, -inf  ;;  %7765 = vmatprep.mubr.msk.f32.mxu0 %vm223_vm1, %v135_v57  ;;  %v144_v62 = vld [vmem:[%s11035_s0 + $0x3c8] sm:$0xff] }
  0xea   :  { %v1868_v1 = vmax.f32 %v1866_v55, %v1867_v59  ;;  %v1875_v2 = vmax.f32 %v1873_v56, %v1874_v60  ;;  %v1882_v3 = vmax.f32 %v1880_v63, %v1881_v61 }
  0xeb   :  { %v7608_v5 = vpop.f32.mrb[6].mxu0 }
  0xec   :  { %v1869_v6 = vrot.slane %v1868_v1, 1  ;;  %v1876_v7 = vrot.slane %v1875_v2, 2  ;;  %v1883_v8 = vrot.slane %v1882_v3, 4  ;;  %v1890_v9 = vsel %vm1861_vm5, %v7608_v5, -inf  ;;  %v912_v10 = vpop.f32.mrb[7].mxu0  ;;  %7766 = vmatmul.mubr.msk.f32.gmra.mrb[112].mxu0 %vm223_vm1, %v136_v0 }
  0xed   :  { %v1889_v11 = vsel %vm1861_vm5, %v912_v10, -inf  ;;  %7768 = vmatprep.mubr.msk.f32.mxu0 %vm223_vm1, %v137_v4 }
  0xee   :  { %v1877_v13 = vmax.f32 %v1875_v2, %v1876_v7  ;;  %v1884_v14 = vmax.f32 %v1882_v3, %v1883_v8  ;;  %v1891_v15 = vmax.f32 %v1889_v11, %v1890_v9  ;;  %v1870_v18 = vmax.f32 %v1868_v1, %v1869_v6  ;;  %v145_v2 = vld [vmem:[%s11035_s0 + $0x3d0] sm:$0xff]  ;;  %v3247_v11 = vld [vmem:[%s11038_s3 + $0x20] sm:$0xff] }
  0xef   :  { %v7611_v17 = vpop.f32.mrb[8].mxu0 }
  0xf0   :  { %v1878_v19 = vrot.slane %v1877_v13, 1  ;;  %v1885_v20 = vrot.slane %v1884_v14, 2  ;;  %v1892_v21 = vrot.slane %v1891_v15, 4  ;;  %v922_v22 = vpop.f32.mrb[9].mxu0  ;;  %7769 = vmatmul.mubr.msk.f32.gmra.mrb[114].mxu0 %vm223_vm1, %v138_v12  ;;  %v1899_v24 = vsel %vm1861_vm5, %v7611_v17, -inf  ;;  %v3248_v12 = vld [vmem:[%s11038_s3 + $0x28] sm:$0xff] }
  0xf1   :  { %v1898_v25 = vsel %vm1861_vm5, %v922_v22, -inf  ;;  %7771 = vmatprep.mubr.msk.f32.mxu0 %vm223_vm1, %v139_v16  ;;  %v2751_v33 = vadd.f32 %v9159_v23, %v1870_v18  ;;  %v146_v16 = vld [vmem:[%s11035_s0 + $0x3d8] sm:$0xff] }
  0xf2   :  { %v1879_v27 = vmax.f32 %v1877_v13, %v1878_v19  ;;  %v1886_v28 = vmax.f32 %v1884_v14, %v1885_v20  ;;  %v1893_v29 = vmax.f32 %v1891_v15, %v1892_v21  ;;  %v1900_v31 = vmax.f32 %v1898_v25, %v1899_v24  ;;  %v147_v21 = vld [vmem:[%s11035_s0 + $0x3e0] sm:$0xff] }
  0xf3   :  { %v7614_v32 = vpop.f32.mrb[10].mxu0  ;;  %v2849_v52 = vmax.f32 %v2751_v33, 0.0  ;;  %v8251_v24 = vpack.c.bf16 %v3248_v12, %v3247_v11  ;;  %v153_v11 = vld [vmem:[%s11035_s0 + $0x410] sm:$0xff] }
  0xf4   :  { %v2752_v34 = vadd.f32 %v9159_v23, %v1879_v27  ;;  %v1894_v35 = vrot.slane %v1893_v29, 2  ;;  %v1908_v36 = vsel %vm1861_vm5, %v7614_v32, -inf  ;;  %v932_v37 = vpop.f32.mrb[11].mxu0  ;;  %7772 = vmatmul.mubr.msk.f32.gmra.mrb[116].mxu0 %vm223_vm1, %v140_v26  ;;  %v1887_v40 = vrot.slane %v1886_v28, 1 }
  0xf5   :  { %v1901_v41 = vrot.slane %v1900_v31, 4  ;;  %v1907_v42 = vsel %vm1861_vm5, %v932_v37, -inf  ;;  %7774 = vmatprep.mubr.msk.f32.mxu0 %vm223_vm1, %v141_v30 }
  0xf6   :  { %v2850_v44 = vmax.f32 %v2752_v34, 0.0  ;;  %v1895_v45 = vmax.f32 %v1893_v29, %v1894_v35  ;;  %v1909_v46 = vmax.f32 %v1907_v42, %v1908_v36  ;;  %v1888_v58 = vmax.f32 %v1886_v28, %v1887_v40  ;;  %v148_v34 = vld [vmem:[%s11035_s0 + $0x3e8] sm:$0xff] }
  0xf7   :  { %v1902_v48 = vmax.f32 %v1900_v31, %v1901_v41  ;;  %v7617_v49 = vpop.f32.mrb[12].mxu0 }
  0xf8   :  { %v3045_v54 = vrot.slane %v2850_v44, 7  ;;  %v1896_v55 = vrot.slane %v1895_v45, 1  ;;  %v1910_v56 = vrot.slane %v1909_v46, 4  ;;  %v942_v57 = vpop.f32.mrb[13].mxu0  ;;  %7775 = vmatmul.mubr.msk.f32.gmra.mrb[118].mxu0 %vm223_vm1, %v142_v43  ;;  %v1917_v60 = vsel %vm1861_vm5, %v7617_v49, -inf }
  0xf9   :  { %v1903_v59 = vrot.slane %v1902_v48, 2  ;;  %v1916_v61 = vsel %vm1861_vm5, %v942_v57, -inf  ;;  %7777 = vmatprep.mubr.msk.f32.mxu0 %vm223_vm1, %v143_v47  ;;  %v2753_v13 = vadd.f32 %v9159_v23, %v1888_v58  ;;  %v3249_v47 = vld [vmem:[%s11038_s3 + $0x30] sm:$0xff]  ;;  %v151_v58 = vld [vmem:[%s11035_s0 + $0x400] sm:$0xff] }
  0xfa   :  { %v1897_v63 = vmax.f32 %v1895_v45, %v1896_v55  ;;  %v1911_v0 = vmax.f32 %v1909_v46, %v1910_v56  ;;  %v1918_v1 = vmax.f32 %v1916_v61, %v1917_v60  ;;  %v3047_v5 = vsel %vm3046_vm6, %v3045_v54, %v2849_v52  ;;  %v150_v54 = vld [vmem:[%s11035_s0 + $0x3f8] sm:$0xff] }
  0xfb   :  { %v1904_v3 = vmax.f32 %v1902_v48, %v1903_v59  ;;  %v7620_v4 = vpop.f32.mrb[14].mxu0  ;;  %3194 = vst.msk [vmem:[%s11041_s6] sm:$0x3] %vm3193_vm7, %v3047_v5  ;;  %7896 = vmatmul.mubr.msk.f32.vlgmr.msra.gmra.mrb[48].mxu1 %vm1861_vm5, %v3047_v5  ;;  %v2851_v30 = vmax.f32 %v2753_v13, 0.0  ;;  %v3250_v48 = vld [vmem:[%s11038_s3 + $0x38] sm:$0xff] }
  0xfc   :  { %v2754_v6 = vadd.f32 %v9159_v23, %v1897_v63  ;;  %v1912_v7 = vrot.slane %v1911_v0, 2  ;;  %v1919_v8 = vrot.slane %v1918_v1, 4  ;;  %v1926_v9 = vsel %vm1861_vm5, %v7620_v4, -inf  ;;  %v952_v10 = vpop.f32.mrb[15].mxu0  ;;  %7778 = vmatmul.mubr.msk.f32.gmra.mrb[120].mxu0 %vm223_vm1, %v144_v62  ;;  %8249 = vmatpush3.bf16.msra.mxu1 %v8248_v50 }
  0xfd   :  { %v1905_v14 = vrot.slane %v1904_v3, 1  ;;  %v1925_v15 = vsel %vm1861_vm5, %v952_v10, -inf  ;;  %7780 = vmatprep.mubr.msk.f32.mxu0 %vm223_vm1, %v145_v2  ;;  %7902 = vmatprep.mubr.msk.f32.mxu1 %vm8429_vm4, %v11042_v53  ;;  %v8254_v61 = vpack.c.bf16 %v3250_v48, %v3249_v47  ;;  %v157_v47 = vld [vmem:[%s11035_s0 + $0x430] sm:$0xff] }
  0xfe   :  { %v2852_v17 = vmax.f32 %v2754_v6, 0.0  ;;  %v1913_v18 = vmax.f32 %v1911_v0, %v1912_v7  ;;  %v1920_v19 = vmax.f32 %v1918_v1, %v1919_v8  ;;  %v1927_v20 = vmax.f32 %v1925_v15, %v1926_v9  ;;  %8250 = vmatprep.subr.bf16.mxu1 %v11044_v51  ;;  %v152_v7 = vld [vmem:[%s11035_s0 + $0x408] sm:$0xff] }
  0xff   :  { %v7623_v22 = vpop.f32.mrb[16].mxu0  ;;  %v1906_v31 = vmax.f32 %v1904_v3, %v1905_v14 }
 0x100   :  { %v1914_v25 = vrot.slane %v1913_v18, 1  ;;  %v1921_v26 = vrot.slane %v1920_v19, 2  ;;  %v1928_v27 = vrot.slane %v1927_v20, 4  ;;  %v1935_v28 = vsel %vm1861_vm5, %v7623_v22, -inf  ;;  %v962_v29 = vpop.f32.mrb[17].mxu0  ;;  %7781 = vmatmul.mubr.msk.f32.gmra.mrb[122].mxu0 %vm223_vm1, %v146_v16 }
 0x101   :  { %v1934_v32 = vsel %vm1861_vm5, %v962_v29, -inf  ;;  %7783 = vmatprep.mubr.msk.f32.mxu0 %vm223_vm1, %v147_v21  ;;  %v3048_v33 = vrot.slane %v2852_v17, 7  ;;  %v2755_v49 = vadd.f32 %v9159_v23, %v1906_v31  ;;  %v3252_v21 = vld [vmem:[%s11038_s3 + $0x48] sm:$0xff] }
 0x102   :  { %v1915_v35 = vmax.f32 %v1913_v18, %v1914_v25  ;;  %v1922_v36 = vmax.f32 %v1920_v19, %v1921_v26  ;;  %v1929_v37 = vmax.f32 %v1927_v20, %v1928_v27  ;;  %v1936_v38 = vmax.f32 %v1934_v32, %v1935_v28  ;;  %v3251_v20 = vld [vmem:[%s11038_s3 + $0x40] sm:$0xff]  ;;  %v154_v26 = vld [vmem:[%s11035_s0 + $0x418] sm:$0xff] }
 0x103   :  { %v7626_v40 = vpop.f32.mrb[18].mxu0  ;;  %v3049_v41 = vsel %vm3046_vm6, %v3048_v33, %v2851_v30  ;;  %v2853_v3 = vmax.f32 %v2755_v49, 0.0  ;;  %v155_v30 = vld [vmem:[%s11035_s0 + $0x420] sm:$0xff]  ;;  %v8257_v33 = vpack.c.bf16 %v3252_v21, %v3251_v20  ;;  %v161_v20 = vld [vmem:[%s11035_s0 + $0x450] sm:$0xff] }
 0x104   :  { %v2756_v42 = vadd.f32 %v9159_v23, %v1915_v35  ;;  %v1923_v43 = vrot.slane %v1922_v36, 1  ;;  %v1930_v44 = vrot.slane %v1929_v37, 2  ;;  %v1937_v45 = vrot.slane %v1936_v38, 4  ;;  %3195 = vst.msk [vmem:[%s11041_s6 + $0x2] sm:$0x3] %vm3193_vm7, %v3049_v41  ;;  %7903 = vmatmul.mubr.msk.f32.vlgmr.msra.gmra.mrb[50].mxu1 %vm1861_vm5, %v3049_v41  ;;  %v972_v46 = vpop.f32.mrb[19].mxu0  ;;  %7784 = vmatmul.mubr.msk.f32.gmra.mrb[124].mxu0 %vm223_vm1, %v148_v34 }
 0x105   :  { %v1944_v50 = vsel %vm1861_vm5, %v7626_v40, -inf  ;;  %v1943_v52 = vsel %vm1861_vm5, %v972_v46, -inf  ;;  %7786 = vmatprep.mubr.msk.f32.mxu0 %vm223_vm1, %v149_v39  ;;  %8252 = vmatpush3.bf16.msra.mxu1 %v8251_v24 }
 0x106   :  { %v2854_v55 = vmax.f32 %v2756_v42, 0.0  ;;  %v1931_v56 = vmax.f32 %v1929_v37, %v1930_v44  ;;  %v1938_v57 = vmax.f32 %v1936_v38, %v1937_v45  ;;  %7909 = vmatprep.mubr.msk.f32.mxu1 %vm8429_vm4, %v11042_v53  ;;  %8253 = vmatprep.subr.bf16.mxu1 %v11044_v51  ;;  %v1945_v59 = vmax.f32 %v1943_v52, %v1944_v50  ;;  %v3253_v52 = vld [vmem:[%s11038_s3 + $0x50] sm:$0xff] }
 0x107   :  { %v7629_v60 = vpop.f32.mrb[20].mxu0  ;;  %v1924_v62 = vmax.f32 %v1922_v36, %v1923_v43  ;;  %v156_v43 = vld [vmem:[%s11035_s0 + $0x428] sm:$0xff] }
 0x108   :  { %v1932_v63 = vrot.slane %v1931_v56, 1  ;;  %v1939_v0 = vrot.slane %v1938_v57, 2  ;;  %v1953_v1 = vsel %vm1861_vm5, %v7629_v60, -inf  ;;  %v982_v2 = vpop.f32.mrb[21].mxu0  ;;  %7787 = vmatmul.mubr.msk.f32.gmra.mrb[126].mxu0 %vm223_vm1, %v150_v54  ;;  %v1946_v4 = vrot.slane %v1945_v59, 4 }
 0x109   :  { %v1952_v5 = vsel %vm1861_vm5, %v982_v2, -inf  ;;  %7789 = vmatprep.mubr.msk.f32.mxu0 %vm223_vm1, %v151_v58  ;;  %v3050_v6 = vrot.slane %v2854_v55, 7  ;;  %v2757_v15 = vadd.f32 %v9159_v23, %v1924_v62 }
 0x10a   :  { %v1933_v8 = vmax.f32 %v1931_v56, %v1932_v63  ;;  %v1940_v9 = vmax.f32 %v1938_v57, %v1939_v0  ;;  %v1954_v10 = vmax.f32 %v1952_v5, %v1953_v1  ;;  %v1947_v12 = vmax.f32 %v1945_v59, %v1946_v4  ;;  %v3254_v59 = vld [vmem:[%s11038_s3 + $0x58] sm:$0xff] }
 0x10b   :  { %v7632_v13 = vpop.f32.mrb[22].mxu0  ;;  %v3051_v14 = vsel %vm3046_vm6, %v3050_v6, %v2853_v3  ;;  %v2855_v34 = vmax.f32 %v2757_v15, 0.0  ;;  %v158_v63 = vld [vmem:[%s11035_s0 + $0x438] sm:$0xff]  ;;  %v159_v3 = vld [vmem:[%s11035_s0 + $0x440] sm:$0xff]  ;;  %v8260_v6 = vpack.c.bf16 %v3254_v59, %v3253_v52 }
 0x10c   :  { %v2758_v16 = vadd.f32 %v9159_v23, %v1933_v8  ;;  %v1955_v17 = vrot.slane %v1954_v10, 4  ;;  %v1962_v18 = vsel %vm1861_vm5, %v7632_v13, -inf  ;;  %3196 = vst.msk [vmem:[%s11041_s6 + $0x4] sm:$0x3] %vm3193_vm7, %v3051_v14  ;;  %7910 = vmatmul.mubr.msk.f32.vlgmr.msra.gmra.mrb[52].mxu1 %vm1861_vm5, %v3051_v14  ;;  %v992_v19 = vpop.f32.mrb[23].mxu0  ;;  %7790 = vmatmul.mubr.msk.f32.gmra.mrb[128].mxu0 %vm223_vm1, %v152_v7  ;;  %v1941_v22 = vrot.slane %v1940_v9, 1 }
 0x10d   :  { %v1948_v24 = vrot.slane %v1947_v12, 2  ;;  %v1961_v25 = vsel %vm1861_vm5, %v992_v19, -inf  ;;  %7792 = vmatprep.mubr.msk.f32.mxu0 %vm223_vm1, %v153_v11  ;;  %8255 = vmatpush3.bf16.msra.mxu1 %v8254_v61 }
 0x10e   :  { %v2856_v27 = vmax.f32 %v2758_v16, 0.0  ;;  %v1956_v28 = vmax.f32 %v1954_v10, %v1955_v17  ;;  %v1963_v29 = vmax.f32 %v1961_v25, %v1962_v18  ;;  %7916 = vmatprep.mubr.msk.f32.mxu1 %vm8429_vm4, %v11042_v53  ;;  %8256 = vmatprep.subr.bf16.mxu1 %v11044_v51  ;;  %v1942_v39 = vmax.f32 %v1940_v9, %v1941_v22  ;;  %v160_v16 = vld [vmem:[%s11035_s0 + $0x448] sm:$0xff] }
 0x10f   :  { %v1949_v31 = vmax.f32 %v1947_v12, %v1948_v24  ;;  %v7635_v32 = vpop.f32.mrb[24].mxu0 }
 0x110   :  { %v1957_v35 = vrot.slane %v1956_v28, 2  ;;  %v1964_v36 = vrot.slane %v1963_v29, 4  ;;  %v1971_v37 = vsel %vm1861_vm5, %v7635_v32, -inf  ;;  %v1002_v38 = vpop.f32.mrb[25].mxu0  ;;  %7793 = vmatmul.mubr.msk.f32.gmra.mrb[130].mxu0 %vm223_vm1, %v154_v26  ;;  %v3052_v42 = vrot.slane %v2856_v27, 7 }
 0x111   :  { %v1950_v40 = vrot.slane %v1949_v31, 1  ;;  %v1970_v41 = vsel %vm1861_vm5, %v1002_v38, -inf  ;;  %7795 = vmatprep.mubr.msk.f32.mxu0 %vm223_vm1, %v155_v30  ;;  %v2759_v60 = vadd.f32 %v9159_v23, %v1942_v39  ;;  %v3255_v30 = vld [vmem:[%s11038_s3 + $0x60] sm:$0xff] }
 0x112   :  { %v1958_v44 = vmax.f32 %v1956_v28, %v1957_v35  ;;  %v1965_v45 = vmax.f32 %v1963_v29, %v1964_v36  ;;  %v1972_v46 = vmax.f32 %v1970_v41, %v1971_v37  ;;  %v3053_v50 = vsel %vm3046_vm6, %v3052_v42, %v2855_v34  ;;  %v162_v35 = vld [vmem:[%s11035_s0 + $0x458] sm:$0xff]  ;;  %v163_v39 = vld [vmem:[%s11035_s0 + $0x460] sm:$0xff] }
 0x113   :  { %v1951_v48 = vmax.f32 %v1949_v31, %v1950_v40  ;;  %v7638_v49 = vpop.f32.mrb[26].mxu0  ;;  %3197 = vst.msk [vmem:[%s11041_s6 + $0x6] sm:$0x3] %vm3193_vm7, %v3053_v50  ;;  %7917 = vmatmul.mubr.msk.f32.vlgmr.msra.gmra.mrb[54].mxu1 %vm1861_vm5, %v3053_v50  ;;  %v2857_v12 = vmax.f32 %v2759_v60, 0.0  ;;  %v3256_v31 = vld [vmem:[%s11038_s3 + $0x68] sm:$0xff] }
 0x114   :  { %v1959_v54 = vrot.slane %v1958_v44, 1  ;;  %v1966_v55 = vrot.slane %v1965_v45, 2  ;;  %v1973_v56 = vrot.slane %v1972_v46, 4  ;;  %v1980_v57 = vsel %vm1861_vm5, %v7638_v49, -inf  ;;  %v1012_v58 = vpop.f32.mrb[27].mxu0  ;;  %7796 = vmatmul.mubr.msk.f32.gmra.mrb[132].mxu0 %vm223_vm1, %v156_v43  ;;  %8258 = vmatpush3.bf16.msra.mxu1 %v8257_v33  ;;  %v9373_v43 = vpop.f32.mrb[0].mxu1 }
 0x115   :  { %v2760_v61 = vadd.f32 %v9159_v23, %v1951_v48  ;;  %v1979_v62 = vsel %vm1861_vm5, %v1012_v58, -inf  ;;  %7798 = vmatprep.mubr.msk.f32.mxu0 %vm223_vm1, %v157_v47  ;;  %7923 = vmatprep.mubr.msk.f32.mxu1 %vm8429_vm4, %v11042_v53  ;;  %v8263_v42 = vpack.c.bf16 %v3256_v31, %v3255_v30  ;;  %v9377_v49 = vpop.f32.mrb[1].mxu1 }
 0x116   :  { %v1967_v0 = vmax.f32 %v1965_v45, %v1966_v55  ;;  %v1974_v1 = vmax.f32 %v1972_v46, %v1973_v56  ;;  %v1981_v2 = vmax.f32 %v1979_v62, %v1980_v57  ;;  %8259 = vmatprep.subr.bf16.mxu1 %v11044_v51  ;;  %v1960_v7 = vmax.f32 %v1958_v44, %v1959_v54  ;;  %v164_v56 = vld [vmem:[%s11035_s0 + $0x468] sm:$0xff]  ;;  %v9384_v57 = vpop.f32.mrb[2].mxu1  ;;  %v9392_v62 = vld [vmem:[%s11038_s3 + $0x70] sm:$0xff] }
 0x117   :  { %v2858_v4 = vmax.f32 %v2760_v61, 0.0  ;;  %v7641_v5 = vpop.f32.mrb[28].mxu0  ;;  %v165_v61 = vld [vmem:[%s11035_s0 + $0x470] sm:$0xff] }
 0x118   :  { %v1968_v8 = vrot.slane %v1967_v0, 1  ;;  %v1975_v9 = vrot.slane %v1974_v1, 2  ;;  %v1982_v10 = vrot.slane %v1981_v2, 4  ;;  %v1022_v11 = vpop.f32.mrb[29].mxu0  ;;  %7799 = vmatmul.mubr.msk.f32.gmra.mrb[134].mxu0 %vm223_vm1, %v158_v63  ;;  %v1989_v13 = vsel %vm1861_vm5, %v7641_v5, -inf  ;;  %v9397_v63 = vld [vmem:[%s11038_s3 + $0x78] sm:$0xff] }
 0x119   :  { %v1988_v14 = vsel %vm1861_vm5, %v1022_v11, -inf  ;;  %7801 = vmatprep.mubr.msk.f32.mxu0 %vm223_vm1, %v159_v3  ;;  %v3054_v15 = vrot.slane %v2858_v4, 7  ;;  %v2761_v25 = vadd.f32 %v9159_v23, %v1960_v7  ;;  %v9405_v4 = vld [vmem:[%s11038_s3 + $0x80] sm:$0xff]  ;;  %v9410_v5 = vld [vmem:[%s11038_s3 + $0x88] sm:$0xff] }
 0x11a   :  { %v1969_v17 = vmax.f32 %v1967_v0, %v1968_v8  ;;  %v1976_v18 = vmax.f32 %v1974_v1, %v1975_v9  ;;  %v1983_v19 = vmax.f32 %v1981_v2, %v1982_v10  ;;  %v1990_v21 = vmax.f32 %v1988_v14, %v1989_v13  ;;  %v9399_v0 = vpop.f32.mrb[3].mxu1  ;;  %v9430_v13 = vld [vmem:[%s11038_s3 + $0x98] sm:$0xff] }
 0x11b   :  { %v7644_v22 = vpop.f32.mrb[30].mxu0  ;;  %v3055_v24 = vsel %vm3046_vm6, %v3054_v15, %v2857_v12  ;;  %v2859_v44 = vmax.f32 %v2761_v25, 0.0  ;;  %v9417_v7 = vpop.f32.mrb[4].mxu1 }
 0x11c   :  { %v2762_v26 = vadd.f32 %v9159_v23, %v1969_v17  ;;  %v1984_v27 = vrot.slane %v1983_v19, 2  ;;  %v1998_v28 = vsel %vm1861_vm5, %v7644_v22, -inf  ;;  %3198 = vst.msk [vmem:[%s11041_s6 + $0x8] sm:$0x3] %vm3193_vm7, %v3055_v24  ;;  %7924 = vmatmul.mubr.msk.f32.vlgmr.msra.gmra.mrb[56].mxu1 %vm1861_vm5, %v3055_v24  ;;  %v1032_v29 = vpop.f32.mrb[31].mxu0  ;;  %7802 = vmatmul.mubr.msk.f32.gmra.mrb[136].mxu0 %vm223_vm1, %v160_v16  ;;  %v1977_v32 = vrot.slane %v1976_v18, 1 }
 0x11d   :  { %v1991_v33 = vrot.slane %v1990_v21, 4  ;;  %v1997_v34 = vsel %vm1861_vm5, %v1032_v29, -inf  ;;  %7804 = vmatprep.mubr.msk.f32.mxu0 %vm223_vm1, %v161_v20  ;;  %8261 = vmatpush3.bf16.msra.mxu1 %v8260_v6  ;;  %v9415_v6 = vld [vmem:[%s11038_s3 + $0x90] sm:$0xff]  ;;  %v9432_v14 = vpop.f32.mrb[5].mxu1 }
 0x11e   :  { %v2860_v36 = vmax.f32 %v2762_v26, 0.0  ;;  %v1985_v37 = vmax.f32 %v1983_v19, %v1984_v27  ;;  %v1999_v38 = vmax.f32 %v1997_v34, %v1998_v28  ;;  %7930 = vmatprep.mubr.msk.f32.mxu1 %vm8429_vm4, %v11042_v53  ;;  %8262 = vmatprep.subr.bf16.mxu1 %v11044_v51  ;;  %v1978_v50 = vmax.f32 %v1976_v18, %v1977_v32  ;;  %v166_v18 = vld [vmem:[%s11035_s0 + $0x478] sm:$0xff]  ;;  %v167_v19 = vld [vmem:[%s11035_s0 + $0x480] sm:$0xff]  ;;  %v9443_v20 = vpop.f32.mrb[6].mxu1  ;;  %v9456_v27 = vld [vmem:[%s11038_s3 + $0xa8] sm:$0xff] }
 0x11f   :  { %v1992_v40 = vmax.f32 %v1990_v21, %v1991_v33  ;;  %v7647_v41 = vpop.f32.mrb[32].mxu0  ;;  %v9451_v26 = vld [vmem:[%s11038_s3 + $0xa0] sm:$0xff]  ;;  %v9461_v28 = vld [vmem:[%s11038_s3 + $0xb0] sm:$0xff]  ;;  %v9463_v29 = vpop.f32.mrb[7].mxu1  ;;  %v168_v32 = vld [vmem:[%s11035_s0 + $0x488] sm:$0xff]  ;;  %v8266_v33 = vpack.c.bf16 %v9397_v63, %v9392_v62  ;;  %v8269_v34 = vpack.c.bf16 %v9410_v5, %v9405_v4 }
 0x120   :  { %v1986_v45 = vrot.slane %v1985_v37, 1  ;;  %v2000_v46 = vrot.slane %v1999_v38, 4  ;;  %v2007_v47 = vsel %vm1861_vm5, %v7647_v41, -inf  ;;  %v1042_v48 = vpop.f32.mrb[33].mxu0  ;;  %7805 = vmatmul.mubr.msk.f32.gmra.mrb[138].mxu0 %vm223_vm1, %v162_v35  ;;  %v3056_v55 = vrot.slane %v2860_v36, 7  ;;  %v9477_v36 = vld [vmem:[%s11038_s3 + $0xb8] sm:$0xff] }
 0x121   :  { %v1993_v52 = vrot.slane %v1992_v40, 2  ;;  %v2006_v54 = vsel %vm1861_vm5, %v1042_v48, -inf  ;;  %7807 = vmatprep.mubr.msk.f32.mxu0 %vm223_vm1, %v163_v39  ;;  %v2763_v15 = vadd.f32 %v9159_v23, %v1978_v50  ;;  %v9489_v39 = vpop.f32.mrb[8].mxu1  ;;  %v9512_v62 = vld [vmem:[%s11038_s3 + $0xd8] sm:$0xff]  ;;  %v9517_v63 = vld [vmem:[%s11038_s3 + $0xe0] sm:$0xff]  ;;  %v9652_v4 = vld [vmem:[%s11038_s3 + $0x130] sm:$0xff] }
 0x122   :  { %v1987_v58 = vmax.f32 %v1985_v37, %v1986_v45  ;;  %v2001_v59 = vmax.f32 %v1999_v38, %v2000_v46  ;;  %v2008_v60 = vmax.f32 %v2006_v54, %v2007_v47  ;;  %v3057_v3 = vsel %vm3046_vm6, %v3056_v55, %v2859_v44  ;;  %v9482_v37 = vld [vmem:[%s11038_s3 + $0xc0] sm:$0xff]  ;;  %v9487_v38 = vld [vmem:[%s11038_s3 + $0xc8] sm:$0xff]  ;;  %v9493_v46 = vpop.f32.mrb[9].mxu1  ;;  %v9505_v55 = vld [vmem:[%s11038_s3 + $0xd0] sm:$0xff]  ;;  %11063 = vst [vmem:[#allocation11_spill] sm:$0xff] %v9652_v4 }
 0x123   :  { %v1994_v1 = vmax.f32 %v1992_v40, %v1993_v52  ;;  %v7650_v2 = vpop.f32.mrb[34].mxu0  ;;  %3199 = vst.msk [vmem:[%s11041_s6 + $0xa] sm:$0x3] %vm3193_vm7, %v3057_v3  ;;  %7931 = vmatmul.mubr.msk.f32.vlgmr.msra.gmra.mrb[58].mxu1 %vm1861_vm5, %v3057_v3  ;;  %v2861_v47 = vmax.f32 %v2763_v15, 0.0  ;;  %v169_v52 = vld [vmem:[%s11035_s0 + $0x490] sm:$0xff]  ;;  %v9540_v15 = vld [vmem:[%s11038_s3 + $0xf8] sm:$0xff] }
 0x124   :  { %v2764_v8 = vadd.f32 %v9159_v23, %v1987_v58  ;;  %v2002_v9 = vrot.slane %v2001_v59, 2  ;;  %v2009_v10 = vrot.slane %v2008_v60, 4  ;;  %v2016_v11 = vsel %vm1861_vm5, %v7650_v2, -inf  ;;  %v1052_v12 = vpop.f32.mrb[35].mxu0  ;;  %7808 = vmatmul.mubr.msk.f32.gmra.mrb[140].mxu0 %vm223_vm1, %v164_v56  ;;  %8264 = vmatpush3.bf16.msra.mxu1 %v8263_v42  ;;  %v9507_v56 = vpop.f32.mrb[10].mxu1 }
 0x125   :  { %v1995_v16 = vrot.slane %v1994_v1, 1  ;;  %v2015_v17 = vsel %vm1861_vm5, %v1052_v12, -inf  ;;  %7810 = vmatprep.mubr.msk.f32.mxu0 %vm223_vm1, %v165_v61  ;;  %7937 = vmatprep.mubr.msk.f32.mxu1 %vm8429_vm4, %v11042_v53  ;;  %v9524_v2 = vpop.f32.mrb[11].mxu1  ;;  %v9535_v12 = vld [vmem:[%s11038_s3 + $0xf0] sm:$0xff] }
 0x126   :  { %v2862_v21 = vmax.f32 %v2764_v8, 0.0  ;;  %v2003_v22 = vmax.f32 %v2001_v59, %v2002_v9  ;;  %v2010_v24 = vmax.f32 %v2008_v60, %v2009_v10  ;;  %v2017_v25 = vmax.f32 %v2015_v17, %v2016_v11  ;;  %8265 = vmatprep.subr.bf16.mxu1 %v11044_v51 }
 0x127   :  { %v1996_v30 = vmax.f32 %v1994_v1, %v1995_v16  ;;  %v7653_v31 = vpop.f32.mrb[36].mxu0  ;;  %v9522_v1 = vld [vmem:[%s11038_s3 + $0xe8] sm:$0xff]  ;;  %v9542_v16 = vpop.f32.mrb[12].mxu1 }
 0x128   :  { %v2004_v40 = vrot.slane %v2003_v22, 1  ;;  %v2011_v41 = vrot.slane %v2010_v24, 2  ;;  %v2018_v42 = vrot.slane %v2017_v25, 4  ;;  %v2025_v44 = vsel %vm1861_vm5, %v7653_v31, -inf  ;;  %v1062_v45 = vpop.f32.mrb[37].mxu0  ;;  %7811 = vmatmul.mubr.msk.f32.gmra.mrb[142].mxu0 %vm223_vm1, %v166_v18  ;;  %v170_v31 = vld [vmem:[%s11035_s0 + $0x498] sm:$0xff] }
 0x129   :  { %v2024_v48 = vsel %vm1861_vm5, %v1062_v45, -inf  ;;  %7813 = vmatprep.mubr.msk.f32.mxu0 %vm223_vm1, %v167_v19  ;;  %v3058_v50 = vrot.slane %v2862_v21, 7  ;;  %v2765_v3 = vadd.f32 %v9159_v23, %v1996_v30 }
 0x12a   :  { %v2005_v58 = vmax.f32 %v2003_v22, %v2004_v40  ;;  %v2012_v59 = vmax.f32 %v2010_v24, %v2011_v41  ;;  %v2019_v60 = vmax.f32 %v2017_v25, %v2018_v42  ;;  %v2026_v61 = vmax.f32 %v2024_v48, %v2025_v44  ;;  %v9551_v24 = vpop.f32.mrb[13].mxu1 }
 0x12b   :  { %v7656_v8 = vpop.f32.mrb[38].mxu0  ;;  %v3059_v9 = vsel %vm3046_vm6, %v3058_v50, %v2861_v47 }
 0x12c   :  { %v2766_v17 = vadd.f32 %v9159_v23, %v2005_v58  ;;  %v2013_v18 = vrot.slane %v2012_v59, 1  ;;  %v2020_v19 = vrot.slane %v2019_v60, 2  ;;  %v2027_v21 = vrot.slane %v2026_v61, 4  ;;  %3200 = vst.msk [vmem:[%s11041_s6 + $0xc] sm:$0x3] %vm3193_vm7, %v3059_v9  ;;  %7938 = vmatmul.mubr.msk.f32.vlgmr.msra.gmra.mrb[60].mxu1 %vm1861_vm5, %v3059_v9  ;;  %v1072_v22 = vpop.f32.mrb[39].mxu0  ;;  %7814 = vmatmul.mubr.msk.f32.gmra.mrb[144].mxu0 %vm223_vm1, %v168_v32 }
 0x12d   :  { %v2034_v25 = vsel %vm1861_vm5, %v7656_v8, -inf  ;;  %v2033_v30 = vsel %vm1861_vm5, %v1072_v22, -inf  ;;  %7816 = vmatprep.mubr.msk.f32.mxu0 %vm223_vm1, %v169_v52  ;;  %8267 = vmatpush3.bf16.msra.mxu1 %v8266_v33  ;;  %v9563_v32 = vpop.f32.mrb[14].mxu1  ;;  %v9575_v58 = vld [vmem:[%s11038_s3 + $0x100] sm:$0xff]  ;;  %v2528_v8 = vsel %vm1861_vm5, %v9377_v49, -inf }
 0x12e   :  { %v2864_v42 = vmax.f32 %v2766_v17, 0.0  ;;  %v2021_v44 = vmax.f32 %v2019_v60, %v2020_v19  ;;  %v2028_v45 = vmax.f32 %v2026_v61, %v2027_v21  ;;  %7944 = vmatprep.mubr.msk.f32.mxu1 %vm8429_vm4, %v11042_v53  ;;  %8268 = vmatprep.subr.bf16.mxu1 %v11044_v51  ;;  %v9570_v33 = vpop.f32.mrb[15].mxu1  ;;  %v2014_v48 = vmax.f32 %v2012_v59, %v2013_v18  ;;  %v9580_v60 = vld [vmem:[%s11038_s3 + $0x108] sm:$0xff] }
 0x12f   :  { %v2035_v50 = vmax.f32 %v2033_v30, %v2034_v25  ;;  %v7659_v52 = vpop.f32.mrb[40].mxu0  ;;  %v2529_v61 = vsel %vm1861_vm5, %v9373_v43, -inf  ;;  %v9586_v9 = vpop.f32.mrb[16].mxu1  ;;  %v2863_v59 = vmax.f32 %v2765_v3, 0.0 }
 0x130   :  { %v2022_v17 = vrot.slane %v2021_v44, 1  ;;  %v2029_v18 = vrot.slane %v2028_v45, 2  ;;  %v2043_v19 = vsel %vm1861_vm5, %v7659_v52, -inf  ;;  %v1082_v21 = vpop.f32.mrb[41].mxu0  ;;  %7817 = vmatmul.mubr.msk.f32.gmra.mrb[146].mxu0 %vm223_vm1, %v170_v31  ;;  %v9590_v22 = vpop.f32.mrb[17].mxu1  ;;  %v3060_v47 = vrot.slane %v2864_v42, 7 }
 0x131   :  { %v2036_v25 = vrot.slane %v2035_v50, 4  ;;  %v2042_v30 = vsel %vm1861_vm5, %v1082_v21, -inf  ;;  %v2530_v43 = vmax.f32 %v2528_v8, %v2529_v61  ;;  %v9593_v41 = vpop.f32.mrb[18].mxu1  ;;  %v9600_v52 = vadd.f32 %v9159_v23, %v2014_v48  ;;  %v9606_v42 = vld [vmem:[%s11038_s3 + $0x110] sm:$0xff] }
 0x132   :  { %11057 = vst [vmem:[#allocation5_spill] sm:$0xff] %v9593_v41  ;;  %v2023_v49 = vmax.f32 %v2021_v44, %v2022_v17  ;;  %v2030_v40 = vmax.f32 %v2028_v45, %v2029_v18  ;;  %v2044_v11 = vmax.f32 %v2042_v30, %v2043_v19  ;;  %v9597_v10 = vpop.f32.mrb[19].mxu1  ;;  %v3061_v35 = vsel %vm3046_vm6, %v3060_v47, %v2863_v59  ;;  %v9611_v44 = vld [vmem:[%s11038_s3 + $0x118] sm:$0xff]  ;;  %v9616_v45 = vld [vmem:[%s11038_s3 + $0x120] sm:$0xff]  ;;  %v9630_v17 = vld [vmem:[%s11038_s3 + $0x128] sm:$0xff] }
 0x133   :  { %11058 = vst [vmem:[#allocation6_spill] sm:$0xff] %v9597_v10  ;;  %v2037_v31 = vmax.f32 %v2035_v50, %v2036_v25  ;;  %v7662_v54 = vpop.f32.mrb[42].mxu0  ;;  %11059 = vst [vmem:[#allocation7_spill] sm:$0xff] %v9616_v45  ;;  %v2531_v48 = vrot.slane %v2530_v43, 4  ;;  %v9618_v50 = vpop.f32.mrb[20].mxu1  ;;  %7945 = vmatmul.mubr.msk.f32.vlgmr.msra.gmra.mrb[62].mxu1 %vm1861_vm5, %v3061_v35  ;;  %v2538_v18 = vsel %vm1861_vm5, %v9384_v57, -inf }
 0x134   :  { %11060 = vst [vmem:[#allocation8_spill] sm:$0xff] %v9618_v50  ;;  %v2768_v47 = vadd.f32 %v9159_v23, %v2023_v49  ;;  %v2045_v61 = vrot.slane %v2044_v11, 4  ;;  %v2052_v8 = vsel %vm1861_vm5, %v7662_v54, -inf  ;;  %3201 = vst.msk [vmem:[%s11041_s6 + $0xe] sm:$0x3] %vm3193_vm7, %v3061_v35  ;;  %v1092_v59 = vpop.f32.mrb[43].mxu0  ;;  %8270 = vmatpush3.bf16.msra.mxu1 %v8269_v34  ;;  %7951 = vmatprep.mubr.msk.f32.mxu1 %vm8429_vm4, %v11042_v53 }
 0x135   :  { %v9634_v19 = vpop.f32.mrb[21].mxu1  ;;  %v2031_v21 = vrot.slane %v2030_v40, 1  ;;  %v2038_v54 = vrot.slane %v2037_v31, 2  ;;  %v2051_v25 = vsel %vm1861_vm5, %v1092_v59, -inf  ;;  %v2537_v35 = vsel %vm1861_vm5, %v9399_v0, -inf  ;;  %8271 = vmatprep.subr.bf16.mxu1 %v11044_v51 }
 0x136   :  { %11061 = vst [vmem:[#allocation9_spill] sm:$0xff] %v9634_v19  ;;  %v9644_v30 = vpop.f32.mrb[22].mxu1  ;;  %v2866_v49 = vmax.f32 %v2768_v47, 0.0  ;;  %v2046_v57 = vmax.f32 %v2044_v11, %v2045_v61  ;;  %v2053_v3 = vmax.f32 %v2051_v25, %v2052_v8  ;;  %v9661_v11 = vld [vmem:[%s11038_s3 + $0x138] sm:$0xff]  ;;  %v9666_v47 = vld [vmem:[%s11038_s3 + $0x140] sm:$0xff]  ;;  %v9671_v61 = vld [vmem:[%s11038_s3 + $0x148] sm:$0xff]  ;;  %v2539_v8 = vmax.f32 %v2537_v35, %v2538_v18 }
 0x137   :  { %11062 = vst [vmem:[#allocation10_spill] sm:$0xff] %v9644_v30  ;;  %v9654_v5 = vpop.f32.mrb[23].mxu1  ;;  %v2039_v34 = vmax.f32 %v2037_v31, %v2038_v54  ;;  %v7665_v53 = vpop.f32.mrb[44].mxu0  ;;  %11065 = vst [vmem:[#allocation13_spill] sm:$0xff] %v9666_v47  ;;  %v2532_v31 = vmax.f32 %v2530_v43, %v2531_v48  ;;  %v2865_v25 = vmax.f32 %v9600_v52, 0.0  ;;  %v2032_v19 = vmax.f32 %v2030_v40, %v2031_v21  ;;  %v9692_v40 = vld [vmem:[%s11038_s3 + $0x158] sm:$0xff] }
 0x138   :  { %11064 = vst [vmem:[#allocation12_spill] sm:$0xff] %v9654_v5  ;;  %11066 = vst [vmem:[#allocation14_spill] sm:$0xff] %v9671_v61  ;;  %v9673_v54 = vpop.f32.mrb[24].mxu1  ;;  %v2047_v0 = vrot.slane %v2046_v57, 2  ;;  %v2054_v59 = vrot.slane %v2053_v3, 4  ;;  %v2061_v51 = vsel %vm1861_vm5, %v7665_v53, -inf }
 0x139   :  { %11067 = vst [vmem:[#allocation15_spill] sm:$0xff] %v9673_v54  ;;  %v1102_v5 = vpop.f32.mrb[45].mxu0  ;;  %v9677_v30 = vpop.f32.mrb[25].mxu1  ;;  %v2040_v50 = vrot.slane %v2039_v34, 1  ;;  %v3062_v41 = vrot.slane %v2866_v49, 7  ;;  %v9687_v53 = vld [vmem:[%s11038_s3 + $0x150] sm:$0xff] }
 0x13a   :  { %11068 = vst [vmem:[#allocation16_spill] sm:$0xff] %v9677_v30  ;;  %v2060_v10 = vsel %vm1861_vm5, %v1102_v5, -inf  ;;  %v9680_v45 = vpop.f32.mrb[26].mxu1  ;;  %v2048_v43 = vmax.f32 %v2046_v57, %v2047_v0  ;;  %v2055_v48 = vmax.f32 %v2053_v3, %v2054_v59 }
 0x13b   :  { %11069 = vst [vmem:[#allocation17_spill] sm:$0xff] %v9680_v45  ;;  %v2062_v18 = vmax.f32 %v2060_v10, %v2061_v51  ;;  %v9694_v21 = vpop.f32.mrb[27].mxu1  ;;  %v2041_v35 = vmax.f32 %v2039_v34, %v2040_v50  ;;  %v7668_v49 = vpop.f32.mrb[46].mxu0  ;;  %v3063_v3 = vsel %vm3046_vm6, %v3062_v41, %v2865_v25  ;;  %v2533_v10 = vrot.slane %v2532_v31, 2 }
 0x13c   :  { %11070 = vst [vmem:[#allocation18_spill] sm:$0xff] %v9694_v21  ;;  %v9699_v57 = vpop.f32.mrb[28].mxu1  ;;  %v2049_v59 = vrot.slane %v2048_v43, 1  ;;  %v2056_v5 = vrot.slane %v2055_v48, 2  ;;  %v2070_v52 = vsel %vm1861_vm5, %v7668_v49, -inf  ;;  %7952 = vmatmul.mubr.msk.f32.vlgmr.msra.gmra.mrb[64].mxu1 %vm1861_vm5, %v3063_v3  ;;  %v1112_v50 = vpop.f32.mrb[47].mxu0  ;;  %v2769_v34 = vadd.f32 %v9159_v23, %v2032_v19 }
 0x13d   :  { %11071 = vst [vmem:[#allocation19_spill] sm:$0xff] %v9699_v57  ;;  %v2063_v0 = vrot.slane %v2062_v18, 4  ;;  %3202 = vst.msk [vmem:[%s11041_s6 + $0x10] sm:$0x3] %vm3193_vm7, %v3063_v3  ;;  %v9707_v41 = vpop.f32.mrb[29].mxu1  ;;  %v2770_v25 = vadd.f32 %v9159_v23, %v2041_v35  ;;  %v2069_v51 = vsel %vm1861_vm5, %v1112_v50, -inf  ;;  %v11073_v57 = vpack.c.bf16 %v9430_v13, %v9415_v6 }
 0x13e   :  { %11072 = vst [vmem:[#allocation20_spill] sm:$0xff] %v9707_v41  ;;  %v11074_v49 = vmov 0.0   ;;  %v2057_v3 = vmax.f32 %v2055_v48, %v2056_v5  ;;  %v2071_v30 = vmax.f32 %v2069_v51, %v2070_v52  ;;  %v11075_v41 = vmov 0.0|0.0   ;;  %v9784_v21 = vld [vmem:[%s11037_s2] ss:$0 sm:$0xff] }
 0x13f   :  { %8273 = vmatpush3.bf16.msra.mxu1 %v11073_v57  ;;  %7958 = vmatprep.mubr.msk.f32.mxu1 %vm8429_vm4, %v11074_v49  ;;  %v2064_v45 = vmax.f32 %v2062_v18, %v2063_v0  ;;  %v2540_v19 = vrot.slane %v2539_v8, 4  ;;  %v2868_v54 = vmax.f32 %v2770_v25, 0.0  ;;  %v2050_v35 = vmax.f32 %v2048_v43, %v2049_v59  ;;  %v7671_v47 = vpop.f32.mrb[48].mxu0  ;;  %v9736_v0 = vld [vmem:[%s11038_s3 + $0x168] sm:$0xff] }
 0x140   :  { %8274 = vmatprep.subr.bf16.mxu1 %v11075_v41  ;;  %v9720_v50 = vmax.f32 %v2532_v31, %v2533_v10  ;;  %v2547_v6 = vsel %vm1861_vm5, %v9417_v7, -inf  ;;  %v2058_v13 = vrot.slane %v2057_v3, 1  ;;  %v2072_v61 = vrot.slane %v2071_v30, 4  ;;  %v1122_v4 = vpop.f32.mrb[49].mxu0  ;;  %v9731_v7 = vld [vmem:[%s11038_s3 + $0x160] sm:$0xff] }
 0x141   :  { %v2065_v57 = vrot.slane %v2064_v45, 2  ;;  %v2546_v48 = vsel %vm1861_vm5, %v9432_v14, -inf  ;;  %v2867_v18 = vmax.f32 %v2769_v34, 0.0  ;;  %v2079_v52 = vsel %vm1861_vm5, %v7671_v47, -inf }
 0x142   :  { %v2078_v51 = vsel %vm1861_vm5, %v1122_v4, -inf  ;;  %v3064_v5 = vrot.slane %v2868_v54, 7  ;;  %v2059_v43 = vmax.f32 %v2057_v3, %v2058_v13  ;;  %v2073_v31 = vmax.f32 %v2071_v30, %v2072_v61  ;;  %v9745_v30 = vpop.f32.mrb[30].mxu1 }
 0x143   :  { %v2066_v59 = vmax.f32 %v2064_v45, %v2065_v57  ;;  %v2541_v10 = vmax.f32 %v2539_v8, %v2540_v19  ;;  %v2771_v14 = vadd.f32 %v9159_v23, %v2050_v35  ;;  %v2080_v47 = vmax.f32 %v2078_v51, %v2079_v52  ;;  %v7674_v34 = vpop.f32.mrb[50].mxu0  ;;  %v9743_v45 = vld [vmem:[%s11038_s3 + $0x170] sm:$0xff]  ;;  %11077 = vst [vmem:[#allocation22_spill] sm:$0xff] %v9745_v30  ;;  %v9757_v35 = vld [vmem:[%s11038_s3 + $0x178] sm:$0xff] }
 0x144   :  { %v3065_v4 = vsel %vm3046_vm6, %v3064_v5, %v2867_v18  ;;  %v2548_v54 = vmax.f32 %v2546_v48, %v2547_v6  ;;  %11076 = vst [vmem:[#allocation21_spill] sm:$0xff] %v9743_v45  ;;  %v2772_v61 = vadd.f32 %v9159_v23, %v2059_v43  ;;  %v2074_v25 = vrot.slane %v2073_v31, 2  ;;  %v1132_v19 = vpop.f32.mrb[51].mxu0  ;;  %v9759_v6 = vpop.f32.mrb[31].mxu1 }
 0x145   :  { %v2067_v8 = vrot.slane %v2066_v59, 1  ;;  %v2088_v3 = vsel %vm1861_vm5, %v7674_v34, -inf  ;;  %3203 = vst.msk [vmem:[%s11041_s6 + $0x12] sm:$0x3] %vm3193_vm7, %v3065_v4  ;;  %7959 = vmatmul.mubr.msk.f32.vlgmr.msra.gmra.mrb[66].mxu1 %vm1861_vm5, %v3065_v4  ;;  %11078 = vst [vmem:[#allocation23_spill] sm:$0xff] %v9759_v6  ;;  %v2081_v23 = vrot.slane %v2080_v47, 4  ;;  %v11079_v57 = vpack.c.bf16 %v9456_v27, %v9451_v26 }
 0x146   :  { %v2087_v13 = vsel %vm1861_vm5, %v1132_v19, -inf  ;;  %7965 = vmatprep.mubr.msk.f32.mxu1 %vm8429_vm4, %v11074_v49  ;;  %v2549_v48 = vrot.slane %v2548_v54, 4  ;;  %v9769_v52 = vpop.f32.mrb[32].mxu1  ;;  %v2870_v51 = vmax.f32 %v2772_v61, 0.0  ;;  %v2075_v5 = vmax.f32 %v2073_v31, %v2074_v25 }
 0x147   :  { %8276 = vmatpush3.bf16.msra.mxu1 %v11079_v57  ;;  %11080 = vst [vmem:[#allocation24_spill] sm:$0xff] %v9769_v52  ;;  %v2089_v43 = vmax.f32 %v2087_v13, %v2088_v3  ;;  %v2542_v34 = vrot.slane %v2541_v10, 2  ;;  %v9772_v4 = vpop.f32.mrb[33].mxu1  ;;  %v2068_v19 = vmax.f32 %v2066_v59, %v2067_v8  ;;  %v2082_v26 = vmax.f32 %v2080_v47, %v2081_v23  ;;  %v7677_v27 = vpop.f32.mrb[52].mxu0 }
 0x148   :  { %8277 = vmatprep.subr.bf16.mxu1 %v11075_v41  ;;  %11081 = vst [vmem:[#allocation25_spill] sm:$0xff] %v9772_v4  ;;  %v2535_v57 = vrot.slane %v9720_v50, 1  ;;  %v9777_v6 = vpop.f32.mrb[34].mxu1  ;;  %v2869_v18 = vmax.f32 %v2771_v14, 0.0  ;;  %v2076_v52 = vrot.slane %v2075_v5, 1  ;;  %v2097_v31 = vsel %vm1861_vm5, %v7677_v27, -inf }
 0x149   :  { %11082 = vst [vmem:[#allocation26_spill] sm:$0xff] %v9777_v6  ;;  %v2090_v61 = vrot.slane %v2089_v43, 4  ;;  %v1142_v25 = vpop.f32.mrb[53].mxu0  ;;  %v2083_v3 = vrot.slane %v2082_v26, 2  ;;  %v3066_v4 = vrot.slane %v2870_v51, 7  ;;  %v2550_v59 = vmax.f32 %v2548_v54, %v2549_v48 }
 0x14a   :  { %v2096_v13 = vsel %vm1861_vm5, %v1142_v25, -inf  ;;  %v2077_v47 = vmax.f32 %v2075_v5, %v2076_v52  ;;  %v2543_v30 = vmax.f32 %v2541_v10, %v2542_v34  ;;  %v2773_v14 = vadd.f32 %v9784_v21, %v2068_v19 }
 0x14b   :  { %v2091_v8 = vmax.f32 %v2089_v43, %v2090_v61  ;;  %v2098_v23 = vmax.f32 %v2096_v13, %v2097_v31  ;;  %v2084_v6 = vmax.f32 %v2082_v26, %v2083_v3  ;;  %v7680_v45 = vpop.f32.mrb[54].mxu0  ;;  %v3067_v27 = vsel %vm3046_vm6, %v3066_v4, %v2869_v18 }
 0x14c   :  { %v2556_v25 = vsel %vm1861_vm5, %v9443_v20, -inf  ;;  %v2774_v54 = vadd.f32 %v9784_v21, %v2077_v47  ;;  %v2106_v10 = vsel %vm1861_vm5, %v7680_v45, -inf  ;;  %3204 = vst.msk [vmem:[%s11041_s6 + $0x14] sm:$0x3] %vm3193_vm7, %v3067_v27  ;;  %7966 = vmatmul.mubr.msk.f32.vlgmr.msra.gmra.mrb[68].mxu1 %vm1861_vm5, %v3067_v27  ;;  %v1152_v51 = vpop.f32.mrb[55].mxu0  ;;  %v11083_v20 = vpack.c.bf16 %v9477_v36, %v9461_v28  ;;  %v9807_v36 = vpop.f32.mrb[35].mxu1 }
 0x14d   :  { %v2092_v48 = vrot.slane %v2091_v8, 2  ;;  %v2099_v52 = vrot.slane %v2098_v23, 4  ;;  %v2085_v5 = vrot.slane %v2084_v6, 1  ;;  %v2105_v18 = vsel %vm1861_vm5, %v1152_v51, -inf  ;;  %7972 = vmatprep.mubr.msk.f32.mxu1 %vm8429_vm4, %v11074_v49 }
 0x14e   :  { %8279 = vmatpush3.bf16.msra.mxu1 %v11083_v20  ;;  %v2551_v43 = vrot.slane %v2550_v59, 2  ;;  %v2555_v45 = vsel %vm1861_vm5, %v9463_v29, -inf  ;;  %v2872_v34 = vmax.f32 %v2774_v54, 0.0  ;;  %v2107_v26 = vmax.f32 %v2105_v18, %v2106_v10  ;;  %v9810_v54 = vpop.f32.mrb[36].mxu1 }
 0x14f   :  { %v2093_v4 = vmax.f32 %v2091_v8, %v2092_v48  ;;  %v2100_v19 = vmax.f32 %v2098_v23, %v2099_v52  ;;  %8280 = vmatprep.subr.bf16.mxu1 %v11075_v41  ;;  %v2086_v61 = vmax.f32 %v2084_v6, %v2085_v5  ;;  %v7683_v31 = vpop.f32.mrb[56].mxu0  ;;  %v2536_v3 = vmax.f32 %v9720_v50, %v2535_v57  ;;  %v9815_v52 = vpop.f32.mrb[37].mxu1 }
 0x150   :  { %v2544_v13 = vrot.slane %v2543_v30, 1  ;;  %v2557_v28 = vmax.f32 %v2555_v45, %v2556_v25  ;;  %v2108_v51 = vrot.slane %v2107_v26, 4  ;;  %v2115_v20 = vsel %vm1861_vm5, %v7683_v31, -inf  ;;  %v1162_v29 = vpop.f32.mrb[57].mxu0 }
 0x151   :  { %v2094_v47 = vrot.slane %v2093_v4, 1  ;;  %v2101_v27 = vrot.slane %v2100_v19, 2  ;;  %v2871_v8 = vmax.f32 %v2773_v14, 0.0  ;;  %v2114_v23 = vsel %vm1861_vm5, %v1162_v29, -inf }
 0x152   :  { %v3068_v48 = vrot.slane %v2872_v34, 7  ;;  %v9813_v6 = vmax.f32 %v2550_v59, %v2551_v43  ;;  %v2109_v25 = vmax.f32 %v2107_v26, %v2108_v51  ;;  %v2116_v10 = vmax.f32 %v2114_v23, %v2115_v20 }
 0x153   :  { %v2095_v50 = vmax.f32 %v2093_v4, %v2094_v47  ;;  %v2102_v57 = vmax.f32 %v2100_v19, %v2101_v27  ;;  %v2775_v5 = vadd.f32 %v9784_v21, %v2086_v61  ;;  %v7686_v18 = vpop.f32.mrb[58].mxu0  ;;  %v9820_v31 = vadd.f32 %v9784_v21, %v2536_v3  ;;  %v9835_v27 = vpop.f32.mrb[38].mxu1 }
 0x154   :  { %v3069_v45 = vsel %vm3046_vm6, %v3068_v48, %v2871_v8  ;;  %v2558_v14 = vrot.slane %v2557_v28, 4  ;;  %v2110_v59 = vrot.slane %v2109_v25, 2  ;;  %v2117_v43 = vrot.slane %v2116_v10, 4  ;;  %v1172_v4 = vpop.f32.mrb[59].mxu0  ;;  %11085 = vst [vmem:[#allocation27_spill] sm:$0xff] %v9835_v27  ;;  %v9839_v48 = vpop.f32.mrb[39].mxu1 }
 0x155   :  { %v2776_v29 = vadd.f32 %v9784_v21, %v2095_v50  ;;  %v2103_v34 = vrot.slane %v2102_v57, 1  ;;  %3205 = vst.msk [vmem:[%s11041_s6 + $0x16] sm:$0x3] %vm3193_vm7, %v3069_v45  ;;  %7973 = vmatmul.mubr.msk.f32.vlgmr.msra.gmra.mrb[70].mxu1 %vm1861_vm5, %v3069_v45  ;;  %v2124_v19 = vsel %vm1861_vm5, %v7686_v18, -inf  ;;  %v2123_v26 = vsel %vm1861_vm5, %v1172_v4, -inf  ;;  %11086 = vst [vmem:[#allocation28_spill] sm:$0xff] %v9839_v48 }
 0x156   :  { %v11084_v61 = vpack.c.bf16 %v9487_v38, %v9482_v37  ;;  %7979 = vmatprep.mubr.msk.f32.mxu1 %vm8429_vm4, %v11074_v49  ;;  %v2545_v3 = vmax.f32 %v2543_v30, %v2544_v13  ;;  %v2559_v47 = vmax.f32 %v2557_v28, %v2558_v14  ;;  %v2111_v20 = vmax.f32 %v2109_v25, %v2110_v59  ;;  %v9843_v30 = vpop.f32.mrb[40].mxu1 }
 0x157   :  { %v2874_v51 = vmax.f32 %v2776_v29, 0.0  ;;  %v2118_v8 = vmax.f32 %v2116_v10, %v2117_v43  ;;  %v2553_v23 = vrot.slane %v9813_v6, 1  ;;  %v2873_v50 = vmax.f32 %v2775_v5, 0.0  ;;  %v7689_v38 = vpop.f32.mrb[60].mxu0  ;;  %11087 = vst [vmem:[#allocation29_spill] sm:$0xff] %v9843_v30  ;;  %v9848_v29 = vpop.f32.mrb[41].mxu1 }
 0x158   :  { %8282 = vmatpush3.bf16.msra.mxu1 %v11084_v61  ;;  %v2104_v18 = vmax.f32 %v2102_v57, %v2103_v34  ;;  %v2125_v37 = vmax.f32 %v2123_v26, %v2124_v19  ;;  %v2565_v45 = vsel %vm1861_vm5, %v9489_v39, -inf  ;;  %v2112_v13 = vrot.slane %v2111_v20, 1  ;;  %v1182_v10 = vpop.f32.mrb[61].mxu0  ;;  %11088 = vst [vmem:[#allocation30_spill] sm:$0xff] %v9848_v29  ;;  %v9851_v43 = vpop.f32.mrb[42].mxu1 }
 0x159   :  { %8283 = vmatprep.subr.bf16.mxu1 %v11075_v41  ;;  %v2119_v28 = vrot.slane %v2118_v8, 2  ;;  %v2133_v25 = vsel %vm1861_vm5, %v7689_v38, -inf  ;;  %v2564_v14 = vsel %vm1861_vm5, %v9493_v46, -inf  ;;  %v2132_v57 = vsel %vm1861_vm5, %v1182_v10, -inf }
 0x15a   :  { %v2126_v59 = vrot.slane %v2125_v37, 4  ;;  %v3070_v5 = vrot.slane %v2874_v51, 7  ;;  %v2560_v34 = vrot.slane %v2559_v47, 2  ;;  %v2113_v39 = vmax.f32 %v2111_v20, %v2112_v13 }
 0x15b   :  { %v2120_v4 = vmax.f32 %v2118_v8, %v2119_v28  ;;  %v2134_v19 = vmax.f32 %v2132_v57, %v2133_v25  ;;  %v9854_v26 = vadd.f32 %v9784_v21, %v2545_v3  ;;  %v2777_v61 = vadd.f32 %v9784_v21, %v2104_v18  ;;  %v7692_v30 = vpop.f32.mrb[62].mxu0  ;;  %v9873_v25 = vpop.f32.mrb[43].mxu1 }
 0x15c   :  { %v2127_v38 = vmax.f32 %v2125_v37, %v2126_v59  ;;  %v3071_v46 = vsel %vm3046_vm6, %v3070_v5, %v2873_v50  ;;  %v2566_v29 = vmax.f32 %v2564_v14, %v2565_v45  ;;  %v2778_v48 = vadd.f32 %v9784_v21, %v2113_v39  ;;  %v1192_v3 = vpop.f32.mrb[63].mxu0 }
 0x15d   :  { %v2121_v10 = vrot.slane %v2120_v4, 1  ;;  %v2135_v51 = vrot.slane %v2134_v19, 4  ;;  %v2142_v27 = vsel %vm1861_vm5, %v7692_v30, -inf  ;;  %3206 = vst.msk [vmem:[%s11041_s6 + $0x18] sm:$0x3] %vm3193_vm7, %v3071_v46  ;;  %7980 = vmatmul.mubr.msk.f32.vlgmr.msra.gmra.mrb[72].mxu1 %vm1861_vm5, %v3071_v46  ;;  %v2141_v8 = vsel %vm1861_vm5, %v1192_v3, -inf }
 0x15e   :  { %v2128_v20 = vrot.slane %v2127_v38, 2  ;;  %v11089_v50 = vpack.c.bf16 %v9512_v62, %v9505_v55  ;;  %7986 = vmatprep.mubr.msk.f32.mxu1 %vm8429_vm4, %v11074_v49  ;;  %v2554_v18 = vmax.f32 %v9813_v6, %v2553_v23  ;;  %v2561_v37 = vmax.f32 %v2559_v47, %v2560_v34  ;;  %v9877_v62 = vpop.f32.mrb[44].mxu1 }
 0x15f   :  { %v2876_v45 = vmax.f32 %v2778_v48, 0.0  ;;  %v2136_v30 = vmax.f32 %v2134_v19, %v2135_v51  ;;  %v2143_v13 = vmax.f32 %v2141_v8, %v2142_v27  ;;  %v2567_v28 = vrot.slane %v2566_v29, 4  ;;  %v7695_v5 = vpop.f32.mrb[64].mxu0  ;;  %11090 = vst [vmem:[#allocation31_spill] sm:$0xff] %v9877_v62  ;;  %v9882_v48 = vpop.f32.mrb[45].mxu1 }
 0x160   :  { %8285 = vmatpush3.bf16.msra.mxu1 %v11089_v50  ;;  %v2875_v14 = vmax.f32 %v2777_v61, 0.0  ;;  %v2122_v59 = vmax.f32 %v2120_v4, %v2121_v10  ;;  %v2129_v57 = vmax.f32 %v2127_v38, %v2128_v20  ;;  %v2574_v55 = vsel %vm1861_vm5, %v9507_v56, -inf  ;;  %v1202_v23 = vpop.f32.mrb[65].mxu0  ;;  %11091 = vst [vmem:[#allocation32_spill] sm:$0xff] %v9882_v48 }
 0x161   :  { %8286 = vmatprep.subr.bf16.mxu1 %v11075_v41  ;;  %v2137_v39 = vrot.slane %v2136_v30, 2  ;;  %v2144_v6 = vrot.slane %v2143_v13, 4  ;;  %v2151_v47 = vsel %vm1861_vm5, %v7695_v5, -inf  ;;  %v2573_v27 = vsel %vm1861_vm5, %v9524_v2, -inf }
 0x162   :  { %v2130_v34 = vrot.slane %v2129_v57, 1  ;;  %v2150_v4 = vsel %vm1861_vm5, %v1202_v23, -inf  ;;  %v3072_v19 = vrot.slane %v2876_v45, 7  ;;  %v2562_v61 = vrot.slane %v2561_v37, 1 }
 0x163   :  { %v2138_v38 = vmax.f32 %v2136_v30, %v2137_v39  ;;  %v2145_v46 = vmax.f32 %v2143_v13, %v2144_v6  ;;  %v2152_v56 = vmax.f32 %v2150_v4, %v2151_v47  ;;  %v2568_v10 = vmax.f32 %v2566_v29, %v2567_v28  ;;  %v7698_v20 = vpop.f32.mrb[66].mxu0  ;;  %v9903_v6 = vpop.f32.mrb[46].mxu1 }
 0x164   :  { %v2779_v51 = vadd.f32 %v9784_v21, %v2122_v59  ;;  %v2131_v3 = vmax.f32 %v2129_v57, %v2130_v34  ;;  %v3073_v8 = vsel %vm3046_vm6, %v3072_v19, %v2875_v14  ;;  %v2575_v50 = vmax.f32 %v2573_v27, %v2574_v55  ;;  %v1212_v29 = vpop.f32.mrb[67].mxu0  ;;  %v9908_v34 = vpop.f32.mrb[47].mxu1 }
 0x165   :  { %v2139_v5 = vrot.slane %v2138_v38, 1  ;;  %v2146_v2 = vrot.slane %v2145_v46, 2  ;;  %v2153_v62 = vrot.slane %v2152_v56, 4  ;;  %v2160_v48 = vsel %vm1861_vm5, %v7698_v20, -inf  ;;  %3207 = vst.msk [vmem:[%s11041_s6 + $0x1a] sm:$0x3] %vm3193_vm7, %v3073_v8  ;;  %7987 = vmatmul.mubr.msk.f32.vlgmr.msra.gmra.mrb[74].mxu1 %vm1861_vm5, %v3073_v8 }
 0x166   :  { %v2780_v45 = vadd.f32 %v9784_v21, %v2131_v3  ;;  %v2159_v30 = vsel %vm1861_vm5, %v1212_v29, -inf  ;;  %v11092_v13 = vpack.c.bf16 %v9522_v1, %v9517_v63  ;;  %7993 = vmatprep.mubr.msk.f32.mxu1 %vm8429_vm4, %v11074_v49  ;;  %v2569_v39 = vrot.slane %v2568_v10, 2 }
 0x167   :  { %v2147_v59 = vmax.f32 %v2145_v46, %v2146_v2  ;;  %v2154_v57 = vmax.f32 %v2152_v56, %v2153_v62  ;;  %v2161_v55 = vmax.f32 %v2159_v30, %v2160_v48  ;;  %v2140_v23 = vmax.f32 %v2138_v38, %v2139_v5  ;;  %v7701_v27 = vpop.f32.mrb[68].mxu0 }
 0x168   :  { %8288 = vmatpush3.bf16.msra.mxu1 %v11092_v13  ;;  %v2878_v47 = vmax.f32 %v2780_v45, 0.0  ;;  %v9906_v63 = vadd.f32 %v9784_v21, %v2554_v18  ;;  %v2563_v1 = vmax.f32 %v2561_v37, %v2562_v61  ;;  %v2877_v4 = vmax.f32 %v2779_v51, 0.0  ;;  %v1222_v62 = vpop.f32.mrb[69].mxu0 }
 0x169   :  { %8289 = vmatprep.subr.bf16.mxu1 %v11075_v41  ;;  %v2148_v19 = vrot.slane %v2147_v59, 1  ;;  %v2155_v3 = vrot.slane %v2154_v57, 2  ;;  %v2162_v46 = vrot.slane %v2161_v55, 4  ;;  %v2169_v48 = vsel %vm1861_vm5, %v7701_v27, -inf }
 0x16a   :  { %v2168_v56 = vsel %vm1861_vm5, %v1222_v62, -inf  ;;  %v3074_v20 = vrot.slane %v2878_v47, 7  ;;  %v2576_v8 = vrot.slane %v2575_v50, 4  ;;  %v2570_v29 = vmax.f32 %v2568_v10, %v2569_v39 }
 0x16b   :  { %v2149_v2 = vmax.f32 %v2147_v59, %v2148_v19  ;;  %v2156_v38 = vmax.f32 %v2154_v57, %v2155_v3  ;;  %v2163_v5 = vmax.f32 %v2161_v55, %v2162_v46  ;;  %v2781_v18 = vadd.f32 %v9784_v21, %v2140_v23  ;;  %v7704_v61 = vpop.f32.mrb[70].mxu0 }
 0x16c   :  { %v2170_v37 = vmax.f32 %v2168_v56, %v2169_v48  ;;  %v3075_v51 = vsel %vm3046_vm6, %v3074_v20, %v2877_v4  ;;  %v2178_v62 = vsel %vm1861_vm5, %v7704_v61, -inf  ;;  %v1232_v10 = vpop.f32.mrb[71].mxu0  ;;  %v11093_v55 = vpack.c.bf16 %v9540_v15, %v9535_v12 }
 0x16d   :  { %v2782_v30 = vadd.f32 %v9784_v21, %v2149_v2  ;;  %v2157_v13 = vrot.slane %v2156_v38, 1  ;;  %v2164_v27 = vrot.slane %v2163_v5, 2  ;;  %3208 = vst.msk [vmem:[%s11041_s6 + $0x1c] sm:$0x3] %vm3193_vm7, %v3075_v51  ;;  %7994 = vmatmul.mubr.msk.f32.vlgmr.msra.gmra.mrb[76].mxu1 %vm1861_vm5, %v3075_v51  ;;  %v2177_v57 = vsel %vm1861_vm5, %v1232_v10, -inf }
 0x16e   :  { %v2171_v59 = vrot.slane %v2170_v37, 4  ;;  %8291 = vmatpush3.bf16.msra.mxu1 %v11093_v55  ;;  %8000 = vmatprep.mubr.msk.f32.mxu1 %vm8429_vm4, %v11074_v49  ;;  %v9929_v39 = vadd.f32 %v9784_v21, %v2563_v1  ;;  %v2577_v47 = vmax.f32 %v2575_v50, %v2576_v8  ;;  %v2179_v19 = vmax.f32 %v2177_v57, %v2178_v62 }
 0x16f   :  { %v2880_v23 = vmax.f32 %v2782_v30, 0.0  ;;  %v2165_v4 = vmax.f32 %v2163_v5, %v2164_v27  ;;  %8292 = vmatprep.subr.bf16.mxu1 %v11075_v41  ;;  %v2571_v3 = vrot.slane %v2570_v29, 1  ;;  %v2879_v46 = vmax.f32 %v2781_v18, 0.0  ;;  %v7707_v20 = vpop.f32.mrb[72].mxu0 }
 0x170   :  { %v2158_v48 = vmax.f32 %v2156_v38, %v2157_v13  ;;  %v2172_v56 = vmax.f32 %v2170_v37, %v2171_v59  ;;  %v2583_v12 = vsel %vm1861_vm5, %v9542_v16, -inf  ;;  %v2180_v2 = vrot.slane %v2179_v19, 4  ;;  %v1242_v1 = vpop.f32.mrb[73].mxu0 }
 0x171   :  { %v2166_v15 = vrot.slane %v2165_v4, 1  ;;  %v2187_v61 = vsel %vm1861_vm5, %v7707_v20, -inf  ;;  %v2582_v50 = vsel %vm1861_vm5, %v9551_v24, -inf  ;;  %v2186_v5 = vsel %vm1861_vm5, %v1242_v1, -inf }
 0x172   :  { %v2173_v8 = vrot.slane %v2172_v56, 2  ;;  %v3076_v51 = vrot.slane %v2880_v23, 7  ;;  %v2578_v30 = vrot.slane %v2577_v47, 2  ;;  %v2181_v38 = vmax.f32 %v2179_v19, %v2180_v2 }
 0x173   :  { %v2167_v18 = vmax.f32 %v2165_v4, %v2166_v15  ;;  %v2188_v37 = vmax.f32 %v2186_v5, %v2187_v61  ;;  %v9938_v13 = vmax.f32 %v2570_v29, %v2571_v3  ;;  %v2783_v16 = vadd.f32 %v9784_v21, %v2158_v48  ;;  %v7710_v62 = vpop.f32.mrb[74].mxu0 }
 0x174   :  { %v2174_v27 = vmax.f32 %v2172_v56, %v2173_v8  ;;  %v3077_v10 = vsel %vm3046_vm6, %v3076_v51, %v2879_v46  ;;  %v2584_v59 = vmax.f32 %v2582_v50, %v2583_v12  ;;  %v2182_v24 = vrot.slane %v2181_v38, 2  ;;  %v1252_v29 = vpop.f32.mrb[75].mxu0 }
 0x175   :  { %v2784_v57 = vadd.f32 %v9784_v21, %v2167_v18  ;;  %v2189_v55 = vrot.slane %v2188_v37, 4  ;;  %v2196_v20 = vsel %vm1861_vm5, %v7710_v62, -inf  ;;  %3209 = vst.msk [vmem:[%s11041_s6 + $0x1e] sm:$0x3] %vm3193_vm7, %v3077_v10  ;;  %8001 = vmatmul.mubr.msk.f32.vlgmr.msra.gmra.mrb[78].mxu1 %vm1861_vm5, %v3077_v10  ;;  %v2195_v4 = vsel %vm1861_vm5, %v1252_v29, -inf }
 0x176   :  { %v2175_v23 = vrot.slane %v2174_v27, 1  ;;  %v11094_v19 = vpack.c.bf16 %v9580_v60, %v9575_v58  ;;  %8007 = vmatprep.mubr.msk.f32.mxu1 %vm8429_vm4, %v11074_v49  ;;  %v2579_v3 = vmax.f32 %v2577_v47, %v2578_v30  ;;  %v2585_v46 = vrot.slane %v2584_v59, 4 }
 0x177   :  { %v2882_v48 = vmax.f32 %v2784_v57, 0.0  ;;  %v2183_v56 = vmax.f32 %v2181_v38, %v2182_v24  ;;  %v2190_v12 = vmax.f32 %v2188_v37, %v2189_v55  ;;  %v2197_v15 = vmax.f32 %v2195_v4, %v2196_v20  ;;  %v7713_v61 = vpop.f32.mrb[76].mxu0 }
 0x178   :  { %8294 = vmatpush3.bf16.msra.mxu1 %v11094_v19  ;;  %v2881_v2 = vmax.f32 %v2783_v16, 0.0  ;;  %v2586_v1 = vmax.f32 %v2584_v59, %v2585_v46  ;;  %v2592_v50 = vsel %vm1861_vm5, %v9563_v32, -inf  ;;  %v2591_v58 = vsel %vm1861_vm5, %v9570_v33, -inf  ;;  %v1262_v51 = vpop.f32.mrb[77].mxu0 }
 0x179   :  { %8295 = vmatprep.subr.bf16.mxu1 %v11075_v41  ;;  %v2184_v60 = vrot.slane %v2183_v56, 1  ;;  %v2191_v8 = vrot.slane %v2190_v12, 2  ;;  %v2198_v5 = vrot.slane %v2197_v15, 4  ;;  %v2205_v47 = vsel %vm1861_vm5, %v7713_v61, -inf }
 0x17a   :  { %v2176_v30 = vmax.f32 %v2174_v27, %v2175_v23  ;;  %v2204_v18 = vsel %vm1861_vm5, %v1262_v51, -inf  ;;  %v3078_v38 = vrot.slane %v2882_v48, 7  ;;  %v2587_v37 = vrot.slane %v2586_v1, 2 }
 0x17b   :  { %v2185_v16 = vmax.f32 %v2183_v56, %v2184_v60  ;;  %v2192_v62 = vmax.f32 %v2190_v12, %v2191_v8  ;;  %v2199_v10 = vmax.f32 %v2197_v15, %v2198_v5  ;;  %v2206_v59 = vmax.f32 %v2204_v18, %v2205_v47  ;;  %v7716_v57 = vpop.f32.mrb[78].mxu0 }
 0x17c   :  { %v3079_v32 = vsel %vm3046_vm6, %v3078_v38, %v2881_v2  ;;  %v2580_v24 = vrot.slane %v2579_v3, 1  ;;  %v2588_v33 = vmax.f32 %v2586_v1, %v2587_v37  ;;  %v9963_v55 = vmax.f32 %v2591_v58, %v2592_v50  ;;  %v1272_v23 = vpop.f32.mrb[79].mxu0 }
 0x17d   :  { %v2786_v20 = vadd.f32 %v9784_v21, %v2185_v16  ;;  %v2193_v29 = vrot.slane %v2192_v62, 1  ;;  %v2200_v4 = vrot.slane %v2199_v10, 2  ;;  %v2207_v27 = vrot.slane %v2206_v59, 4  ;;  %3210 = vst.msk [vmem:[%s11041_s6 + $0x20] sm:$0x3] %vm3193_vm7, %v3079_v32  ;;  %8008 = vmatmul.mubr.msk.f32.vlgmr.msra.gmra.mrb[80].mxu1 %vm1861_vm5, %v3079_v32 }
 0x17e   :  { %v2785_v19 = vadd.f32 %v9784_v21, %v2176_v30  ;;  %v2214_v46 = vsel %vm1861_vm5, %v7716_v57, -inf  ;;  %v2213_v48 = vsel %vm1861_vm5, %v1272_v23, -inf  ;;  %v11095_v56 = vpack.c.bf16 %v9611_v44, %v9606_v42  ;;  %8014 = vmatprep.mubr.msk.f32.mxu1 %vm8429_vm4, %v11074_v49 }
 0x17f   :  { %v2884_v15 = vmax.f32 %v2786_v20, 0.0  ;;  %v2201_v2 = vmax.f32 %v2199_v10, %v2200_v4  ;;  %v2208_v61 = vmax.f32 %v2206_v59, %v2207_v27  ;;  %v9983_v1 = vadd.f32 %v9784_v21, %v9938_v13  ;;  %v7719_v58 = vpop.f32.mrb[80].mxu0 }
 0x180   :  { %8297 = vmatpush3.bf16.msra.mxu1 %v11095_v56  ;;  %v2215_v50 = vmax.f32 %v2213_v48, %v2214_v46  ;;  %v2581_v60 = vmax.f32 %v2579_v3, %v2580_v24  ;;  %v2589_v8 = vrot.slane %v2588_v33, 1  ;;  %v2601_v42 = vsel %vm1861_vm5, %v9586_v9, -inf  ;;  %v1282_v30 = vpop.f32.mrb[81].mxu0  ;;  %v11096_v46 = vld [vmem:[#allocation7_spill] sm:$0xff] }
 0x181   :  { %8298 = vmatprep.subr.bf16.mxu1 %v11075_v41  ;;  %v2194_v44 = vmax.f32 %v2192_v62, %v2193_v29  ;;  %v2202_v5 = vrot.slane %v2201_v2, 1  ;;  %v2209_v47 = vrot.slane %v2208_v61, 2  ;;  %v2223_v51 = vsel %vm1861_vm5, %v7719_v58, -inf }
 0x182   :  { %v2883_v18 = vmax.f32 %v2785_v19, 0.0  ;;  %v2216_v38 = vrot.slane %v2215_v50, 4  ;;  %v2222_v37 = vsel %vm1861_vm5, %v1282_v30, -inf  ;;  %v3080_v16 = vrot.slane %v2884_v15, 7 }
 0x183   :  { %v2203_v13 = vmax.f32 %v2201_v2, %v2202_v5  ;;  %v2210_v10 = vmax.f32 %v2208_v61, %v2209_v47  ;;  %v2224_v59 = vmax.f32 %v2222_v37, %v2223_v51  ;;  %v2600_v3 = vsel %vm1861_vm5, %v9590_v22, -inf  ;;  %v7722_v32 = vpop.f32.mrb[82].mxu0 }
 0x184   :  { %v2217_v57 = vmax.f32 %v2215_v50, %v2216_v38  ;;  %v3081_v9 = vsel %vm3046_vm6, %v3080_v16, %v2883_v18  ;;  %v2590_v62 = vmax.f32 %v2588_v33, %v2589_v8  ;;  %v2594_v24 = vrot.slane %v9963_v55, 4  ;;  %v1292_v22 = vpop.f32.mrb[83].mxu0 }
 0x185   :  { %v2787_v20 = vadd.f32 %v9784_v21, %v2194_v44  ;;  %v2788_v29 = vadd.f32 %v9784_v21, %v2203_v13  ;;  %v2225_v4 = vrot.slane %v2224_v59, 4  ;;  %v2232_v27 = vsel %vm1861_vm5, %v7722_v32, -inf  ;;  %3211 = vst.msk [vmem:[%s11041_s6 + $0x22] sm:$0x3] %vm3193_vm7, %v3081_v9  ;;  %8015 = vmatmul.mubr.msk.f32.vlgmr.msra.gmra.mrb[82].mxu1 %vm1861_vm5, %v3081_v9 }
 0x186   :  { %v2211_v23 = vrot.slane %v2210_v10, 1  ;;  %v2218_v19 = vrot.slane %v2217_v57, 2  ;;  %v2231_v33 = vsel %vm1861_vm5, %v1292_v22, -inf  ;;  %v11097_v48 = vpack.c.bf16 %v9630_v17, %v11096_v46  ;;  %8021 = vmatprep.mubr.msk.f32.mxu1 %vm8429_vm4, %v11074_v49 }
 0x187   :  { %v2602_v56 = vmax.f32 %v2600_v3, %v2601_v42  ;;  %v2886_v15 = vmax.f32 %v2788_v29, 0.0  ;;  %v2226_v2 = vmax.f32 %v2224_v59, %v2225_v4  ;;  %v2233_v61 = vmax.f32 %v2231_v33, %v2232_v27  ;;  %v7725_v8 = vpop.f32.mrb[84].mxu0  ;;  %v11098_v33 = vld [vmem:[#allocation11_spill] sm:$0xff] }
 0x188   :  { %8300 = vmatpush3.bf16.msra.mxu1 %v11097_v48  ;;  %v2219_v58 = vmax.f32 %v2217_v57, %v2218_v19  ;;  %v10010_v44 = vadd.f32 %v9784_v21, %v2581_v60  ;;  %v10013_v5 = vadd.f32 %v9784_v21, %v2590_v62  ;;  %v2595_v17 = vmax.f32 %v9963_v55, %v2594_v24  ;;  %v1302_v18 = vpop.f32.mrb[85].mxu0 }
 0x189   :  { %8301 = vmatprep.subr.bf16.mxu1 %v11075_v41  ;;  %v2885_v47 = vmax.f32 %v2787_v20, 0.0  ;;  %v2227_v51 = vrot.slane %v2226_v2, 2  ;;  %v2234_v42 = vrot.slane %v2233_v61, 4  ;;  %v2241_v30 = vsel %vm1861_vm5, %v7725_v8, -inf }
 0x18a   :  { %v2212_v38 = vmax.f32 %v2210_v10, %v2211_v23  ;;  %v2220_v37 = vrot.slane %v2219_v58, 1  ;;  %v2240_v16 = vsel %vm1861_vm5, %v1302_v18, -inf  ;;  %v3082_v13 = vrot.slane %v2886_v15, 7 }
 0x18b   :  { %v2228_v59 = vmax.f32 %v2226_v2, %v2227_v51  ;;  %v2235_v3 = vmax.f32 %v2233_v61, %v2234_v42  ;;  %v2242_v60 = vmax.f32 %v2240_v16, %v2241_v30  ;;  %v2603_v57 = vrot.slane %v2602_v56, 4  ;;  %v7728_v9 = vpop.f32.mrb[86].mxu0  ;;  %v11100_v30 = vld [vmem:[#allocation5_spill] sm:$0xff] }
 0x18c   :  { %v2221_v32 = vmax.f32 %v2219_v58, %v2220_v37  ;;  %v3083_v62 = vsel %vm3046_vm6, %v3082_v13, %v2885_v47  ;;  %v2596_v24 = vrot.slane %v2595_v17, 2  ;;  %v2250_v10 = vsel %vm1861_vm5, %v7728_v9, -inf  ;;  %v1312_v27 = vpop.f32.mrb[87].mxu0  ;;  %v11101_v13 = vld [vmem:[#allocation6_spill] sm:$0xff] }
 0x18d   :  { %v2229_v20 = vrot.slane %v2228_v59, 1  ;;  %v2236_v29 = vrot.slane %v2235_v3, 2  ;;  %v2243_v4 = vrot.slane %v2242_v60, 4  ;;  %3212 = vst.msk [vmem:[%s11041_s6 + $0x24] sm:$0x3] %vm3193_vm7, %v3083_v62  ;;  %8022 = vmatmul.mubr.msk.f32.vlgmr.msra.gmra.mrb[84].mxu1 %vm1861_vm5, %v3083_v62  ;;  %v2789_v22 = vadd.f32 %v9784_v21, %v2212_v38 }
 0x18e   :  { %v2790_v23 = vadd.f32 %v9784_v21, %v2221_v32  ;;  %v2249_v19 = vsel %vm1861_vm5, %v1312_v27, -inf  ;;  %v11099_v46 = vpack.c.bf16 %v9661_v11, %v11098_v33  ;;  %8028 = vmatprep.mubr.msk.f32.mxu1 %vm8429_vm4, %v11074_v49  ;;  %v2604_v58 = vmax.f32 %v2602_v56, %v2603_v57 }
 0x18f   :  { %v2237_v15 = vmax.f32 %v2235_v3, %v2236_v29  ;;  %v2244_v2 = vmax.f32 %v2242_v60, %v2243_v4  ;;  %v2251_v61 = vmax.f32 %v2249_v19, %v2250_v10  ;;  %v2230_v47 = vmax.f32 %v2228_v59, %v2229_v20  ;;  %v7731_v51 = vpop.f32.mrb[88].mxu0 }
 0x190   :  { %8303 = vmatpush3.bf16.msra.mxu1 %v11099_v46  ;;  %v2888_v8 = vmax.f32 %v2790_v23, 0.0  ;;  %v10036_v42 = vmax.f32 %v2595_v17, %v2596_v24  ;;  %v2610_v11 = vsel %vm1861_vm5, %v11100_v30, -inf  ;;  %v1322_v16 = vpop.f32.mrb[89].mxu0  ;;  %v2609_v3 = vsel %vm1861_vm5, %v11101_v13, -inf }
 0x191   :  { %8304 = vmatprep.subr.bf16.mxu1 %v11075_v41  ;;  %v2238_v18 = vrot.slane %v2237_v15, 1  ;;  %v2245_v38 = vrot.slane %v2244_v2, 2  ;;  %v2252_v37 = vrot.slane %v2251_v61, 4  ;;  %v2887_v60 = vmax.f32 %v2789_v22, 0.0 }
 0x192   :  { %v2259_v32 = vsel %vm1861_vm5, %v7731_v51, -inf  ;;  %v2258_v56 = vsel %vm1861_vm5, %v1322_v16, -inf  ;;  %v3084_v57 = vrot.slane %v2888_v8, 7  ;;  %v2605_v62 = vrot.slane %v2604_v58, 2 }
 0x193   :  { %v2239_v59 = vmax.f32 %v2237_v15, %v2238_v18  ;;  %v2246_v9 = vmax.f32 %v2244_v2, %v2245_v38  ;;  %v2253_v17 = vmax.f32 %v2251_v61, %v2252_v37  ;;  %v2791_v24 = vadd.f32 %v9784_v21, %v2230_v47  ;;  %v7734_v29 = vpop.f32.mrb[90].mxu0  ;;  %v11102_v2 = vld [vmem:[#allocation14_spill] sm:$0xff]  ;;  %v11103_v61 = vld [vmem:[#allocation13_spill] sm:$0xff] }
 0x194   :  { %v2260_v20 = vmax.f32 %v2258_v56, %v2259_v32  ;;  %v3085_v4 = vsel %vm3046_vm6, %v3084_v57, %v2887_v60  ;;  %v2611_v10 = vmax.f32 %v2609_v3, %v2610_v11  ;;  %v2268_v19 = vsel %vm1861_vm5, %v7734_v29, -inf  ;;  %v1332_v33 = vpop.f32.mrb[91].mxu0  ;;  %v11105_v60 = vld [vmem:[#allocation8_spill] sm:$0xff] }
 0x195   :  { %v2792_v27 = vadd.f32 %v9784_v21, %v2239_v59  ;;  %v2247_v23 = vrot.slane %v2246_v9, 1  ;;  %v2254_v22 = vrot.slane %v2253_v17, 2  ;;  %3213 = vst.msk [vmem:[%s11041_s6 + $0x26] sm:$0x3] %vm3193_vm7, %v3085_v4  ;;  %8029 = vmatmul.mubr.msk.f32.vlgmr.msra.gmra.mrb[86].mxu1 %vm1861_vm5, %v3085_v4  ;;  %v2267_v15 = vsel %vm1861_vm5, %v1332_v33, -inf  ;;  %v11106_v4 = vld [vmem:[#allocation9_spill] sm:$0xff] }
 0x196   :  { %v2261_v46 = vrot.slane %v2260_v20, 4  ;;  %v11104_v8 = vpack.c.bf16 %v11102_v2, %v11103_v61  ;;  %8035 = vmatprep.mubr.msk.f32.mxu1 %vm8429_vm4, %v11074_v49  ;;  %v2598_v47 = vrot.slane %v10036_v42, 1  ;;  %v2612_v51 = vrot.slane %v2611_v10, 4 }
 0x197   :  { %v2890_v30 = vmax.f32 %v2792_v27, 0.0  ;;  %v2255_v11 = vmax.f32 %v2253_v17, %v2254_v22  ;;  %v2269_v18 = vmax.f32 %v2267_v15, %v2268_v19  ;;  %v2606_v38 = vmax.f32 %v2604_v58, %v2605_v62  ;;  %v7737_v3 = vpop.f32.mrb[92].mxu0 }
 0x198   :  { %8306 = vmatpush3.bf16.msra.mxu1 %v11104_v8  ;;  %v2889_v37 = vmax.f32 %v2791_v24, 0.0  ;;  %v2248_v16 = vmax.f32 %v2246_v9, %v2247_v23  ;;  %v2262_v13 = vmax.f32 %v2260_v20, %v2261_v46  ;;  %v2619_v32 = vsel %vm1861_vm5, %v11105_v60, -inf  ;;  %v1342_v29 = vpop.f32.mrb[93].mxu0 }
 0x199   :  { %8307 = vmatprep.subr.bf16.mxu1 %v11075_v41  ;;  %v2256_v56 = vrot.slane %v2255_v11, 1  ;;  %v2270_v57 = vrot.slane %v2269_v18, 4  ;;  %v2277_v59 = vsel %vm1861_vm5, %v7737_v3, -inf  ;;  %v2618_v27 = vsel %vm1861_vm5, %v11106_v4, -inf }
 0x19a   :  { %v2263_v17 = vrot.slane %v2262_v13, 2  ;;  %v2276_v22 = vsel %vm1861_vm5, %v1342_v29, -inf  ;;  %v3086_v19 = vrot.slane %v2890_v30, 7  ;;  %v2613_v58 = vmax.f32 %v2611_v10, %v2612_v51 }
 0x19b   :  { %v2257_v62 = vmax.f32 %v2255_v11, %v2256_v56  ;;  %v2271_v9 = vmax.f32 %v2269_v18, %v2270_v57  ;;  %v2278_v24 = vmax.f32 %v2276_v22, %v2277_v59  ;;  %v2607_v20 = vrot.slane %v2606_v38, 1  ;;  %v7740_v46 = vpop.f32.mrb[94].mxu0 }
 0x19c   :  { %v2793_v23 = vadd.f32 %v9784_v21, %v2248_v16  ;;  %v2264_v33 = vmax.f32 %v2262_v13, %v2263_v17  ;;  %v3087_v15 = vsel %vm3046_vm6, %v3086_v19, %v2889_v37  ;;  %v2620_v2 = vmax.f32 %v2618_v27, %v2619_v32  ;;  %v1352_v10 = vpop.f32.mrb[95].mxu0 }
 0x19d   :  { %v2794_v61 = vadd.f32 %v9784_v21, %v2257_v62  ;;  %v2272_v8 = vrot.slane %v2271_v9, 2  ;;  %v2279_v3 = vrot.slane %v2278_v24, 4  ;;  %v2286_v60 = vsel %vm1861_vm5, %v7740_v46, -inf  ;;  %3214 = vst.msk [vmem:[%s11041_s6 + $0x28] sm:$0x3] %vm3193_vm7, %v3087_v15  ;;  %8036 = vmatmul.mubr.msk.f32.vlgmr.msra.gmra.mrb[88].mxu1 %vm1861_vm5, %v3087_v15 }
 0x19e   :  { %v2265_v51 = vrot.slane %v2264_v33, 1  ;;  %v2285_v30 = vsel %vm1861_vm5, %v1352_v10, -inf  ;;  %v11107_v11 = vpack.c.bf16 %v9692_v40, %v9687_v53  ;;  %8042 = vmatprep.mubr.msk.f32.mxu1 %vm8429_vm4, %v11074_v49  ;;  %v2614_v18 = vrot.slane %v2613_v58, 2 }
 0x19f   :  { %v2621_v37 = vrot.slane %v2620_v2, 4  ;;  %v2892_v16 = vmax.f32 %v2794_v61, 0.0  ;;  %v2273_v13 = vmax.f32 %v2271_v9, %v2272_v8  ;;  %v2280_v32 = vmax.f32 %v2278_v24, %v2279_v3  ;;  %v7743_v59 = vpop.f32.mrb[96].mxu0 }
 0x1a0   :  { %8309 = vmatpush3.bf16.msra.mxu1 %v11107_v11  ;;  %v2287_v56 = vmax.f32 %v2285_v30, %v2286_v60  ;;  %v2266_v57 = vmax.f32 %v2264_v33, %v2265_v51  ;;  %v2599_v29 = vmax.f32 %v10036_v42, %v2598_v47  ;;  %v2608_v4 = vmax.f32 %v2606_v38, %v2607_v20  ;;  %v1362_v19 = vpop.f32.mrb[97].mxu0  ;;  %v11108_v20 = vld [vmem:[#allocation10_spill] sm:$0xff] }
 0x1a1   :  { %8310 = vmatprep.subr.bf16.mxu1 %v11075_v41  ;;  %v2622_v27 = vmax.f32 %v2620_v2, %v2621_v37  ;;  %v2274_v17 = vrot.slane %v2273_v13, 1  ;;  %v2281_v53 = vrot.slane %v2280_v32, 2  ;;  %v2295_v22 = vsel %vm1861_vm5, %v7743_v59, -inf }
 0x1a2   :  { %v2288_v40 = vrot.slane %v2287_v56, 4  ;;  %v2891_v62 = vmax.f32 %v2793_v23, 0.0  ;;  %v2294_v46 = vsel %vm1861_vm5, %v1362_v19, -inf  ;;  %v3088_v9 = vrot.slane %v2892_v16, 7  ;;  %v11110_v16 = vld [vmem:[#allocation12_spill] sm:$0xff] }
 0x1a3   :  { %v2615_v24 = vmax.f32 %v2613_v58, %v2614_v18  ;;  %v2275_v15 = vmax.f32 %v2273_v13, %v2274_v17  ;;  %v2282_v61 = vmax.f32 %v2280_v32, %v2281_v53  ;;  %v2296_v33 = vmax.f32 %v2294_v46, %v2295_v22  ;;  %v7746_v42 = vpop.f32.mrb[98].mxu0 }
 0x1a4   :  { %v2289_v8 = vmax.f32 %v2287_v56, %v2288_v40  ;;  %v2795_v3 = vadd.f32 %v9784_v21, %v2266_v57  ;;  %v3089_v47 = vsel %vm3046_vm6, %v3088_v9, %v2891_v62  ;;  %v2623_v38 = vrot.slane %v2622_v27, 2  ;;  %v1372_v58 = vpop.f32.mrb[99].mxu0 }
 0x1a5   :  { %v2628_v2 = vsel %vm1861_vm5, %v11108_v20, -inf  ;;  %v2796_v60 = vadd.f32 %v9784_v21, %v2275_v15  ;;  %v2283_v23 = vrot.slane %v2282_v61, 1  ;;  %v2297_v51 = vrot.slane %v2296_v33, 4  ;;  %3215 = vst.msk [vmem:[%s11041_s6 + $0x2a] sm:$0x3] %vm3193_vm7, %v3089_v47  ;;  %8043 = vmatmul.mubr.msk.f32.vlgmr.msra.gmra.mrb[90].mxu1 %vm1861_vm5, %v3089_v47 }
 0x1a6   :  { %v2290_v10 = vrot.slane %v2289_v8, 2  ;;  %v2304_v30 = vsel %vm1861_vm5, %v7746_v42, -inf  ;;  %v2303_v11 = vsel %vm1861_vm5, %v1372_v58, -inf  ;;  %v11109_v18 = vpack.c.bf16 %v9736_v0, %v9731_v7  ;;  %8049 = vmatprep.mubr.msk.f32.mxu1 %vm8429_vm4, %v11074_v49 }
 0x1a7   :  { %v2624_v37 = vmax.f32 %v2622_v27, %v2623_v38  ;;  %v2627_v13 = vsel %vm1861_vm5, %v11110_v16, -inf  ;;  %v2894_v32 = vmax.f32 %v2796_v60, 0.0  ;;  %v2284_v56 = vmax.f32 %v2282_v61, %v2283_v23  ;;  %v7749_v53 = vpop.f32.mrb[100].mxu0 }
 0x1a8   :  { %8312 = vmatpush3.bf16.msra.mxu1 %v11109_v18  ;;  %v2291_v57 = vmax.f32 %v2289_v8, %v2290_v10  ;;  %v2298_v59 = vmax.f32 %v2296_v33, %v2297_v51  ;;  %v2305_v17 = vmax.f32 %v2303_v11, %v2304_v30  ;;  %v10107_v40 = vadd.f32 %v9784_v21, %v2599_v29  ;;  %v1382_v62 = vpop.f32.mrb[101].mxu0  ;;  %v11111_v18 = vld [vmem:[#allocation21_spill] sm:$0xff] }
 0x1a9   :  { %8313 = vmatprep.subr.bf16.mxu1 %v11075_v41  ;;  %v10110_v7 = vadd.f32 %v9784_v21, %v2608_v4  ;;  %v2629_v0 = vmax.f32 %v2627_v13, %v2628_v2  ;;  %v2313_v19 = vsel %vm1861_vm5, %v7749_v53, -inf  ;;  %v2616_v46 = vrot.slane %v2615_v24, 1  ;;  %v11113_v13 = vld [vmem:[#allocation15_spill] sm:$0xff] }
 0x1aa   :  { %v2292_v22 = vrot.slane %v2291_v57, 1  ;;  %v2299_v27 = vrot.slane %v2298_v59, 2  ;;  %v2893_v9 = vmax.f32 %v2795_v3, 0.0  ;;  %v2306_v15 = vrot.slane %v2305_v17, 4 }
 0x1ab   :  { %v2312_v61 = vsel %vm1861_vm5, %v1382_v62, -inf  ;;  %v3090_v8 = vrot.slane %v2894_v32, 7  ;;  %v2797_v33 = vadd.f32 %v9784_v21, %v2284_v56  ;;  %v2625_v47 = vrot.slane %v2624_v37, 1  ;;  %v7752_v20 = vpop.f32.mrb[102].mxu0 }
 0x1ac   :  { %v2293_v42 = vmax.f32 %v2291_v57, %v2292_v22  ;;  %v2314_v29 = vmax.f32 %v2312_v61, %v2313_v19  ;;  %v2300_v38 = vmax.f32 %v2298_v59, %v2299_v27  ;;  %v2307_v4 = vmax.f32 %v2305_v17, %v2306_v15  ;;  %v1392_v51 = vpop.f32.mrb[103].mxu0 }
 0x1ad   :  { %v3091_v2 = vsel %vm3046_vm6, %v3090_v8, %v2893_v9  ;;  %v2630_v60 = vrot.slane %v2629_v0, 4  ;;  %v2322_v3 = vsel %vm1861_vm5, %v7752_v20, -inf  ;;  %v2617_v58 = vmax.f32 %v2615_v24, %v2616_v46 }
 0x1ae   :  { %v2798_v23 = vadd.f32 %v9784_v21, %v2293_v42  ;;  %v2315_v10 = vrot.slane %v2314_v29, 4  ;;  %3216 = vst.msk [vmem:[%s11041_s6 + $0x2c] sm:$0x3] %vm3193_vm7, %v3091_v2  ;;  %8050 = vmatmul.mubr.msk.f32.vlgmr.msra.gmra.mrb[92].mxu1 %vm1861_vm5, %v3091_v2  ;;  %v2308_v30 = vrot.slane %v2307_v4, 2  ;;  %v2321_v11 = vsel %vm1861_vm5, %v1392_v51, -inf }
 0x1af   :  { %v11112_v16 = vpack.c.bf16 %v9757_v35, %v11111_v18  ;;  %8056 = vmatprep.mubr.msk.f32.mxu1 %vm8429_vm4, %v11074_v49  ;;  %v2631_v21 = vmax.f32 %v2629_v0, %v2630_v60  ;;  %v2637_v32 = vsel %vm1861_vm5, %v11113_v13, -inf  ;;  %v2323_v59 = vmax.f32 %v2321_v11, %v2322_v3  ;;  %v7755_v27 = vpop.f32.mrb[104].mxu0  ;;  %v11114_v0 = vld [vmem:[#allocation16_spill] sm:$0xff]  ;;  %v3292_v13 = vld [vmem:[%s11038_s3 + $0x188] sm:$0xff]  ;;  %v11121_v3 = vld [vmem:[#allocation23_spill] sm:$0xff] }
 0x1b0   :  { %v2896_v56 = vmax.f32 %v2798_v23, 0.0  ;;  %v2316_v57 = vmax.f32 %v2314_v29, %v2315_v10  ;;  %v2626_v17 = vmax.f32 %v2624_v37, %v2625_v47  ;;  %v2895_v24 = vmax.f32 %v2797_v33, 0.0  ;;  %v1402_v9 = vpop.f32.mrb[105].mxu0 }
 0x1b1   :  { %8315 = vmatpush3.bf16.msra.mxu1 %v11112_v16  ;;  %v2301_v53 = vrot.slane %v2300_v38, 1  ;;  %v2309_v22 = vmax.f32 %v2307_v4, %v2308_v30  ;;  %v2632_v19 = vrot.slane %v2631_v21, 2  ;;  %v2324_v62 = vrot.slane %v2323_v59, 4  ;;  %v10142_v30 = vld [vmem:[%s11037_s2] ss:$0 sm:$0xff] }
 0x1b2   :  { %8316 = vmatprep.subr.bf16.mxu1 %v11075_v41  ;;  %v2317_v35 = vrot.slane %v2316_v57, 2  ;;  %v2331_v46 = vsel %vm1861_vm5, %v7755_v27, -inf  ;;  %v2636_v15 = vsel %vm1861_vm5, %v11114_v0, -inf  ;;  %v2330_v8 = vsel %vm1861_vm5, %v1402_v9, -inf }
 0x1b3   :  { %v2310_v61 = vrot.slane %v2309_v22, 1  ;;  %v3092_v42 = vrot.slane %v2896_v56, 7  ;;  %v2633_v37 = vmax.f32 %v2631_v21, %v2632_v19  ;;  %v2325_v47 = vmax.f32 %v2323_v59, %v2324_v62  ;;  %v7758_v2 = vpop.f32.mrb[106].mxu0  ;;  %v3291_v21 = vld [vmem:[%s11038_s3 + $0x180] sm:$0xff] }
 0x1b4   :  { %v2318_v29 = vmax.f32 %v2316_v57, %v2317_v35  ;;  %v2332_v4 = vmax.f32 %v2330_v8, %v2331_v46  ;;  %v2638_v10 = vmax.f32 %v2636_v15, %v2637_v32  ;;  %v10145_v11 = vadd.f32 %v10142_v30, %v2617_v58  ;;  %v1412_v16 = vpop.f32.mrb[107].mxu0  ;;  %v11116_v15 = vld [vmem:[#allocation17_spill] sm:$0xff] }
 0x1b5   :  { %v2311_v20 = vmax.f32 %v2309_v22, %v2310_v61  ;;  %v3093_v60 = vsel %vm3046_vm6, %v3092_v42, %v2895_v24  ;;  %v2634_v23 = vrot.slane %v2633_v37, 1  ;;  %v2340_v18 = vsel %vm1861_vm5, %v7758_v2, -inf }
 0x1b6   :  { %v2333_v51 = vrot.slane %v2332_v4, 4  ;;  %3217 = vst.msk [vmem:[%s11041_s6 + $0x2e] sm:$0x3] %vm3193_vm7, %v3093_v60  ;;  %8057 = vmatmul.mubr.msk.f32.vlgmr.msra.gmra.mrb[94].mxu1 %vm1861_vm5, %v3093_v60  ;;  %v2302_v58 = vmax.f32 %v2300_v38, %v2301_v53  ;;  %v10160_v32 = vadd.f32 %v10142_v30, %v2626_v17  ;;  %v2339_v56 = vsel %vm1861_vm5, %v1412_v16, -inf  ;;  %v11117_v16 = vld [vmem:[#allocation18_spill] sm:$0xff] }
 0x1b7   :  { %v2639_v57 = vrot.slane %v2638_v10, 4  ;;  %8063 = vmatprep.mubr.msk.f32.mxu1 %vm8429_vm4, %v11074_v49  ;;  %v2319_v59 = vrot.slane %v2318_v29, 1  ;;  %v2326_v24 = vrot.slane %v2325_v47, 2  ;;  %v2341_v27 = vmax.f32 %v2339_v56, %v2340_v18  ;;  %v7761_v62 = vpop.f32.mrb[108].mxu0 }
 0x1b8   :  { %11115 = vst [vmem:[#allocation7_spill] sm:$0xff] %v10160_v32  ;;  %v2334_v22 = vmax.f32 %v2332_v4, %v2333_v51  ;;  %v2800_v19 = vadd.f32 %v10142_v30, %v2311_v20  ;;  %v2635_v35 = vmax.f32 %v2633_v37, %v2634_v23  ;;  %v8317_v9 = vpack.c.bf16 %v3292_v13, %v3291_v21  ;;  %v1422_v0 = vpop.f32.mrb[109].mxu0 }
 0x1b9   :  { %v2640_v46 = vmax.f32 %v2638_v10, %v2639_v57  ;;  %v2342_v53 = vrot.slane %v2341_v27, 4  ;;  %v2646_v61 = vsel %vm1861_vm5, %v11116_v15, -inf  ;;  %v2799_v8 = vadd.f32 %v10142_v30, %v2302_v58 }
 0x1ba   :  { %v2335_v38 = vrot.slane %v2334_v22, 2  ;;  %v2349_v42 = vsel %vm1861_vm5, %v7761_v62, -inf  ;;  %v2348_v2 = vsel %vm1861_vm5, %v1422_v0, -inf  ;;  %8318 = vmatpush3.bf16.msra.mxu1 %v8317_v9  ;;  %v2320_v37 = vmax.f32 %v2318_v29, %v2319_v59  ;;  %v11118_v62 = vld [vmem:[#allocation19_spill] sm:$0xff]  ;;  %v11119_v9 = vld [vmem:[#allocation20_spill] sm:$0xff] }
 0x1bb   :  { %v2641_v4 = vrot.slane %v2640_v46, 2  ;;  %v2327_v20 = vmax.f32 %v2325_v47, %v2326_v24  ;;  %v2343_v23 = vmax.f32 %v2341_v27, %v2342_v53  ;;  %8319 = vmatprep.subr.bf16.mxu1 %v11075_v41  ;;  %v2898_v10 = vmax.f32 %v2800_v19, 0.0  ;;  %v7764_v13 = vpop.f32.mrb[110].mxu0 }
 0x1bc   :  { %v10175_v51 = vadd.f32 %v10142_v30, %v2635_v35  ;;  %v2350_v18 = vmax.f32 %v2348_v2, %v2349_v42  ;;  %v2645_v21 = vsel %vm1861_vm5, %v11117_v16, -inf  ;;  %v2336_v58 = vmax.f32 %v2334_v22, %v2335_v38  ;;  %v1432_v47 = vpop.f32.mrb[111].mxu0 }
 0x1bd   :  { %v2344_v56 = vrot.slane %v2343_v23, 2  ;;  %v2647_v57 = vmax.f32 %v2645_v21, %v2646_v61  ;;  %v2655_v29 = vsel %vm1861_vm5, %v11118_v62, -inf  ;;  %v2897_v59 = vmax.f32 %v2799_v8, 0.0 }
 0x1be   :  { %v2642_v24 = vmax.f32 %v2640_v46, %v2641_v4  ;;  %v2351_v27 = vrot.slane %v2350_v18, 4  ;;  %v2654_v19 = vsel %vm1861_vm5, %v11119_v9, -inf  ;;  %v10184_v35 = vadd.f32 %v10142_v30, %v2320_v37 }
 0x1bf   :  { %v2328_v53 = vrot.slane %v2327_v20, 1  ;;  %v2345_v0 = vmax.f32 %v2343_v23, %v2344_v56  ;;  %v2648_v15 = vrot.slane %v2647_v57, 4  ;;  %v2358_v22 = vsel %vm1861_vm5, %v7764_v13, -inf  ;;  %v7767_v2 = vpop.f32.mrb[112].mxu0 }
 0x1c0   :  { %v2352_v42 = vmax.f32 %v2350_v18, %v2351_v27  ;;  %v2656_v38 = vmax.f32 %v2654_v19, %v2655_v29  ;;  %v3094_v61 = vrot.slane %v2898_v10, 7  ;;  %v2337_v16 = vrot.slane %v2336_v58, 1  ;;  %v1442_v21 = vpop.f32.mrb[113].mxu0 }
 0x1c1   :  { %v2649_v46 = vmax.f32 %v2647_v57, %v2648_v15  ;;  %v2357_v4 = vsel %vm1861_vm5, %v1432_v47, -inf  ;;  %v2643_v62 = vrot.slane %v2642_v24, 1  ;;  %v2899_v23 = vmax.f32 %v10184_v35, 0.0  ;;  %v11120_v47 = vld [vmem:[#allocation22_spill] sm:$0xff] }
 0x1c2   :  { %v2353_v9 = vrot.slane %v2352_v42, 2  ;;  %v2657_v37 = vrot.slane %v2656_v38, 4  ;;  %v3095_v60 = vsel %vm3046_vm6, %v3094_v61, %v2897_v59  ;;  %v2346_v18 = vrot.slane %v2345_v0, 1 }
 0x1c3   :  { %v2650_v56 = vrot.slane %v2649_v46, 2  ;;  %3218 = vst.msk [vmem:[%s11041_s6 + $0x30] sm:$0x3] %vm3193_vm7, %v3095_v60  ;;  %8064 = vmatmul.mubr.msk.f32.vlgmr.msra.gmra.mrb[96].mxu1 %vm1861_vm5, %v3095_v60  ;;  %v2359_v10 = vmax.f32 %v2357_v4, %v2358_v22  ;;  %v2329_v13 = vmax.f32 %v2327_v20, %v2328_v53  ;;  %v2664_v27 = vsel %vm1861_vm5, %v11120_v47, -inf  ;;  %v10200_v59 = vpop.f32.mrb[114].mxu0 }
 0x1c4   :  { %v2354_v57 = vmax.f32 %v2352_v42, %v2353_v9  ;;  %v2658_v29 = vmax.f32 %v2656_v38, %v2657_v37  ;;  %8070 = vmatprep.mubr.msk.f32.mxu1 %vm8429_vm4, %v11074_v49  ;;  %v2338_v19 = vmax.f32 %v2336_v58, %v2337_v16  ;;  %v2663_v8 = vsel %vm1861_vm5, %v11121_v3, -inf  ;;  %v10204_v48 = vpop.f32.mrb[115].mxu0  ;;  %v11122_v42 = vld [vmem:[#allocation24_spill] sm:$0xff] }
 0x1c5   :  { %v2651_v15 = vmax.f32 %v2649_v46, %v2650_v56  ;;  %v2360_v61 = vrot.slane %v2359_v10, 4  ;;  %v2644_v60 = vmax.f32 %v2642_v24, %v2643_v62  ;;  %v2665_v53 = vmax.f32 %v2663_v8, %v2664_v27  ;;  %v11123_v56 = vld [vmem:[#allocation25_spill] sm:$0xff] }
 0x1c6   :  { %v2659_v20 = vrot.slane %v2658_v29, 2  ;;  %v2673_v22 = vsel %vm1861_vm5, %v11122_v42, -inf  ;;  %v2347_v38 = vmax.f32 %v2345_v0, %v2346_v18  ;;  %v2355_v4 = vrot.slane %v2354_v57, 1 }
 0x1c7   :  { %v2361_v9 = vmax.f32 %v2359_v10, %v2360_v61  ;;  %v2367_v37 = vsel %vm1861_vm5, %v7767_v2, -inf  ;;  %v2802_v58 = vadd.f32 %v10142_v30, %v2329_v13  ;;  %v2666_v46 = vrot.slane %v2665_v53, 4  ;;  %v10212_v47 = vpop.f32.mrb[116].mxu0  ;;  %v3293_v13 = vld [vmem:[%s11038_s3 + $0x190] sm:$0xff] }
 0x1c8   :  { %v2660_v16 = vmax.f32 %v2658_v29, %v2659_v20  ;;  %v2672_v3 = vsel %vm1861_vm5, %v11123_v56, -inf  ;;  %v2652_v24 = vrot.slane %v2651_v15, 1  ;;  %v2366_v27 = vsel %vm1861_vm5, %v1442_v21, -inf  ;;  %v10215_v42 = vpop.f32.mrb[117].mxu0  ;;  %v3294_v29 = vld [vmem:[%s11038_s3 + $0x198] sm:$0xff] }
 0x1c9   :  { %v2362_v62 = vrot.slane %v2361_v9, 2  ;;  %v2674_v8 = vmax.f32 %v2672_v3, %v2673_v22  ;;  %v10218_v0 = vadd.f32 %v10142_v30, %v2338_v19  ;;  %v10221_v2 = vadd.f32 %v10142_v30, %v2644_v60  ;;  %v11125_v3 = vld [vmem:[#allocation26_spill] sm:$0xff] }
 0x1ca   :  { %v2667_v18 = vmax.f32 %v2665_v53, %v2666_v46  ;;  %v2368_v10 = vmax.f32 %v2366_v27, %v2367_v37  ;;  %v10230_v21 = vadd.f32 %v10142_v30, %v2347_v38  ;;  %v2356_v61 = vmax.f32 %v2354_v57, %v2355_v4 }
 0x1cb   :  { %11124 = vst [vmem:[#allocation11_spill] sm:$0xff] %v10221_v2  ;;  %v2661_v20 = vrot.slane %v2660_v16, 1  ;;  %v2675_v19 = vrot.slane %v2674_v8, 4  ;;  %v2363_v22 = vmax.f32 %v2361_v9, %v2362_v62  ;;  %v2682_v53 = vsel %vm1861_vm5, %v11125_v3, -inf  ;;  %v10234_v37 = vpop.f32.mrb[118].mxu0 }
 0x1cc   :  { %v2668_v56 = vrot.slane %v2667_v18, 2  ;;  %v2369_v60 = vrot.slane %v2368_v10, 4  ;;  %v2900_v46 = vmax.f32 %v2802_v58, 0.0  ;;  %v2653_v27 = vmax.f32 %v2651_v15, %v2652_v24  ;;  %v10236_v33 = vpop.f32.mrb[119].mxu0 }
 0x1cd   :  { %v2676_v17 = vmax.f32 %v2674_v8, %v2675_v19  ;;  %v8320_v50 = vpack.c.bf16 %v3294_v29, %v3293_v13  ;;  %v2681_v4 = vsel %vm1861_vm5, %v9807_v36, -inf  ;;  %v2662_v9 = vmax.f32 %v2660_v16, %v2661_v20 }
 0x1ce   :  { %v2669_v55 = vmax.f32 %v2667_v18, %v2668_v56  ;;  %v2370_v57 = vmax.f32 %v2368_v10, %v2369_v60  ;;  %v2683_v45 = vmax.f32 %v2681_v4, %v2682_v53  ;;  %v2691_v3 = vsel %vm1861_vm5, %v9810_v54, -inf  ;;  %v10249_v18 = vpop.f32.mrb[48].mxu1 }
 0x1cf   :  { %v2677_v62 = vrot.slane %v2676_v17, 2  ;;  %8321 = vmatpush3.bf16.msra.mxu1 %v8320_v50  ;;  %v10246_v24 = vadd.f32 %v10142_v30, %v2356_v61  ;;  %v2364_v8 = vrot.slane %v2363_v22, 1  ;;  %v10251_v36 = vpop.f32.mrb[120].mxu0  ;;  %v10254_v50 = vadd.f32 %v10142_v30, %v2653_v27  ;;  %v7897_v13 = vpop.f32.mrb[49].mxu1 }
 0x1d0   :  { %8322 = vmatprep.subr.bf16.mxu1 %v11075_v41  ;;  %v2670_v16 = vrot.slane %v2669_v55, 1  ;;  %v2684_v10 = vrot.slane %v2683_v45, 4  ;;  %v2690_v54 = vsel %vm1861_vm5, %v9815_v52, -inf  ;;  %v10258_v29 = vpop.f32.mrb[121].mxu0  ;;  %v2371_v61 = vrot.slane %v2370_v57, 2 }
 0x1d1   :  { %11126 = vst [vmem:[#allocation5_spill] sm:$0xff] %v10254_v50  ;;  %v2376_v20 = vsel %vm1861_vm5, %v10200_v59, -inf  ;;  %v2692_v19 = vmax.f32 %v2690_v54, %v2691_v3  ;;  %v3096_v56 = vrot.slane %v2900_v46, 7  ;;  %v10263_v60 = vadd.f32 %v10142_v30, %v2662_v9 }
 0x1d2   :  { %v2678_v53 = vmax.f32 %v2676_v17, %v2677_v62  ;;  %v2685_v27 = vmax.f32 %v2683_v45, %v2684_v10  ;;  %v2375_v4 = vsel %vm1861_vm5, %v10204_v48, -inf  ;;  %v2365_v52 = vmax.f32 %v2363_v22, %v2364_v8  ;;  %v11128_v48 = vld [vmem:[#allocation27_spill] sm:$0xff]  ;;  %v11129_v62 = vld [vmem:[#allocation28_spill] sm:$0xff] }
 0x1d3   :  { %11127 = vst [vmem:[#allocation6_spill] sm:$0xff] %v10263_v60  ;;  %v2693_v13 = vrot.slane %v2692_v19, 4  ;;  %v3097_v28 = vsel %vm3046_vm6, %v3096_v56, %v2899_v23  ;;  %v10271_v12 = vpop.f32.mrb[122].mxu0  ;;  %v2671_v59 = vmax.f32 %v2669_v55, %v2670_v16  ;;  %v2377_v45 = vmax.f32 %v2375_v4, %v2376_v20  ;;  %v11130_v56 = vld [vmem:[#allocation29_spill] sm:$0xff] }
 0x1d4   :  { %v2686_v46 = vrot.slane %v2685_v27, 2  ;;  %3219 = vst.msk [vmem:[%s11041_s6 + $0x32] sm:$0x3] %vm3193_vm7, %v3097_v28  ;;  %8071 = vmatmul.mubr.msk.f32.vlgmr.msra.gmra.mrb[98].mxu1 %vm1861_vm5, %v3097_v28  ;;  %v2700_v17 = vsel %vm1861_vm5, %v11128_v48, -inf  ;;  %v10280_v22 = vpop.f32.mrb[123].mxu0  ;;  %v2372_v23 = vmax.f32 %v2370_v57, %v2371_v61  ;;  %v2699_v55 = vsel %vm1861_vm5, %v11129_v62, -inf }
 0x1d5   :  { %v2694_v9 = vmax.f32 %v2692_v19, %v2693_v13  ;;  %8077 = vmatprep.mubr.msk.f32.mxu1 %vm8429_vm4, %v11074_v49  ;;  %v2679_v8 = vrot.slane %v2678_v53, 1  ;;  %v2378_v28 = vrot.slane %v2377_v45, 4  ;;  %v2701_v16 = vmax.f32 %v2699_v55, %v2700_v17 }
 0x1d6   :  { %v10289_v10 = vadd.f32 %v10142_v30, %v2365_v52  ;;  %v2687_v54 = vmax.f32 %v2685_v27, %v2686_v46  ;;  %v2709_v57 = vsel %vm1861_vm5, %v11130_v56, -inf  ;;  %v10298_v4 = vadd.f32 %v10142_v30, %v2671_v59  ;;  %v3295_v27 = vld [vmem:[%s11038_s3 + $0x1a0] sm:$0xff]  ;;  %v3296_v52 = vld [vmem:[%s11038_s3 + $0x1a8] sm:$0xff] }
 0x1d7   :  { %v2695_v20 = vrot.slane %v2694_v9, 2  ;;  %v10293_v61 = vpop.f32.mrb[50].mxu1  ;;  %v10295_v19 = vpop.f32.mrb[124].mxu0  ;;  %v2379_v13 = vmax.f32 %v2377_v45, %v2378_v28  ;;  %v2702_v48 = vrot.slane %v2701_v16, 4  ;;  %v2385_v17 = vsel %vm1861_vm5, %v10212_v47, -inf  ;;  %v11131_v59 = vld [vmem:[#allocation30_spill] sm:$0xff] }
 0x1d8   :  { %v7904_v46 = vpop.f32.mrb[51].mxu1  ;;  %v10308_v62 = vpop.f32.mrb[125].mxu0  ;;  %v2373_v55 = vrot.slane %v2372_v23, 1  ;;  %v2708_v45 = vsel %vm1861_vm5, %v11131_v59, -inf  ;;  %v2384_v28 = vsel %vm1861_vm5, %v10215_v42, -inf  ;;  %v2680_v47 = vmax.f32 %v2678_v53, %v2679_v8 }
 0x1d9   :  { %v2696_v56 = vmax.f32 %v2694_v9, %v2695_v20  ;;  %v2380_v3 = vrot.slane %v2379_v13, 2  ;;  %v2703_v35 = vmax.f32 %v2701_v16, %v2702_v48  ;;  %v2710_v14 = vmax.f32 %v2708_v45, %v2709_v57 }
 0x1da   :  { %v2688_v58 = vrot.slane %v2687_v54, 1  ;;  %v2386_v15 = vmax.f32 %v2384_v28, %v2385_v17  ;;  %v8323_v60 = vpack.c.bf16 %v3296_v52, %v3295_v27  ;;  %v2718_v9 = vsel %vm1861_vm5, %v9851_v43, -inf }
 0x1db   :  { %v2697_v38 = vrot.slane %v2696_v56, 1  ;;  %v10314_v2 = vpop.f32.mrb[126].mxu0  ;;  %v2381_v46 = vmax.f32 %v2379_v13, %v2380_v3  ;;  %v2704_v32 = vrot.slane %v2703_v35, 2  ;;  %v2711_v50 = vrot.slane %v2710_v14, 4  ;;  %v11132_v3 = vld [vmem:[#allocation31_spill] sm:$0xff] }
 0x1dc   :  { %v10318_v20 = vpop.f32.mrb[127].mxu0  ;;  %v2387_v8 = vrot.slane %v2386_v15, 4  ;;  %8324 = vmatpush3.bf16.msra.mxu1 %v8323_v60  ;;  %v2717_v16 = vsel %vm1861_vm5, %v9873_v25, -inf  ;;  %v2727_v13 = vsel %vm1861_vm5, %v11132_v3, -inf  ;;  %v10328_v43 = vadd.f32 %v10142_v30, %v2680_v47 }
 0x1dd   :  { %v2382_v57 = vrot.slane %v2381_v46, 1  ;;  %v2705_v48 = vmax.f32 %v2703_v35, %v2704_v32  ;;  %v2712_v17 = vmax.f32 %v2710_v14, %v2711_v50  ;;  %8325 = vmatprep.subr.bf16.mxu1 %v11075_v41  ;;  %v2374_v27 = vmax.f32 %v2372_v23, %v2373_v55  ;;  %v11134_v32 = vld [vmem:[#allocation32_spill] sm:$0xff] }
 0x1de   :  { %11133 = vst [vmem:[#allocation14_spill] sm:$0xff] %v10328_v43  ;;  %v2388_v52 = vmax.f32 %v2386_v15, %v2387_v8  ;;  %v2719_v59 = vmax.f32 %v2717_v16, %v2718_v9  ;;  %v2689_v28 = vmax.f32 %v2687_v54, %v2688_v58  ;;  %v2698_v25 = vmax.f32 %v2696_v56, %v2697_v38 }
 0x1df   :  { %v10330_v45 = vpop.f32.mrb[52].mxu1  ;;  %v10332_v60 = vpop.f32.mrb[128].mxu0  ;;  %v2713_v53 = vrot.slane %v2712_v17, 2  ;;  %v2726_v14 = vsel %vm1861_vm5, %v11134_v32, -inf  ;;  %v2394_v23 = vsel %vm1861_vm5, %v10234_v37, -inf  ;;  %v2383_v55 = vmax.f32 %v2381_v46, %v2382_v57 }
 0x1e0   :  { %v7911_v50 = vpop.f32.mrb[53].mxu1  ;;  %v10336_v35 = vpop.f32.mrb[129].mxu0  ;;  %v2389_v3 = vrot.slane %v2388_v52, 2  ;;  %v2720_v42 = vrot.slane %v2719_v59, 4  ;;  %v2728_v15 = vmax.f32 %v2726_v14, %v2727_v13  ;;  %v2706_v47 = vrot.slane %v2705_v48, 1 }
 0x1e1   :  { %v2714_v9 = vmax.f32 %v2712_v17, %v2713_v53  ;;  %v11135_v8 = vmax.f32 %v10230_v21, 0.0  ;;  %v2393_v16 = vsel %vm1861_vm5, %v10236_v33, -inf  ;;  %v10347_v50 = vadd.f32 %v10142_v30, %v2374_v27 }
 0x1e2   :  { %v2390_v38 = vmax.f32 %v2388_v52, %v2389_v3  ;;  %v2721_v54 = vmax.f32 %v2719_v59, %v2720_v42  ;;  %v2729_v56 = vrot.slane %v2728_v15, 4  ;;  %v10350_v37 = vadd.f32 %v10142_v30, %v2689_v28 }
 0x1e3   :  { %v3098_v58 = vrot.slane %v11135_v8, 7  ;;  %v10344_v32 = vpop.f32.mrb[130].mxu0  ;;  %v10353_v46 = vadd.f32 %v10142_v30, %v2698_v25  ;;  %v11137_v21 = vmax.f32 %v10218_v0, 0.0  ;;  %v2395_v13 = vmax.f32 %v2393_v16, %v2394_v23 }
 0x1e4   :  { %v10358_v42 = vpop.f32.mrb[131].mxu0  ;;  %v2391_v57 = vrot.slane %v2390_v38, 1  ;;  %v2722_v17 = vrot.slane %v2721_v54, 2  ;;  %v2730_v33 = vmax.f32 %v2728_v15, %v2729_v56  ;;  %v10366_v27 = vadd.f32 %v10142_v30, %v2383_v55 }
 0x1e5   :  { %11136 = vst [vmem:[#allocation13_spill] sm:$0xff] %v10353_v46  ;;  %v3099_v53 = vsel %vm3046_vm6, %v3098_v58, %v11137_v21  ;;  %v2707_v52 = vmax.f32 %v2705_v48, %v2706_v47  ;;  %v2736_v0 = vsel %vm1861_vm5, %v9903_v6, -inf  ;;  %v2735_v59 = vsel %vm1861_vm5, %v9908_v34, -inf  ;;  %v3297_v21 = vld [vmem:[%s11038_s3 + $0x1b0] sm:$0xff] }
 0x1e6   :  { %3220 = vst.msk [vmem:[%s11041_s6 + $0x34] sm:$0x3] %vm3193_vm7, %v3099_v53  ;;  %8078 = vmatmul.mubr.msk.f32.vlgmr.msra.gmra.mrb[100].mxu1 %vm1861_vm5, %v3099_v53  ;;  %v2715_v25 = vrot.slane %v2714_v9, 1  ;;  %v2392_v14 = vmax.f32 %v2390_v38, %v2391_v57  ;;  %v2396_v3 = vrot.slane %v2395_v13, 4  ;;  %v10375_v15 = vpop.f32.mrb[54].mxu1  ;;  %v2723_v6 = vmax.f32 %v2721_v54, %v2722_v17  ;;  %v3298_v53 = vld [vmem:[%s11038_s3 + $0x1b8] sm:$0xff] }
 0x1e7   :  { %8084 = vmatprep.mubr.msk.f32.mxu1 %vm8429_vm4, %v11074_v49  ;;  %v10377_v23 = vpop.f32.mrb[132].mxu0  ;;  %v2737_v47 = vmax.f32 %v2735_v59, %v2736_v0  ;;  %v7918_v8 = vpop.f32.mrb[55].mxu1  ;;  %v2731_v56 = vrot.slane %v2730_v33, 2  ;;  %v2403_v38 = vsel %vm1861_vm5, %v10251_v36, -inf  ;;  %v2906_v54 = vmax.f32 %v10366_v27, 0.0 }
 0x1e8   :  { %v10381_v34 = vpop.f32.mrb[133].mxu0  ;;  %v2397_v16 = vmax.f32 %v2395_v13, %v2396_v3  ;;  %v10394_v57 = vadd.f32 %v10142_v30, %v2707_v52  ;;  %v2402_v13 = vsel %vm1861_vm5, %v10258_v29, -inf  ;;  %v10398_v0 = vmax.f32 %v2714_v9, %v2715_v25 }
 0x1e9   :  { %v2738_v17 = vrot.slane %v2737_v47, 4  ;;  %v10401_v36 = vadd.f32 %v10142_v30, %v2392_v14  ;;  %v2724_v8 = vrot.slane %v2723_v6, 1  ;;  %v2404_v28 = vmax.f32 %v2402_v13, %v2403_v38 }
 0x1ea   :  { %v2398_v59 = vrot.slane %v2397_v16, 2  ;;  %v8326_v27 = vpack.c.bf16 %v3298_v53, %v3297_v21  ;;  %v2732_v52 = vmax.f32 %v2730_v33, %v2731_v56  ;;  %v2412_v29 = vsel %vm1861_vm5, %v10271_v12, -inf }
 0x1eb   :  { %v10403_v3 = vpop.f32.mrb[134].mxu0  ;;  %v2739_v58 = vmax.f32 %v2737_v47, %v2738_v17  ;;  %v11138_v9 = vmax.f32 %v10289_v10, 0.0  ;;  %v2405_v46 = vrot.slane %v2404_v28, 4  ;;  %v2411_v43 = vsel %vm1861_vm5, %v10280_v22, -inf }
 0x1ec   :  { %v10405_v55 = vpop.f32.mrb[135].mxu0  ;;  %v2399_v48 = vmax.f32 %v2397_v16, %v2398_v59  ;;  %8327 = vmatpush3.bf16.msra.mxu1 %v8326_v27  ;;  %v6871_v47 = vsel %vm6869_vm8, %v10293_v61, 0.0  ;;  %v2907_v38 = vmax.f32 %v10401_v36, 0.0  ;;  %v6870_v33 = vsel %vm6869_vm8, %v10249_v18, 0.0  ;;  %v3300_v18 = vld [vmem:[%s11038_s3 + $0x1c8] sm:$0xff] }
 0x1ed   :  { %v3100_v25 = vrot.slane %v11138_v9, 7  ;;  %v2740_v14 = vrot.slane %v2739_v58, 2  ;;  %v11139_v12 = vmax.f32 %v10246_v24, 0.0  ;;  %8328 = vmatprep.subr.bf16.mxu1 %v11075_v41  ;;  %v2406_v53 = vmax.f32 %v2404_v28, %v2405_v46  ;;  %v3299_v24 = vld [vmem:[%s11038_s3 + $0x1c0] sm:$0xff]  ;;  %v3304_v36 = vld [vmem:[%s11038_s3 + $0x1e8] sm:$0xff] }
 0x1ee   :  { %v2400_v21 = vrot.slane %v2399_v48, 1  ;;  %v2413_v61 = vmax.f32 %v2411_v43, %v2412_v29  ;;  %v6872_v17 = vadd.f32 %v6871_v47, %v6870_v33  ;;  %v2421_v28 = vsel %vm1861_vm5, %v10295_v19, -inf }
 0x1ef   :  { %v3101_v10 = vsel %vm3046_vm6, %v3100_v25, %v11139_v12  ;;  %v10422_v56 = vpop.f32.mrb[56].mxu1  ;;  %v10424_v16 = vpop.f32.mrb[136].mxu0  ;;  %v2741_v22 = vmax.f32 %v2739_v58, %v2740_v14  ;;  %v2733_v58 = vrot.slane %v2732_v52, 1  ;;  %v2420_v43 = vsel %vm1861_vm5, %v10308_v62, -inf }
 0x1f0   :  { %3221 = vst.msk [vmem:[%s11041_s6 + $0x36] sm:$0x3] %vm3193_vm7, %v3101_v10  ;;  %v7925_v13 = vpop.f32.mrb[57].mxu1  ;;  %v10436_v59 = vpop.f32.mrb[137].mxu0  ;;  %v2401_v46 = vmax.f32 %v2399_v48, %v2400_v21  ;;  %8085 = vmatmul.mubr.msk.f32.vlgmr.msra.gmra.mrb[102].mxu1 %vm1861_vm5, %v3101_v10  ;;  %v10443_v27 = vmax.f32 %v2723_v6, %v2724_v8  ;;  %v2407_v29 = vrot.slane %v2406_v53, 2  ;;  %v2414_v9 = vrot.slane %v2413_v61, 4 }
 0x1f1   :  { %v2422_v25 = vmax.f32 %v2420_v43, %v2421_v28  ;;  %8091 = vmatprep.mubr.msk.f32.mxu1 %vm8429_vm4, %v11074_v49  ;;  %v2742_v47 = vrot.slane %v2741_v22, 1  ;;  %v8329_v48 = vpack.c.bf16 %v3300_v18, %v3299_v24  ;;  %v3102_v21 = vrot.slane %v2906_v54, 7 }
 0x1f2   :  { %v2810_v14 = vadd.f32 %v10142_v30, %v2401_v46  ;;  %v2408_v12 = vmax.f32 %v2406_v53, %v2407_v29  ;;  %v2415_v19 = vmax.f32 %v2413_v61, %v2414_v9  ;;  %v2430_v62 = vsel %vm1861_vm5, %v10314_v2, -inf  ;;  %v3301_v2 = vld [vmem:[%s11038_s3 + $0x1d0] sm:$0xff] }
 0x1f3   :  { %v10448_v33 = vpop.f32.mrb[138].mxu0  ;;  %v2423_v10 = vrot.slane %v2422_v25, 4  ;;  %v10454_v8 = vmax.f32 %v2732_v52, %v2733_v58  ;;  %8330 = vmatpush3.bf16.msra.mxu1 %v8329_v48  ;;  %v11140_v13 = vmax.f32 %v10347_v50, 0.0  ;;  %v2429_v54 = vsel %vm1861_vm5, %v10318_v20, -inf  ;;  %v3302_v20 = vld [vmem:[%s11038_s3 + $0x1d8] sm:$0xff] }
 0x1f4   :  { %v10452_v6 = vpop.f32.mrb[139].mxu0  ;;  %v6873_v53 = vsel %vm6869_vm8, %v10330_v45, 0.0  ;;  %v2908_v61 = vmax.f32 %v2810_v14, 0.0  ;;  %v2409_v24 = vrot.slane %v2408_v12, 1  ;;  %v2416_v18 = vrot.slane %v2415_v19, 2  ;;  %8331 = vmatprep.subr.bf16.mxu1 %v11075_v41 }
 0x1f5   :  { %v3103_v46 = vsel %vm3046_vm6, %v3102_v21, %v11140_v13  ;;  %v2424_v28 = vmax.f32 %v2422_v25, %v2423_v10  ;;  %v2431_v45 = vmax.f32 %v2429_v54, %v2430_v62  ;;  %v6874_v50 = vadd.f32 %v6873_v53, %v6872_v17 }
 0x1f6   :  { %3222 = vst.msk [vmem:[%s11041_s6 + $0x38] sm:$0x3] %vm3193_vm7, %v3103_v46  ;;  %v2439_v52 = vsel %vm1861_vm5, %v10332_v60, -inf  ;;  %v2438_v58 = vsel %vm1861_vm5, %v10336_v35, -inf  ;;  %v10478_v43 = vpop.f32.mrb[58].mxu1  ;;  %v10482_v9 = vmax.f32 %v2741_v22, %v2742_v47  ;;  %v2410_v25 = vmax.f32 %v2408_v12, %v2409_v24  ;;  %8092 = vmatmul.mubr.msk.f32.vlgmr.msra.gmra.mrb[104].mxu1 %vm1861_vm5, %v3103_v46 }
 0x1f7   :  { %v10480_v29 = vpop.f32.mrb[140].mxu0  ;;  %v2417_v14 = vmax.f32 %v2415_v19, %v2416_v18  ;;  %v2425_v48 = vrot.slane %v2424_v28, 2  ;;  %v7932_v21 = vpop.f32.mrb[59].mxu1  ;;  %v2432_v17 = vrot.slane %v2431_v45, 4  ;;  %v2440_v62 = vmax.f32 %v2438_v58, %v2439_v52  ;;  %8098 = vmatprep.mubr.msk.f32.mxu1 %vm8429_vm4, %v11074_v49  ;;  %v3303_v52 = vld [vmem:[%s11038_s3 + $0x1e0] sm:$0xff] }
 0x1f8   :  { %v10485_v10 = vpop.f32.mrb[141].mxu0  ;;  %v8332_v60 = vpack.c.bf16 %v3302_v20, %v3301_v2  ;;  %v2448_v35 = vsel %vm1861_vm5, %v10344_v32, -inf  ;;  %v2811_v22 = vadd.f32 %v10142_v30, %v2410_v25  ;;  %v3104_v19 = vrot.slane %v2908_v61, 7 }
 0x1f9   :  { %v2418_v47 = vrot.slane %v2417_v14, 1  ;;  %v2426_v12 = vmax.f32 %v2424_v28, %v2425_v48  ;;  %v2433_v13 = vmax.f32 %v2431_v45, %v2432_v17  ;;  %v2441_v54 = vrot.slane %v2440_v62, 4 }
 0x1fa   :  { %8333 = vmatpush3.bf16.msra.mxu1 %v8332_v60  ;;  %v2447_v46 = vsel %vm1861_vm5, %v10358_v42, -inf  ;;  %v6875_v53 = vsel %vm6869_vm8, %v10375_v15, 0.0  ;;  %v2909_v18 = vmax.f32 %v2811_v22, 0.0  ;;  %v3105_v32 = vsel %vm3046_vm6, %v3104_v19, %v2907_v38 }
 0x1fb   :  { %v10496_v24 = vpop.f32.mrb[142].mxu0  ;;  %v2419_v2 = vmax.f32 %v2417_v14, %v2418_v47  ;;  %v2427_v20 = vrot.slane %v2426_v12, 1  ;;  %8334 = vmatprep.subr.bf16.mxu1 %v11075_v41  ;;  %v2434_v28 = vrot.slane %v2433_v13, 2  ;;  %v2442_v45 = vmax.f32 %v2440_v62, %v2441_v54  ;;  %3223 = vst.msk [vmem:[%s11041_s6 + $0x3a] sm:$0x3] %vm3193_vm7, %v3105_v32 }
 0x1fc   :  { %v10502_v61 = vpop.f32.mrb[143].mxu0  ;;  %v2449_v42 = vmax.f32 %v2447_v46, %v2448_v35  ;;  %v6876_v15 = vadd.f32 %v6875_v53, %v6874_v50  ;;  %v2457_v25 = vsel %vm1861_vm5, %v10377_v23, -inf  ;;  %v2456_v14 = vsel %vm1861_vm5, %v10381_v34, -inf }
 0x1fd   :  { %v2812_v38 = vadd.f32 %v10142_v30, %v2419_v2  ;;  %v2428_v58 = vmax.f32 %v2426_v12, %v2427_v20  ;;  %8099 = vmatmul.mubr.msk.f32.vlgmr.msra.gmra.mrb[106].mxu1 %vm1861_vm5, %v3105_v32  ;;  %v2435_v50 = vmax.f32 %v2433_v13, %v2434_v28  ;;  %v2443_v48 = vrot.slane %v2442_v45, 2 }
 0x1fe   :  { %v2450_v21 = vrot.slane %v2449_v42, 4  ;;  %v2458_v17 = vmax.f32 %v2456_v14, %v2457_v25  ;;  %8105 = vmatprep.mubr.msk.f32.mxu1 %vm8429_vm4, %v11074_v49  ;;  %v8335_v47 = vpack.c.bf16 %v3304_v36, %v3303_v52  ;;  %v2466_v23 = vsel %vm1861_vm5, %v10403_v3, -inf }
 0x1ff   :  { %v10522_v62 = vpop.f32.mrb[60].mxu1  ;;  %v10524_v60 = vpop.f32.mrb[144].mxu0  ;;  %v2910_v35 = vmax.f32 %v2812_v38, 0.0  ;;  %v10527_v22 = vadd.f32 %v10142_v30, %v2428_v58  ;;  %v2436_v19 = vrot.slane %v2435_v50, 1  ;;  %v2444_v13 = vmax.f32 %v2442_v45, %v2443_v48  ;;  %v3305_v45 = vld [vmem:[%s11038_s3 + $0x1f0] sm:$0xff] }
 0x200   :  { %v7939_v34 = vpop.f32.mrb[61].mxu1  ;;  %v10531_v12 = vpop.f32.mrb[145].mxu0  ;;  %v2451_v54 = vmax.f32 %v2449_v42, %v2450_v21  ;;  %v2459_v46 = vrot.slane %v2458_v17, 4  ;;  %8336 = vmatpush3.bf16.msra.mxu1 %v8335_v47  ;;  %v2465_v20 = vsel %vm1861_vm5, %v10405_v55, -inf  ;;  %v6877_v32 = vsel %vm6869_vm8, %v10422_v56, 0.0  ;;  %v3306_v42 = vld [vmem:[%s11038_s3 + $0x1f8] sm:$0xff] }
 0x201   :  { %v2911_v53 = vmax.f32 %v10527_v22, 0.0  ;;  %v3106_v2 = vrot.slane %v2910_v35, 7  ;;  %v2437_v28 = vmax.f32 %v2435_v50, %v2436_v19  ;;  %v2445_v52 = vrot.slane %v2444_v13, 1  ;;  %8337 = vmatprep.subr.bf16.mxu1 %v11075_v41 }
 0x202   :  { %v2452_v3 = vrot.slane %v2451_v54, 2  ;;  %v2460_v36 = vmax.f32 %v2458_v17, %v2459_v46  ;;  %v2467_v58 = vmax.f32 %v2465_v20, %v2466_v23  ;;  %v6878_v56 = vadd.f32 %v6877_v32, %v6876_v15 }
 0x203   :  { %v10545_v38 = vpop.f32.mrb[146].mxu0  ;;  %v3107_v55 = vsel %vm3046_vm6, %v3106_v2, %v2909_v18  ;;  %v2475_v25 = vsel %vm1861_vm5, %v10424_v16, -inf  ;;  %v2814_v50 = vadd.f32 %v10142_v30, %v2437_v28  ;;  %v2446_v48 = vmax.f32 %v2444_v13, %v2445_v52 }
 0x204   :  { %v10550_v14 = vpop.f32.mrb[147].mxu0  ;;  %v2453_v21 = vmax.f32 %v2451_v54, %v2452_v3  ;;  %v2461_v17 = vrot.slane %v2460_v36, 2  ;;  %3224 = vst.msk [vmem:[%s11041_s6 + $0x3c] sm:$0x3] %vm3193_vm7, %v3107_v55  ;;  %8106 = vmatmul.mubr.msk.f32.vlgmr.msra.gmra.mrb[108].mxu1 %vm1861_vm5, %v3107_v55  ;;  %v2468_v18 = vrot.slane %v2467_v58, 4  ;;  %v2474_v15 = vsel %vm1861_vm5, %v10436_v59, -inf }
 0x205   :  { %v8338_v35 = vpack.c.bf16 %v3306_v42, %v3305_v45  ;;  %8112 = vmatprep.mubr.msk.f32.mxu1 %vm8429_vm4, %v11074_v49  ;;  %v2484_v16 = vsel %vm1861_vm5, %v10448_v33, -inf  ;;  %v2912_v22 = vmax.f32 %v2814_v50, 0.0  ;;  %v2815_v47 = vadd.f32 %v10142_v30, %v2446_v48  ;;  %v3307_v42 = vld [vmem:[%s11038_s3 + $0x200] sm:$0xff] }
 0x206   :  { %v2454_v23 = vrot.slane %v2453_v21, 1  ;;  %v2462_v34 = vmax.f32 %v2460_v36, %v2461_v17  ;;  %v10565_v19 = vpop.f32.mrb[62].mxu1  ;;  %v2469_v13 = vmax.f32 %v2467_v58, %v2468_v18  ;;  %v2476_v54 = vmax.f32 %v2474_v15, %v2475_v25 }
 0x207   :  { %8339 = vmatpush3.bf16.msra.mxu1 %v8338_v35  ;;  %v2483_v59 = vsel %vm1861_vm5, %v10452_v6, -inf  ;;  %v6879_v46 = vsel %vm6869_vm8, %v10478_v43, 0.0  ;;  %v7946_v2 = vpop.f32.mrb[63].mxu1  ;;  %v2913_v20 = vmax.f32 %v2815_v47, 0.0  ;;  %v3108_v28 = vrot.slane %v2912_v22, 7  ;;  %v3308_v6 = vld [vmem:[%s11038_s3 + $0x208] sm:$0xff] }
 0x208   :  { %v2455_v32 = vmax.f32 %v2453_v21, %v2454_v23  ;;  %v2463_v33 = vrot.slane %v2462_v34, 1  ;;  %8340 = vmatprep.subr.bf16.mxu1 %v11075_v41  ;;  %v2470_v52 = vrot.slane %v2469_v13, 2  ;;  %v2477_v3 = vrot.slane %v2476_v54, 4 }
 0x209   :  { %v2485_v36 = vmax.f32 %v2483_v59, %v2484_v16  ;;  %v6880_v45 = vadd.f32 %v6879_v46, %v6878_v56  ;;  %v3109_v58 = vsel %vm3046_vm6, %v3108_v28, %v2911_v53  ;;  %v2493_v25 = vsel %vm1861_vm5, %v10480_v29, -inf }
 0x20a   :  { %v2816_v43 = vadd.f32 %v10142_v30, %v2455_v32  ;;  %v2464_v55 = vmax.f32 %v2462_v34, %v2463_v33  ;;  %v2471_v50 = vmax.f32 %v2469_v13, %v2470_v52  ;;  %v2478_v48 = vmax.f32 %v2476_v54, %v2477_v3  ;;  %3225 = vst.msk [vmem:[%s11041_s6 + $0x3e] sm:$0x3] %vm3193_vm7, %v3109_v58  ;;  %v3310_v32 = vld [vmem:[%s11038_s3 + $0x218] sm:$0xff] }
 0x20b   :  { %8113 = vmatmul.mubr.msk.f32.vlgmr.msra.gmra.mrb[110].mxu1 %vm1861_vm5, %v3109_v58  ;;  %v2486_v56 = vrot.slane %v2485_v36, 4  ;;  %v2492_v21 = vsel %vm1861_vm5, %v10485_v10, -inf  ;;  %v8341_v15 = vpack.c.bf16 %v3308_v6, %v3307_v42  ;;  %v2502_v22 = vsel %vm1861_vm5, %v10496_v24, -inf  ;;  %v3309_v24 = vld [vmem:[%s11038_s3 + $0x210] sm:$0xff] }
 0x20c   :  { %v2914_v17 = vmax.f32 %v2816_v43, 0.0  ;;  %v10590_v18 = vadd.f32 %v10142_v30, %v2464_v55  ;;  %v2494_v53 = vmax.f32 %v2492_v21, %v2493_v25  ;;  %8119 = vmatprep.mubr.msk.f32.mxu1 %vm8429_vm4, %v11074_v49  ;;  %v2472_v29 = vrot.slane %v2471_v50, 1 }
 0x20d   :  { %v2479_v35 = vrot.slane %v2478_v48, 2  ;;  %v2487_v16 = vmax.f32 %v2485_v36, %v2486_v56  ;;  %8342 = vmatpush3.bf16.msra.mxu1 %v8341_v15  ;;  %v2501_v34 = vsel %vm1861_vm5, %v10502_v61, -inf  ;;  %v6881_v52 = vsel %vm6869_vm8, %v10522_v62, 0.0 }
 0x20e   :  { %v2915_v47 = vmax.f32 %v10590_v18, 0.0  ;;  %v2495_v23 = vrot.slane %v2494_v53, 4  ;;  %v3110_v10 = vrot.slane %v2914_v17, 7  ;;  %v2473_v54 = vmax.f32 %v2471_v50, %v2472_v29  ;;  %8343 = vmatprep.subr.bf16.mxu1 %v11075_v41 }
 0x20f   :  { %v10599_v13 = vpop.f32.mrb[64].mxu1  ;;  %v2480_v59 = vmax.f32 %v2478_v48, %v2479_v35  ;;  %v2488_v46 = vrot.slane %v2487_v16, 2  ;;  %v2503_v2 = vmax.f32 %v2501_v34, %v2502_v22  ;;  %v2511_v3 = vsel %vm1861_vm5, %v10524_v60, -inf  ;;  %v3312_v22 = vld [vmem:[%s11038_s3 + $0x228] sm:$0xff] }
 0x210   :  { %v7953_v33 = vpop.f32.mrb[65].mxu1  ;;  %v2496_v28 = vmax.f32 %v2494_v53, %v2495_v23  ;;  %v3111_v61 = vsel %vm3046_vm6, %v3110_v10, %v2913_v20  ;;  %v2818_v36 = vadd.f32 %v10142_v30, %v2473_v54  ;;  %v6882_v20 = vadd.f32 %v6881_v52, %v6880_v45 }
 0x211   :  { %v2481_v42 = vrot.slane %v2480_v59, 1  ;;  %v2489_v6 = vmax.f32 %v2487_v16, %v2488_v46  ;;  %3226 = vst.msk [vmem:[%s11041_s6 + $0x40] sm:$0x3] %vm3193_vm7, %v3111_v61  ;;  %8120 = vmatmul.mubr.msk.f32.vlgmr.msra.gmra.mrb[112].mxu1 %vm1861_vm5, %v3111_v61  ;;  %v2504_v43 = vrot.slane %v2503_v2, 4  ;;  %v2510_v62 = vsel %vm1861_vm5, %v10531_v12, -inf  ;;  %v3313_v33 = vld [vmem:[%s11038_s3 + $0x230] sm:$0xff] }
 0x212   :  { %v2497_v55 = vrot.slane %v2496_v28, 2  ;;  %v8344_v58 = vpack.c.bf16 %v3310_v32, %v3309_v24  ;;  %8126 = vmatprep.mubr.msk.f32.mxu1 %vm8429_vm4, %v11074_v49  ;;  %v2916_v30 = vmax.f32 %v2818_v36, 0.0  ;;  %v2512_v56 = vmax.f32 %v2510_v62, %v2511_v3  ;;  %v10630_v12 = vld [vmem:[%s11037_s2] ss:$0 sm:$0xff] }
 0x213   :  { %v2482_v60 = vmax.f32 %v2480_v59, %v2481_v42  ;;  %v2490_v25 = vrot.slane %v2489_v6, 1  ;;  %v2505_v50 = vmax.f32 %v2503_v2, %v2504_v43  ;;  %v2520_v21 = vsel %vm1861_vm5, %v10545_v38, -inf }
 0x214   :  { %v2498_v48 = vmax.f32 %v2496_v28, %v2497_v55  ;;  %8345 = vmatpush3.bf16.msra.mxu1 %v8344_v58  ;;  %v2519_v45 = vsel %vm1861_vm5, %v10550_v14, -inf  ;;  %v3112_v15 = vrot.slane %v2916_v30, 7  ;;  %v2513_v35 = vrot.slane %v2512_v56, 4  ;;  %v3311_v14 = vld [vmem:[%s11038_s3 + $0x220] sm:$0xff] }
 0x215   :  { %v2819_v17 = vadd.f32 %v10630_v12, %v2482_v60  ;;  %v2491_v18 = vmax.f32 %v2489_v6, %v2490_v25  ;;  %v2506_v53 = vrot.slane %v2505_v50, 2  ;;  %8346 = vmatprep.subr.bf16.mxu1 %v11075_v41  ;;  %v2521_v16 = vmax.f32 %v2519_v45, %v2520_v21 }
 0x216   :  { %v2499_v29 = vrot.slane %v2498_v48, 1  ;;  %v6883_v38 = vsel %vm6869_vm8, %v10565_v19, 0.0  ;;  %v3113_v59 = vsel %vm3046_vm6, %v3112_v15, %v2915_v47  ;;  %v2514_v24 = vmax.f32 %v2512_v56, %v2513_v35  ;;  %v3314_v47 = vld [vmem:[%s11038_s3 + $0x238] sm:$0xff] }
 0x217   :  { %v2917_v10 = vmax.f32 %v2819_v17, 0.0  ;;  %v2820_v34 = vadd.f32 %v10630_v12, %v2491_v18  ;;  %v2507_v54 = vmax.f32 %v2505_v50, %v2506_v53  ;;  %3227 = vst.msk [vmem:[%s11041_s6 + $0x42] sm:$0x3] %vm3193_vm7, %v3113_v59  ;;  %8127 = vmatmul.mubr.msk.f32.vlgmr.msra.gmra.mrb[114].mxu1 %vm1861_vm5, %v3113_v59  ;;  %v2522_v19 = vrot.slane %v2521_v16, 4 }
 0x218   :  { %v4057_v23 = vpop.f32.mrb[66].mxu1  ;;  %v2500_v2 = vmax.f32 %v2498_v48, %v2499_v29  ;;  %v6884_v32 = vadd.f32 %v6883_v38, %v6882_v20  ;;  %v8347_v52 = vpack.c.bf16 %v3312_v22, %v3311_v14  ;;  %8133 = vmatprep.mubr.msk.f32.mxu1 %vm8429_vm4, %v11074_v49  ;;  %v6885_v3 = vsel %vm6869_vm8, %v10599_v13, 0.0 }
 0x219   :  { %v7960_v46 = vpop.f32.mrb[67].mxu1  ;;  %v2918_v28 = vmax.f32 %v2820_v34, 0.0  ;;  %v2508_v61 = vrot.slane %v2507_v54, 1  ;;  %v2515_v42 = vrot.slane %v2514_v24, 2  ;;  %v2523_v6 = vmax.f32 %v2521_v16, %v2522_v19 }
 0x21a   :  { %v2821_v36 = vadd.f32 %v10630_v12, %v2500_v2  ;;  %v6886_v43 = vadd.f32 %v6885_v3, %v6884_v32  ;;  %8348 = vmatpush3.bf16.msra.mxu1 %v8347_v52  ;;  %v8350_v62 = vpack.c.bf16 %v3314_v47, %v3313_v33  ;;  %v6887_v58 = vsel %vm6869_vm8, %v4057_v23, 0.0 }
 0x21b   :  { %v2509_v55 = vmax.f32 %v2507_v54, %v2508_v61  ;;  %v3114_v20 = vrot.slane %v2918_v28, 7  ;;  %v10663_v30 = vadd.f32 %v10630_v12, %v10398_v0  ;;  %v2516_v60 = vmax.f32 %v2514_v24, %v2515_v42  ;;  %8349 = vmatprep.subr.bf16.mxu1 %v11075_v41 }
 0x21c   :  { %v2524_v25 = vrot.slane %v2523_v6, 2  ;;  %v6888_v13 = vadd.f32 %v6887_v58, %v6886_v43  ;;  %v10668_v50 = vadd.f32 %v10630_v12, %v10443_v27  ;;  %v10672_v48 = vadd.f32 %v10630_v12, %v10454_v8  ;;  %v3315_v27 = vld [vmem:[%s11038_s3 + $0x240] sm:$0xff]  ;;  %v3316_v8 = vld [vmem:[%s11038_s3 + $0x248] sm:$0xff] }
 0x21d   :  { %v2822_v56 = vadd.f32 %v10630_v12, %v2509_v55  ;;  %v3115_v21 = vsel %vm3046_vm6, %v3114_v20, %v2917_v10  ;;  %v10678_v0 = vadd.f32 %v10630_v12, %v10482_v9  ;;  %v2517_v45 = vrot.slane %v2516_v60, 1 }
 0x21e   :  { %v2525_v17 = vmax.f32 %v2523_v6, %v2524_v25  ;;  %3228 = vst.msk [vmem:[%s11041_s6 + $0x44] sm:$0x3] %vm3193_vm7, %v3115_v21  ;;  %8134 = vmatmul.mubr.msk.f32.vlgmr.msra.gmra.mrb[116].mxu1 %vm1861_vm5, %v3115_v21  ;;  %v11141_v9 = vmax.f32 %v9854_v26, 0.0  ;;  %v2919_v15 = vmax.f32 %v2821_v36, 0.0  ;;  %v11142_v38 = vmax.f32 %v9929_v39, 0.0 }
 0x21f   :  { %v4129_v18 = vpop.f32.mrb[68].mxu1  ;;  %v2920_v29 = vmax.f32 %v2822_v56, 0.0  ;;  %8351 = vmatpush3.bf16.msra.mxu1 %v8350_v62  ;;  %8140 = vmatprep.mubr.msk.f32.mxu1 %vm8429_vm4, %v11074_v49  ;;  %v2518_v22 = vmax.f32 %v2516_v60, %v2517_v45  ;;  %v11143_v26 = vmax.f32 %v9820_v31, 0.0  ;;  %v8353_v59 = vpack.c.bf16 %v3316_v8, %v3315_v27 }
 0x220   :  { %v3120_v53 = vrot.slane %v11141_v9, 7  ;;  %v6889_v35 = vsel %vm6869_vm8, %v4129_v18, 0.0  ;;  %v7967_v16 = vpop.f32.mrb[69].mxu1  ;;  %v3122_v14 = vrot.slane %v11142_v38, 7  ;;  %v2526_v23 = vrot.slane %v2525_v17, 1  ;;  %8352 = vmatprep.subr.bf16.mxu1 %v11075_v41  ;;  %v3319_v38 = vld [vmem:[%s11038_s3 + $0x260] sm:$0xff] }
 0x221   :  { %v6890_v10 = vadd.f32 %v6889_v35, %v6888_v13  ;;  %v3116_v54 = vrot.slane %v2920_v29, 7  ;;  %v11144_v39 = vmax.f32 %v9906_v63, 0.0  ;;  %v11145_v2 = vmax.f32 %v10010_v44, 0.0  ;;  %v3317_v44 = vld [vmem:[%s11038_s3 + $0x250] sm:$0xff] }
 0x222   :  { %v10702_v34 = vsel %vm3046_vm6, %v3120_v53, %v11143_v26  ;;  %v2942_v31 = vmax.f32 %v10394_v57, 0.0  ;;  %v2943_v19 = vmax.f32 %v10663_v30, 0.0  ;;  %v2527_v32 = vmax.f32 %v2525_v17, %v2526_v23  ;;  %v3318_v57 = vld [vmem:[%s11038_s3 + $0x258] sm:$0xff] }
 0x223   :  { %3231 = vst.msk [vmem:[%s11041_s6 + $0x4a] sm:$0x3] %vm3193_vm7, %v10702_v34  ;;  %v10712_v46 = vsel %vm3046_vm6, %v3122_v14, %v11144_v39  ;;  %v3124_v24 = vrot.slane %v11145_v2, 7  ;;  %v11146_v33 = vmax.f32 %v10107_v40, 0.0  ;;  %v2823_v47 = vadd.f32 %v10630_v12, %v2518_v22  ;;  %v11154_v13 = vld [vmem:[#allocation7_spill] sm:$0xff]  ;;  %v11162_v14 = vld [vmem:[#allocation14_spill] sm:$0xff] }
 0x224   :  { %3232 = vst.msk [vmem:[%s11041_s6 + $0x4c] sm:$0x3] %vm3193_vm7, %v10712_v46  ;;  %v3117_v28 = vsel %vm3046_vm6, %v3116_v54, %v2919_v15  ;;  %v11147_v61 = vmax.f32 %v9983_v1, 0.0  ;;  %v11148_v40 = vmax.f32 %v10145_v11, 0.0  ;;  %v2944_v36 = vmax.f32 %v10668_v50, 0.0  ;;  %v11157_v17 = vld [vmem:[#allocation11_spill] sm:$0xff] }
 0x225   :  { %v3126_v63 = vrot.slane %v11146_v33, 7  ;;  %v2824_v42 = vadd.f32 %v10630_v12, %v2527_v32  ;;  %3229 = vst.msk [vmem:[%s11041_s6 + $0x46] sm:$0x3] %vm3193_vm7, %v3117_v28  ;;  %8141 = vmatmul.mubr.msk.f32.vlgmr.msra.gmra.mrb[118].mxu1 %vm1861_vm5, %v3117_v28  ;;  %v11149_v1 = vmax.f32 %v10013_v5, 0.0  ;;  %v11150_v12 = vmax.f32 %v10175_v51, 0.0  ;;  %v11152_v51 = vld [vmem:[#allocation5_spill] sm:$0xff] }
 0x226   :  { %v10736_v52 = vsel %vm3046_vm6, %v3124_v24, %v11147_v61  ;;  %v3128_v3 = vrot.slane %v11148_v40, 7  ;;  %v2945_v43 = vmax.f32 %v10672_v48, 0.0  ;;  %v2946_v55 = vmax.f32 %v10678_v0, 0.0  ;;  %8354 = vmatpush3.bf16.msra.mxu1 %v8353_v59  ;;  %8147 = vmatprep.mubr.msk.f32.mxu1 %vm8429_vm4, %v11074_v49  ;;  %v11160_v15 = vld [vmem:[#allocation6_spill] sm:$0xff]  ;;  %v11164_v54 = vld [vmem:[#allocation13_spill] sm:$0xff]  ;;  %v3322_v33 = vld [vmem:[%s11038_s3 + $0x278] sm:$0xff] }
 0x227   :  { %3233 = vst.msk [vmem:[%s11041_s6 + $0x4e] sm:$0x3] %vm3193_vm7, %v10736_v52  ;;  %v10755_v11 = vsel %vm3046_vm6, %v3126_v63, %v11149_v1  ;;  %v3130_v6 = vrot.slane %v11150_v12, 7  ;;  %v11151_v5 = vmax.f32 %v10110_v7, 0.0  ;;  %v11153_v62 = vmax.f32 %v11152_v51, 0.0  ;;  %8355 = vmatprep.subr.bf16.mxu1 %v11075_v41  ;;  %v3323_v61 = vld [vmem:[%s11038_s3 + $0x280] sm:$0xff] }
 0x228   :  { %3234 = vst.msk [vmem:[%s11041_s6 + $0x50] sm:$0x3] %vm3193_vm7, %v10755_v11  ;;  %v2922_v30 = vmax.f32 %v2824_v42, 0.0  ;;  %v8356_v60 = vpack.c.bf16 %v3318_v57, %v3317_v44  ;;  %v4201_v25 = vpop.f32.mrb[70].mxu1  ;;  %v11155_v50 = vmax.f32 %v11154_v13, 0.0  ;;  %v11156_v48 = vmax.f32 %v10298_v4, 0.0 }
 0x229   :  { %v10771_v20 = vsel %vm3046_vm6, %v3128_v3, %v11151_v5  ;;  %v3132_v58 = vrot.slane %v11153_v62, 7  ;;  %v2921_v21 = vmax.f32 %v2823_v47, 0.0  ;;  %v6891_v0 = vsel %vm6869_vm8, %v4201_v25, 0.0  ;;  %v7974_v45 = vpop.f32.mrb[71].mxu1  ;;  %v3324_v40 = vld [vmem:[%s11038_s3 + $0x288] sm:$0xff]  ;;  %v3325_v3 = vld [vmem:[%s11038_s3 + $0x290] sm:$0xff] }
 0x22a   :  { %3235 = vst.msk [vmem:[%s11041_s6 + $0x52] sm:$0x3] %vm3193_vm7, %v10771_v20  ;;  %v10784_v7 = vsel %vm3046_vm6, %v3130_v6, %v11155_v50  ;;  %v3134_v56 = vrot.slane %v11156_v48, 7  ;;  %v11158_v27 = vmax.f32 %v11157_v17, 0.0  ;;  %v11159_v18 = vmax.f32 %v10350_v37, 0.0  ;;  %v3320_v37 = vld [vmem:[%s11038_s3 + $0x268] sm:$0xff] }
 0x22b   :  { %3236 = vst.msk [vmem:[%s11041_s6 + $0x54] sm:$0x3] %vm3193_vm7, %v10784_v7  ;;  %v3118_v4 = vrot.slane %v2922_v30, 7  ;;  %v6892_v53 = vadd.f32 %v6891_v0, %v6890_v10  ;;  %v11161_v29 = vmax.f32 %v11160_v15, 0.0  ;;  %v3138_v16 = vrot.slane %v2942_v31, 7  ;;  %v3329_v5 = vld [vmem:[%s11038_s3 + $0x2b0] sm:$0xff] }
 0x22c   :  { %v10797_v8 = vsel %vm3046_vm6, %v3132_v58, %v11158_v27  ;;  %v3136_v9 = vrot.slane %v11159_v18, 7  ;;  %v11163_v22 = vmax.f32 %v11162_v14, 0.0  ;;  %v3140_v10 = vrot.slane %v2944_v36, 7  ;;  %v3326_v36 = vld [vmem:[%s11038_s3 + $0x298] sm:$0xff]  ;;  %v3331_v25 = vld [vmem:[%s11038_s3 + $0x2c0] sm:$0xff]  ;;  %v3332_v13 = vld [vmem:[%s11038_s3 + $0x2c8] sm:$0xff] }
 0x22d   :  { %3237 = vst.msk [vmem:[%s11041_s6 + $0x56] sm:$0x3] %vm3193_vm7, %v10797_v8  ;;  %v10809_v35 = vsel %vm3046_vm6, %v3134_v56, %v11161_v29  ;;  %v3119_v26 = vsel %vm3046_vm6, %v3118_v4, %v2921_v21  ;;  %v11165_v59 = vmax.f32 %v11164_v54, 0.0  ;;  %v3142_v2 = vrot.slane %v2946_v55, 7  ;;  %v3328_v55 = vld [vmem:[%s11038_s3 + $0x2a8] sm:$0xff]  ;;  %v3330_v51 = vld [vmem:[%s11038_s3 + $0x2b8] sm:$0xff] }
 0x22e   :  { %3238 = vst.msk [vmem:[%s11041_s6 + $0x58] sm:$0x3] %vm3193_vm7, %v10809_v35  ;;  %v10825_v23 = vsel %vm3046_vm6, %v3136_v9, %v11163_v22  ;;  %3230 = vst.msk [vmem:[%s11041_s6 + $0x48] sm:$0x3] %vm3193_vm7, %v3119_v26  ;;  %8148 = vmatmul.mubr.msk.f32.vlgmr.msra.gmra.mrb[120].mxu1 %vm1861_vm5, %v3119_v26  ;;  %v10849_v24 = vsel %vm3046_vm6, %v3140_v10, %v2943_v19  ;;  %v8359_v31 = vpack.c.bf16 %v3320_v37, %v3319_v38  ;;  %v3321_v19 = vld [vmem:[%s11038_s3 + $0x270] sm:$0xff]  ;;  %v3334_v48 = vld [vmem:[%s11038_s3 + $0x2d8] sm:$0xff] }
 0x22f   :  { %3239 = vst.msk [vmem:[%s11041_s6 + $0x5a] sm:$0x3] %vm3193_vm7, %v10825_v23  ;;  %v10836_v39 = vsel %vm3046_vm6, %v3138_v16, %v11165_v59  ;;  %8357 = vmatpush3.bf16.msra.mxu1 %v8356_v60  ;;  %8154 = vmatprep.mubr.msk.f32.mxu1 %vm8429_vm4, %v11074_v49  ;;  %3241 = vst.msk [vmem:[%s11041_s6 + $0x5e] sm:$0x3] %vm3193_vm7, %v10849_v24  ;;  %v10859_v32 = vsel %vm3046_vm6, %v3142_v2, %v2945_v43  ;;  %v3327_v43 = vld [vmem:[%s11038_s3 + $0x2a0] sm:$0xff]  ;;  %v3333_v50 = vld [vmem:[%s11038_s3 + $0x2d0] sm:$0xff] }
 0x230   :  { %3240 = vst.msk [vmem:[%s11041_s6 + $0x5c] sm:$0x3] %vm3193_vm7, %v10836_v39  ;;  %8358 = vmatprep.subr.bf16.mxu1 %v11075_v41  ;;  %3242 = vst.msk [vmem:[%s11041_s6 + $0x60] sm:$0x3] %vm3193_vm7, %v10859_v32  ;;  %v4273_v63 = vpop.f32.mrb[72].mxu1  ;;  %v8362_v44 = vpack.c.bf16 %v3322_v33, %v3321_v19  ;;  %v8368_v12 = vpack.c.bf16 %v3326_v36, %v3325_v3  ;;  %v8374_v30 = vpack.c.bf16 %v3330_v51, %v3329_v5  ;;  %v3335_v17 = vld [vmem:[%s11038_s3 + $0x2e0] sm:$0xff] }
 0x231   :  { %v6893_v47 = vsel %vm6869_vm8, %v4273_v63, 0.0  ;;  %v7981_v28 = vpop.f32.mrb[73].mxu1  ;;  %v8380_v0 = vpack.c.bf16 %v3334_v48, %v3333_v50  ;;  %v3336_v27 = vld [vmem:[%s11038_s3 + $0x2e8] sm:$0xff]  ;;  %v3337_v18 = vld [vmem:[%s11038_s3 + $0x2f0] sm:$0xff]  ;;  %v3338_v9 = vld [vmem:[%s11038_s3 + $0x2f8] sm:$0xff] }
 0x232   :  { %8155 = vmatmul.mubr.msk.f32.vlgmr.msra.gmra.mrb[122].mxu1 %vm1861_vm5, %v10702_v34  ;;  %v6894_v57 = vadd.f32 %v6893_v47, %v6892_v53  ;;  %v8365_v34 = vpack.c.bf16 %v3324_v40, %v3323_v61  ;;  %v8386_v29 = vpack.c.bf16 %v3338_v9, %v3337_v18  ;;  %v3339_v16 = vld [vmem:[%s11038_s3 + $0x300] sm:$0xff]  ;;  %v3340_v38 = vld [vmem:[%s11038_s3 + $0x308] sm:$0xff] }
 0x233   :  { %8360 = vmatpush3.bf16.msra.mxu1 %v8359_v31  ;;  %8161 = vmatprep.mubr.msk.f32.mxu1 %vm8429_vm4, %v11074_v49  ;;  %v8389_v37 = vpack.c.bf16 %v3340_v38, %v3339_v16 }
 0x234   :  { %8361 = vmatprep.subr.bf16.mxu1 %v11075_v41 }
 0x236   :  { %8162 = vmatmul.mubr.msk.f32.vlgmr.msra.gmra.mrb[124].mxu1 %vm1861_vm5, %v10712_v46 }
 0x237   :  { %8363 = vmatpush3.bf16.msra.mxu1 %v8362_v44  ;;  %8168 = vmatprep.mubr.msk.f32.mxu1 %vm8429_vm4, %v11074_v49 }
 0x238   :  { %8364 = vmatprep.subr.bf16.mxu1 %v11075_v41  ;;  %v4345_v42 = vpop.f32.mrb[74].mxu1 }
 0x239   :  { %v6895_v46 = vsel %vm6869_vm8, %v4345_v42, 0.0  ;;  %v7988_v1 = vpop.f32.mrb[75].mxu1 }
 0x23a   :  { %8169 = vmatmul.mubr.msk.f32.vlgmr.msra.gmra.mrb[126].mxu1 %vm1861_vm5, %v10736_v52  ;;  %v6896_v6 = vadd.f32 %v6895_v46, %v6894_v57  ;;  %v8371_v52 = vpack.c.bf16 %v3328_v55, %v3327_v43 }
 0x23b   :  { %8366 = vmatpush3.bf16.msra.mxu1 %v8365_v34  ;;  %8175 = vmatprep.mubr.msk.f32.mxu1 %vm8429_vm4, %v11074_v49 }
 0x23c   :  { %8367 = vmatprep.subr.bf16.mxu1 %v11075_v41 }
 0x23e   :  { %8176 = vmatmul.mubr.msk.f32.vlgmr.msra.gmra.mrb[128].mxu1 %vm1861_vm5, %v10755_v11 }
 0x23f   :  { %8369 = vmatpush3.bf16.msra.mxu1 %v8368_v12  ;;  %8182 = vmatprep.mubr.msk.f32.mxu1 %vm8429_vm4, %v11074_v49 }
 0x240   :  { %8370 = vmatprep.subr.bf16.mxu1 %v11075_v41  ;;  %v4417_v62 = vpop.f32.mrb[76].mxu1 }
 0x241   :  { %v6897_v11 = vsel %vm6869_vm8, %v4417_v62, 0.0  ;;  %v7995_v58 = vpop.f32.mrb[77].mxu1 }
 0x242   :  { %8183 = vmatmul.mubr.msk.f32.vlgmr.msra.gmra.mrb[130].mxu1 %vm1861_vm5, %v10771_v20  ;;  %v6898_v60 = vadd.f32 %v6897_v11, %v6896_v6  ;;  %v8377_v20 = vpack.c.bf16 %v3332_v13, %v3331_v25 }
 0x243   :  { %8372 = vmatpush3.bf16.msra.mxu1 %v8371_v52  ;;  %8189 = vmatprep.mubr.msk.f32.mxu1 %vm8429_vm4, %v11074_v49 }
 0x244   :  { %8373 = vmatprep.subr.bf16.mxu1 %v11075_v41 }
 0x246   :  { %8190 = vmatmul.mubr.msk.f32.vlgmr.msra.gmra.mrb[132].mxu1 %vm1861_vm5, %v10784_v7 }
 0x247   :  { %8375 = vmatpush3.bf16.msra.mxu1 %v8374_v30  ;;  %8196 = vmatprep.mubr.msk.f32.mxu1 %vm8429_vm4, %v11074_v49 }
 0x248   :  { %8376 = vmatprep.subr.bf16.mxu1 %v11075_v41  ;;  %v4489_v56 = vpop.f32.mrb[78].mxu1 }
 0x249   :  { %v6899_v7 = vsel %vm6869_vm8, %v4489_v56, 0.0  ;;  %v8002_v21 = vpop.f32.mrb[79].mxu1 }
 0x24a   :  { %8197 = vmatmul.mubr.msk.f32.vlgmr.msra.gmra.mrb[134].mxu1 %vm1861_vm5, %v10797_v8  ;;  %v6900_v45 = vadd.f32 %v6899_v7, %v6898_v60  ;;  %v8383_v8 = vpack.c.bf16 %v3336_v27, %v3335_v17 }
 0x24b   :  { %8378 = vmatpush3.bf16.msra.mxu1 %v8377_v20  ;;  %8203 = vmatprep.mubr.msk.f32.mxu1 %vm8429_vm4, %v11074_v49 }
 0x24c   :  { %8379 = vmatprep.subr.bf16.mxu1 %v11075_v41 }
 0x24e   :  { %8204 = vmatmul.mubr.msk.f32.vlgmr.msra.gmra.mrb[136].mxu1 %vm1861_vm5, %v10809_v35 }
 0x24f   :  { %8381 = vmatpush3.bf16.msra.mxu1 %v8380_v0  ;;  %8210 = vmatprep.mubr.msk.f32.mxu1 %vm8429_vm4, %v11074_v49 }
 0x250   :  { %8382 = vmatprep.subr.bf16.mxu1 %v11075_v41  ;;  %v4561_v4 = vpop.f32.mrb[80].mxu1 }
 0x251   :  { %v6901_v53 = vsel %vm6869_vm8, %v4561_v4, 0.0  ;;  %v8009_v15 = vpop.f32.mrb[81].mxu1 }
 0x252   :  { %8211 = vmatmul.mubr.msk.f32.vlgmr.msra.gmra.mrb[138].mxu1 %vm1861_vm5, %v10825_v23  ;;  %v6902_v35 = vadd.f32 %v6901_v53, %v6900_v45 }
 0x253   :  { %8384 = vmatpush3.bf16.msra.mxu1 %v8383_v8  ;;  %8217 = vmatprep.mubr.msk.f32.mxu1 %vm8429_vm4, %v11074_v49 }
 0x254   :  { %8385 = vmatprep.subr.bf16.mxu1 %v11075_v41 }
 0x256   :  { %8218 = vmatmul.mubr.msk.f32.vlgmr.msra.gmra.mrb[140].mxu1 %vm1861_vm5, %v10836_v39 }
 0x257   :  { %8387 = vmatpush3.bf16.msra.mxu1 %v8386_v29  ;;  %8224 = vmatprep.mubr.msk.f32.mxu1 %vm8429_vm4, %v11074_v49 }
 0x258   :  { %8388 = vmatprep.subr.bf16.mxu1 %v11075_v41  ;;  %v4633_v14 = vpop.f32.mrb[82].mxu1 }
 0x259   :  { %v6903_v22 = vsel %vm6869_vm8, %v4633_v14, 0.0  ;;  %v8016_v23 = vpop.f32.mrb[83].mxu1 }
 0x25a   :  { %8225 = vmatmul.mubr.msk.f32.vlgmr.msra.gmra.mrb[142].mxu1 %vm1861_vm5, %v10849_v24  ;;  %v6904_v10 = vadd.f32 %v6903_v22, %v6902_v35 }
 0x25b   :  { %8390 = vmatpush3.bf16.msra.mxu1 %v8389_v37  ;;  %8231 = vmatprep.mubr.msk.f32.mxu1 %vm8429_vm4, %v11074_v49 }
 0x25e   :  { %8232 = vmatmul.mubr.msk.f32.vlgmr.msra.gmra.mrb[144].mxu1 %vm1861_vm5, %v10859_v32 }
 0x260   :  { %v4705_v26 = vpop.f32.mrb[84].mxu1 }
 0x261   :  { %v6905_v54 = vsel %vm6869_vm8, %v4705_v26, 0.0  ;;  %v8023_v59 = vpop.f32.mrb[85].mxu1 }
 0x262   :  { %v6906_v41 = vadd.f32 %v6905_v54, %v6904_v10 }
 0x268   :  { %v4777_v39 = vpop.f32.mrb[86].mxu1 }
 0x269   :  { %v6907_v2 = vsel %vm6869_vm8, %v4777_v39, 0.0  ;;  %v8030_v24 = vpop.f32.mrb[87].mxu1 }
 0x26a   :  { %v6908_v31 = vadd.f32 %v6907_v2, %v6906_v41 }
 0x270   :  { %v4849_v19 = vpop.f32.mrb[88].mxu1 }
 0x271   :  { %v6909_v33 = vsel %vm6869_vm8, %v4849_v19, 0.0  ;;  %v8037_v63 = vpop.f32.mrb[89].mxu1 }
 0x272   :  { %v6910_v47 = vadd.f32 %v6909_v33, %v6908_v31 }
 0x278   :  { %v4921_v49 = vpop.f32.mrb[90].mxu1 }
 0x279   :  { %v6911_v28 = vsel %vm6869_vm8, %v4921_v49, 0.0  ;;  %v8044_v44 = vpop.f32.mrb[91].mxu1 }
 0x27a   :  { %v6912_v32 = vadd.f32 %v6911_v28, %v6910_v47 }
 0x281   :  { %v4993_v57 = vpop.f32.mrb[92].mxu1 }
 0x282   :  { %v6913_v61 = vsel %vm6869_vm8, %v4993_v57, 0.0  ;;  %v8051_v40 = vpop.f32.mrb[93].mxu1 }
 0x283   :  { %v6914_v34 = vadd.f32 %v6913_v61, %v6912_v32 }
 0x289   :  { %v5065_v3 = vpop.f32.mrb[94].mxu1 }
 0x28a   :  { %v6915_v36 = vsel %vm6869_vm8, %v5065_v3, 0.0  ;;  %v8058_v42 = vpop.f32.mrb[95].mxu1 }
 0x28b   :  { %v6916_v46 = vadd.f32 %v6915_v36, %v6914_v34 }
 0x296   :  { %v5137_v1 = vpop.f32.mrb[96].mxu1 }
 0x297   :  { %v6917_v12 = vsel %vm6869_vm8, %v5137_v1, 0.0  ;;  %v8065_v6 = vpop.f32.mrb[97].mxu1 }
 0x298   :  { %v6918_v43 = vadd.f32 %v6917_v12, %v6916_v46 }
 0x2a7   :  { %v5209_v55 = vpop.f32.mrb[98].mxu1 }
 0x2a8   :  { %v6919_v52 = vsel %vm6869_vm8, %v5209_v55, 0.0  ;;  %v8072_v5 = vpop.f32.mrb[99].mxu1 }
 0x2a9   :  { %v6920_v51 = vadd.f32 %v6919_v52, %v6918_v43 }
 0x2b9   :  { %v5281_v62 = vpop.f32.mrb[100].mxu1 }
 0x2ba   :  { %v6921_v11 = vsel %vm6869_vm8, %v5281_v62, 0.0  ;;  %v8079_v58 = vpop.f32.mrb[101].mxu1 }
 0x2bb   :  { %v6922_v30 = vadd.f32 %v6921_v11, %v6920_v51 }
 0x2c3   :  { %v5353_v60 = vpop.f32.mrb[102].mxu1 }
 0x2c4   :  { %v6923_v25 = vsel %vm6869_vm8, %v5353_v60, 0.0  ;;  %v8086_v13 = vpop.f32.mrb[103].mxu1 }
 0x2c5   :  { %v6924_v20 = vadd.f32 %v6923_v25, %v6922_v30 }
 0x2c9   :  { %v5425_v50 = vpop.f32.mrb[104].mxu1 }
 0x2ca   :  { %v6925_v48 = vsel %vm6869_vm8, %v5425_v50, 0.0  ;;  %v8093_v56 = vpop.f32.mrb[105].mxu1 }
 0x2cb   :  { %v6926_v7 = vadd.f32 %v6925_v48, %v6924_v20 }
 0x2d0   :  { %v5497_v21 = vpop.f32.mrb[106].mxu1 }
 0x2d1   :  { %v6927_v0 = vsel %vm6869_vm8, %v5497_v21, 0.0  ;;  %v8100_v45 = vpop.f32.mrb[107].mxu1 }
 0x2d2   :  { %v6928_v17 = vadd.f32 %v6927_v0, %v6926_v7 }
 0x2d7   :  { %v5569_v27 = vpop.f32.mrb[108].mxu1 }
 0x2d8   :  { %v6929_v8 = vsel %vm6869_vm8, %v5569_v27, 0.0  ;;  %v8107_v18 = vpop.f32.mrb[109].mxu1 }
 0x2d9   :  { %v6930_v9 = vadd.f32 %v6929_v8, %v6928_v17 }
 0x2de   :  { %v5641_v4 = vpop.f32.mrb[110].mxu1 }
 0x2df   :  { %v6931_v53 = vsel %vm6869_vm8, %v5641_v4, 0.0  ;;  %v8114_v15 = vpop.f32.mrb[111].mxu1 }
 0x2e0   :  { %v6932_v29 = vadd.f32 %v6931_v53, %v6930_v9 }
 0x2e4   :  { %v5713_v35 = vpop.f32.mrb[112].mxu1 }
 0x2e5   :  { %v6933_v16 = vsel %vm6869_vm8, %v5713_v35, 0.0  ;;  %v8121_v38 = vpop.f32.mrb[113].mxu1 }
 0x2e6   :  { %v6934_v37 = vadd.f32 %v6933_v16, %v6932_v29 }
 0x2ea   :  { %v5785_v14 = vpop.f32.mrb[114].mxu1 }
 0x2eb   :  { %v6935_v22 = vsel %vm6869_vm8, %v5785_v14, 0.0  ;;  %v8128_v23 = vpop.f32.mrb[115].mxu1 }
 0x2ec   :  { %v6936_v10 = vadd.f32 %v6935_v22, %v6934_v37  ;;  %v7241_v37 = vld [vmem:[%s11039_s4] ss:$0 sm:$0xff] }
 0x2f1   :  { %v5857_v26 = vpop.f32.mrb[116].mxu1 }
 0x2f2   :  { %v6937_v54 = vsel %vm6869_vm8, %v5857_v26, 0.0  ;;  %v8135_v59 = vpop.f32.mrb[117].mxu1 }
 0x2f3   :  { %v6938_v41 = vadd.f32 %v6937_v54, %v6936_v10 }
 0x2f8   :  { %v5929_v39 = vpop.f32.mrb[118].mxu1 }
 0x2f9   :  { %v6939_v2 = vsel %vm6869_vm8, %v5929_v39, 0.0  ;;  %v8142_v24 = vpop.f32.mrb[119].mxu1 }
 0x2fa   :  { %v6940_v31 = vadd.f32 %v6939_v2, %v6938_v41 }
 0x301   :  { %v6001_v19 = vpop.f32.mrb[120].mxu1 }
 0x302   :  { %v6941_v33 = vsel %vm6869_vm8, %v6001_v19, 0.0  ;;  %v8149_v63 = vpop.f32.mrb[121].mxu1 }
 0x303   :  { %v6942_v47 = vadd.f32 %v6941_v33, %v6940_v31 }
 0x305   :  { %v6073_v49 = vpop.f32.mrb[122].mxu1 }
 0x306   :  { %v6943_v28 = vsel %vm6869_vm8, %v6073_v49, 0.0  ;;  %v8156_v44 = vpop.f32.mrb[123].mxu1 }
 0x307   :  { %v6944_v32 = vadd.f32 %v6943_v28, %v6942_v47 }
 0x309   :  { %v6145_v57 = vpop.f32.mrb[124].mxu1 }
 0x30a   :  { %v6945_v61 = vsel %vm6869_vm8, %v6145_v57, 0.0  ;;  %v8163_v40 = vpop.f32.mrb[125].mxu1 }
 0x30b   :  { %v6946_v34 = vadd.f32 %v6945_v61, %v6944_v32 }
 0x30d   :  { %v6217_v3 = vpop.f32.mrb[126].mxu1 }
 0x30e   :  { %v6947_v36 = vsel %vm6869_vm8, %v6217_v3, 0.0  ;;  %v8170_v42 = vpop.f32.mrb[127].mxu1 }
 0x30f   :  { %v6948_v46 = vadd.f32 %v6947_v36, %v6946_v34 }
 0x311   :  { %v6289_v1 = vpop.f32.mrb[128].mxu1 }
 0x312   :  { %v6949_v12 = vsel %vm6869_vm8, %v6289_v1, 0.0  ;;  %v8177_v6 = vpop.f32.mrb[129].mxu1 }
 0x313   :  { %v6950_v43 = vadd.f32 %v6949_v12, %v6948_v46 }
 0x315   :  { %v6361_v55 = vpop.f32.mrb[130].mxu1 }
 0x316   :  { %v6951_v52 = vsel %vm6869_vm8, %v6361_v55, 0.0  ;;  %v8184_v5 = vpop.f32.mrb[131].mxu1 }
 0x317   :  { %v6952_v51 = vadd.f32 %v6951_v52, %v6950_v43 }
 0x319   :  { %v6433_v62 = vpop.f32.mrb[132].mxu1 }
 0x31a   :  { %v6953_v11 = vsel %vm6869_vm8, %v6433_v62, 0.0  ;;  %v8191_v58 = vpop.f32.mrb[133].mxu1 }
 0x31b   :  { %v6954_v30 = vadd.f32 %v6953_v11, %v6952_v51 }
 0x31d   :  { %v6505_v60 = vpop.f32.mrb[134].mxu1 }
 0x31e   :  { %v6955_v25 = vsel %vm6869_vm8, %v6505_v60, 0.0  ;;  %v8198_v13 = vpop.f32.mrb[135].mxu1 }
 0x31f   :  { %v6956_v20 = vadd.f32 %v6955_v25, %v6954_v30 }
 0x321   :  { %v6577_v50 = vpop.f32.mrb[136].mxu1 }
 0x322   :  { %v6957_v48 = vsel %vm6869_vm8, %v6577_v50, 0.0  ;;  %v8205_v56 = vpop.f32.mrb[137].mxu1 }
 0x323   :  { %v6958_v7 = vadd.f32 %v6957_v48, %v6956_v20 }
 0x325   :  { %v6649_v21 = vpop.f32.mrb[138].mxu1 }
 0x326   :  { %v6959_v0 = vsel %vm6869_vm8, %v6649_v21, 0.0  ;;  %v8212_v45 = vpop.f32.mrb[139].mxu1 }
 0x327   :  { %v6960_v17 = vadd.f32 %v6959_v0, %v6958_v7 }
 0x329   :  { %v6721_v27 = vpop.f32.mrb[140].mxu1 }
 0x32a   :  { %v6961_v8 = vsel %vm6869_vm8, %v6721_v27, 0.0  ;;  %v8219_v18 = vpop.f32.mrb[141].mxu1 }
 0x32b   :  { %v6962_v9 = vadd.f32 %v6961_v8, %v6960_v17 }
 0x32d   :  { %v6793_v4 = vpop.f32.mrb[142].mxu1 }
 0x32e   :  { %v6963_v53 = vsel %vm6869_vm8, %v6793_v4, 0.0  ;;  %v8226_v15 = vpop.f32.mrb[143].mxu1 }
 0x32f   :  { %v6964_v29 = vadd.f32 %v6963_v53, %v6962_v9 }
 0x331   :  { %v6865_v35 = vpop.f32.mrb[144].mxu1 }
 0x332   :  { %v6965_v16 = vsel %vm6869_vm8, %v6865_v35, 0.0  ;;  %v8233_v38 = vpop.f32.mrb[145].mxu1 }
 0x333   :  { %v6966_v14 = vadd.f32 %v6965_v16, %v6964_v29 }
 0x335   :  { %v6974_v22 = vadd.f32 %v7241_v37, %v6966_v14 }
 0x337   :  { %6975 = vst [vmem:[#allocation2] sm:$0x3] %v6974_v22 }
 0x338   :  { %8414 = shalt.err (!%p8411_p4)
}
 0x339   :  { %s8415_s14 = scalar_lea.hbm %s11040_s5, 32 }
 0x33a   :  { %p8416_p5 = scmp.ne.s32.totalorder %s11040_s5, %s8415_s14  ;;  %p8419_p6 = scmp.lt.u32.totalorder %s8415_s14, %s11040_s5 }
 0x33c   :  { %p8421_p7 = pnand %p8419_p6, %p8416_p5 }
 0x33e   :  { %8424 = shalt.err (!%p8421_p7)
}
 0x33f   :  { %6985 = dma.vmem_to_hbm [thread:$0]  %s6983_s10, 32, %s11040_s5, [#allocation3]  }
 0x340   :  { %8425 = dma.done.wait [#allocation3], 32  }
 0x341   :  { %8426 = vsyncadd [#allocation3], 4294967264 }
 0x342   :  { %6993 = vsyncpa [#allocation3], 1 }

</bundles_post_ra>
